<compile_context>
chip_gen: v6e
topology: v6e:2x2x1
jax: 0.10.0
libtpu: 0.0.40
codegen_flags: <defaults>
</compile_context>

<pallas_src>
import jax
import jax.numpy as jnp
from jax import lax
from jax.experimental import pallas as pl
from jax.experimental.pallas import tpu as pltpu

C_IN = 32
C3_OUT = 128
C1_OUT = 64
C_OUT = C3_OUT + C1_OUT      # 192
KFOLD = 3 * C_IN             # 96: 3 kx taps folded into the contraction dim


def _fused_conv_kernel(xs_ref, w_ref, b_ref, out_ref):
    """One (batch, row-tile) grid step.

    xs_ref : (1, H+2, W, 96)  bf16  kx-folded, H-padded input (resident per batch elem)
    w_ref  : (3, 96, 192)     bf16  combined weights: [:, :, :128] = 3x3 taps (dy-major),
                                    [1, 32:64, 128:192] = 1x1 conv, zeros elsewhere
    b_ref  : (1, 192)         f32   concat([b3, b1])
    out_ref: (1, TH, W, 192)  f32   channels [0:128] = conv3x3, [128:192] = conv1x1
    """
    TH = out_ref.shape[1]
    W = out_ref.shape[2]
    row0 = pl.program_id(1) * TH

    # Accumulator starts as the broadcast bias (saves a full VPU bias pass later).
    acc = jnp.broadcast_to(b_ref[...], (TH * W, C_OUT)).astype(jnp.float32)

    # Three MXU matmuls with K = 96.  The dy shift is a cheap outer-dim ref slice
    # (no lane/sublane relayout); the 1x1 conv rides along in the dy == 1 matmul.
    for dy in range(3):
        patch = xs_ref[0, pl.ds(row0 + dy, TH)]                # (TH, W, 96) bf16
        acc = acc + jnp.dot(patch.reshape(TH * W, KFOLD), w_ref[dy],
                            preferred_element_type=jnp.float32)

    out_ref[0] = acc.reshape(TH, W, C_OUT).astype(out_ref.dtype)


def _pick_row_tile(H, W):
    """Largest row-tile dividing H whose f32 output block stays under ~1 MiB."""
    budget = 1 << 20
    for th in (64, 32, 16, 8, 4, 2, 1):
        if H % th == 0 and th * W * C_OUT * 4 <= budget:
            return th
    return H


@jax.jit
def pattern_module_forward(x_nchw, w3_hwio, b3, w1_io, b1):
    """x_nchw: (N, 32, H, W) f32 -> (N, 192, H, W) f32."""
    N, Cin, H, W = x_nchw.shape
    assert Cin == C_IN

    # ---- layout glue in XLA: NCHW -> NHWC, bf16 for the MXU, spatial pad, kx-fold ----
    x = jnp.transpose(x_nchw, (0, 2, 3, 1)).astype(jnp.bfloat16)        # (N, H, W, 32)
    xp = jnp.pad(x, ((0, 0), (1, 1), (1, 1), (0, 0)))                   # (N, H+2, W+2, 32)
    xs = jnp.concatenate([xp[:, :, dx:dx + W, :] for dx in range(3)],   # (N, H+2, W, 96)
                         axis=-1)

    # ---- combined weights: xs channel layout is [dx*Cin + c], so a plain reshape of the
    #      HWIO 3x3 weight gives the per-dy (96, 128) blocks; the 1x1 conv occupies the
    #      extra 64 output columns of the dy == 1 tap (center rows only). ----
    w3_folded = w3_hwio.reshape(3, KFOLD, C3_OUT)
    w1_cols = jnp.zeros((3, KFOLD, C1_OUT), w1_io.dtype)
    w1_cols = w1_cols.at[1, C_IN:2 * C_IN, :].set(w1_io)
    w_comb = jnp.concatenate([w3_folded, w1_cols], axis=-1).astype(jnp.bfloat16)
    b_comb = jnp.concatenate([b3, b1]).reshape(1, C_OUT).astype(jnp.float32)

    TH = _pick_row_tile(H, W)
    Hp = H + 2

    out_nhwc = pl.pallas_call(
        _fused_conv_kernel,
        out_shape=jax.ShapeDtypeStruct((N, H, W, C_OUT), jnp.float32),
        grid_spec=pltpu.PrefetchScalarGridSpec(
            num_scalar_prefetch=0,
            grid=(N, H // TH),
            in_specs=[
                # Whole padded image of one batch element; index ignores h, so it is
                # DMA'd once per n and stays resident across the row-tile axis.
                pl.BlockSpec((1, Hp, W, KFOLD), lambda n, h: (n, 0, 0, 0)),
                pl.BlockSpec((3, KFOLD, C_OUT), lambda n, h: (0, 0, 0)),
                pl.BlockSpec((1, C_OUT), lambda n, h: (0, 0)),
            ],
            out_specs=pl.BlockSpec((1, TH, W, C_OUT), lambda n, h: (n, h, 0, 0)),
        ),
        compiler_params=pltpu.CompilerParams(
            dimension_semantics=("parallel", "parallel")),
    )(xs, w_comb, b_comb)

    # TODO(synk): the NHWC->NCHW transpose stays in XLA; storing NCHW from the kernel
    # would force 64-lane masked stores + in-kernel XLU transposes (net loss here).
    return jnp.transpose(out_nhwc, (0, 3, 1, 2))


def _reference(x_nchw, w3_hwio, b3, w1_io, b1):
    """Pure-JAX reference (lax.conv, HIGHEST precision) for correctness checking."""
    x = jnp.transpose(x_nchw, (0, 2, 3, 1))
    dn = lax.conv_dimension_numbers(x.shape, w3_hwio.shape, ("NHWC", "HWIO", "NHWC"))
    y3 = lax.conv_general_dilated(x, w3_hwio, (1, 1), "SAME", dimension_numbers=dn,
                                  precision=lax.Precision.HIGHEST) + b3
    w1_hwio = w1_io.reshape(1, 1, C_IN, C1_OUT)
    dn1 = lax.conv_dimension_numbers(x.shape, w1_hwio.shape, ("NHWC", "HWIO", "NHWC"))
    y1 = lax.conv_general_dilated(x, w1_hwio, (1, 1), "VALID", dimension_numbers=dn1,
                                  precision=lax.Precision.HIGHEST) + b1
    y = jnp.concatenate([y3, y1], axis=-1)
    return jnp.transpose(y, (0, 3, 1, 2))


if __name__ == "__main__":
    key = jax.random.PRNGKey(0)
    k_x, k_w3, k_b3, k_w1, k_b1 = jax.random.split(key, 5)

    # Shapes implied by the module: inputs = randn(2, 32, 64, 64).
    N, H, W = 2, 64, 64
    x = jax.random.normal(k_x, (N, C_IN, H, W), dtype=jnp.float32)

    # Deterministic parameter init (PyTorch-style uniform in +-1/sqrt(fan_in)).
    fan3 = C_IN * 3 * 3
    w3 = jax.random.uniform(k_w3, (3, 3, C_IN, C3_OUT), jnp.float32,
                            -1.0 / jnp.sqrt(fan3), 1.0 / jnp.sqrt(fan3))   # HWIO
    b3 = jax.random.uniform(k_b3, (C3_OUT,), jnp.float32,
                            -1.0 / jnp.sqrt(fan3), 1.0 / jnp.sqrt(fan3))
    fan1 = C_IN
    w1 = jax.random.uniform(k_w1, (C_IN, C1_OUT), jnp.float32,
                            -1.0 / jnp.sqrt(fan1), 1.0 / jnp.sqrt(fan1))   # (Cin, Cout)
    b1 = jax.random.uniform(k_b1, (C1_OUT,), jnp.float32,
                            -1.0 / jnp.sqrt(fan1), 1.0 / jnp.sqrt(fan1))

    out = jax.block_until_ready(pattern_module_forward(x, w3, b3, w1, b1))
    assert out.shape == (N, C_OUT, H, W), out.shape

    # Tight check: reference on bf16-rounded operands with f32 accumulation — same
    # arithmetic as the kernel (bf16 MXU inputs, f32 accumulate), so only summation-order
    # differences remain.
    xb = x.astype(jnp.bfloat16).astype(jnp.float32)
    w3b = w3.astype(jnp.bfloat16).astype(jnp.float32)
    w1b = w1.astype(jnp.bfloat16).astype(jnp.float32)
    ref_bf16 = jax.block_until_ready(_reference(xb, w3b, b3, w1b, b1))
    assert jnp.allclose(out, ref_bf16, atol=2e-3, rtol=2e-3), \
        float(jnp.max(jnp.abs(out - ref_bf16)))

    # Loose sanity check against the full-f32 reference (bf16 rounding of MXU inputs only).
    ref_f32 = jax.block_until_ready(_reference(x, w3, b3, w1, b1))
    assert float(jnp.max(jnp.abs(out - ref_f32))) < 5e-2, \
        float(jnp.max(jnp.abs(out - ref_f32)))

    print("KERNEL_OK")
</pallas_src>

<mosaic_0001>
module attributes {stable_mosaic.version = 11 : i64} {
  func.func @_fused_conv_kernel(%arg0: i32, %arg1: i32, %arg2: memref<1x66x64x96xbf16, #tpu.memory_space<vmem>>, %arg3: memref<3x96x192xbf16, #tpu.memory_space<vmem>>, %arg4: memref<1x192xf32, #tpu.memory_space<vmem>>, %arg5: memref<1x16x64x192xf32, #tpu.memory_space<vmem>>) attributes {dimension_semantics = [#tpu.dimension_semantics<parallel>, #tpu.dimension_semantics<parallel>], iteration_bounds = array<i64: 2, 4>, scalar_prefetch = 0 : i64, scratch_operands = 0 : i64, tpu.core_type = #tpu.core_type<tc>, window_params = [{transform_indices = @transform_0, window_bounds = array<i64: 1, 66, 64, 96>}, {pipeline_mode = #tpu.pipeline_mode<synchronous>, transform_indices = @transform_1, window_bounds = array<i64: 3, 96, 192>}, {pipeline_mode = #tpu.pipeline_mode<synchronous>, transform_indices = @transform_2, window_bounds = array<i64: 1, 192>}, {transform_indices = @transform_3, window_bounds = array<i64: 1, 16, 64, 192>}]} {
    %c16_i32 = arith.constant 16 : i32
    %0 = arith.muli %arg1, %c16_i32 : i32
    %c0 = arith.constant 0 : index
    %c0_0 = arith.constant 0 : index
    %1 = vector.load %arg4[%c0, %c0_0] : memref<1x192xf32, #tpu.memory_space<vmem>>, vector<1x192xf32>
    %2 = vector.shape_cast %1 : vector<1x192xf32> to vector<1x192xf32>
    %3 = vector.broadcast %2 : vector<1x192xf32> to vector<1024x192xf32>
    %c0_i32 = arith.constant 0 : i32
    %4 = arith.addi %0, %c0_i32 : i32
    %c0_1 = arith.constant 0 : index
    %5 = arith.index_cast %4 : i32 to index
    %c0_2 = arith.constant 0 : index
    %c0_3 = arith.constant 0 : index
    %6 = vector.load %arg2[%c0_1, %5, %c0_2, %c0_3] : memref<1x66x64x96xbf16, #tpu.memory_space<vmem>>, vector<1x16x64x96xbf16>
    %7 = vector.shape_cast %6 : vector<1x16x64x96xbf16> to vector<16x64x96xbf16>
    %8 = vector.shape_cast %7 : vector<16x64x96xbf16> to vector<1024x96xbf16>
    %c0_4 = arith.constant 0 : index
    %c0_5 = arith.constant 0 : index
    %c0_6 = arith.constant 0 : index
    %9 = vector.load %arg3[%c0_4, %c0_5, %c0_6] : memref<3x96x192xbf16, #tpu.memory_space<vmem>>, vector<1x96x192xbf16>
    %10 = vector.shape_cast %9 : vector<1x96x192xbf16> to vector<96x192xbf16>
    %cst = arith.constant dense<0.000000e+00> : vector<1024x192xf32>
    %11 = tpu.matmul %8, %10, %cst {dimension_numbers = #tpu.dot_dimension_numbers<[1], [0], [0], [1], [0, 0, 1, 1], [], []>} : vector<1024x96xbf16>, vector<96x192xbf16>, vector<1024x192xf32> -> vector<1024x192xf32>
    %12 = arith.addf %3, %11 : vector<1024x192xf32>
    %c1_i32 = arith.constant 1 : i32
    %13 = arith.addi %0, %c1_i32 : i32
    %c0_7 = arith.constant 0 : index
    %14 = arith.index_cast %13 : i32 to index
    %c0_8 = arith.constant 0 : index
    %c0_9 = arith.constant 0 : index
    %15 = vector.load %arg2[%c0_7, %14, %c0_8, %c0_9] : memref<1x66x64x96xbf16, #tpu.memory_space<vmem>>, vector<1x16x64x96xbf16>
    %16 = vector.shape_cast %15 : vector<1x16x64x96xbf16> to vector<16x64x96xbf16>
    %17 = vector.shape_cast %16 : vector<16x64x96xbf16> to vector<1024x96xbf16>
    %c1 = arith.constant 1 : index
    %c0_10 = arith.constant 0 : index
    %c0_11 = arith.constant 0 : index
    %18 = vector.load %arg3[%c1, %c0_10, %c0_11] : memref<3x96x192xbf16, #tpu.memory_space<vmem>>, vector<1x96x192xbf16>
    %19 = vector.shape_cast %18 : vector<1x96x192xbf16> to vector<96x192xbf16>
    %cst_12 = arith.constant dense<0.000000e+00> : vector<1024x192xf32>
    %20 = tpu.matmul %17, %19, %cst_12 {dimension_numbers = #tpu.dot_dimension_numbers<[1], [0], [0], [1], [0, 0, 1, 1], [], []>} : vector<1024x96xbf16>, vector<96x192xbf16>, vector<1024x192xf32> -> vector<1024x192xf32>
    %21 = arith.addf %12, %20 : vector<1024x192xf32>
    %c2_i32 = arith.constant 2 : i32
    %22 = arith.addi %0, %c2_i32 : i32
    %c0_13 = arith.constant 0 : index
    %23 = arith.index_cast %22 : i32 to index
    %c0_14 = arith.constant 0 : index
    %c0_15 = arith.constant 0 : index
    %24 = vector.load %arg2[%c0_13, %23, %c0_14, %c0_15] : memref<1x66x64x96xbf16, #tpu.memory_space<vmem>>, vector<1x16x64x96xbf16>
    %25 = vector.shape_cast %24 : vector<1x16x64x96xbf16> to vector<16x64x96xbf16>
    %26 = vector.shape_cast %25 : vector<16x64x96xbf16> to vector<1024x96xbf16>
    %c2 = arith.constant 2 : index
    %c0_16 = arith.constant 0 : index
    %c0_17 = arith.constant 0 : index
    %27 = vector.load %arg3[%c2, %c0_16, %c0_17] : memref<3x96x192xbf16, #tpu.memory_space<vmem>>, vector<1x96x192xbf16>
    %28 = vector.shape_cast %27 : vector<1x96x192xbf16> to vector<96x192xbf16>
    %cst_18 = arith.constant dense<0.000000e+00> : vector<1024x192xf32>
    %29 = tpu.matmul %26, %28, %cst_18 {dimension_numbers = #tpu.dot_dimension_numbers<[1], [0], [0], [1], [0, 0, 1, 1], [], []>} : vector<1024x96xbf16>, vector<96x192xbf16>, vector<1024x192xf32> -> vector<1024x192xf32>
    %30 = arith.addf %21, %29 : vector<1024x192xf32>
    %31 = vector.shape_cast %30 : vector<1024x192xf32> to vector<16x64x192xf32>
    %c0_19 = arith.constant 0 : index
    %c0_20 = arith.constant 0 : index
    %c0_21 = arith.constant 0 : index
    %c0_22 = arith.constant 0 : index
    %32 = vector.load %arg5[%c0_19, %c0_20, %c0_21, %c0_22] : memref<1x16x64x192xf32, #tpu.memory_space<vmem>>, vector<1x16x64x192xf32>
    %33 = vector.shape_cast %32 : vector<1x16x64x192xf32> to vector<16x64x192xf32>
    %34 = vector.shape_cast %31 : vector<16x64x192xf32> to vector<1x16x64x192xf32>
    tpu.vector_store %arg5[%c0_19, %c0_20, %c0_21, %c0_22], %34 {strides = array<i32>} : memref<1x16x64x192xf32, #tpu.memory_space<vmem>>, vector<1x16x64x192xf32>,
    return
  }
  func.func @transform_0(%arg0: i32, %arg1: i32) -> (i32, i32, i32, i32) {
    %c0_i32 = arith.constant 0 : i32
    %c0_i32_0 = arith.constant 0 : i32
    %c0_i32_1 = arith.constant 0 : i32
    %c0_i32_2 = arith.constant 0 : i32
    return %arg0, %c0_i32, %c0_i32_0, %c0_i32_1 : i32, i32, i32, i32
  }
  func.func @transform_1(%arg0: i32, %arg1: i32) -> (i32, i32, i32) {
    %c0_i32 = arith.constant 0 : i32
    %c0_i32_0 = arith.constant 0 : i32
    %c0_i32_1 = arith.constant 0 : i32
    %c0_i32_2 = arith.constant 0 : i32
    return %c0_i32, %c0_i32_0, %c0_i32_1 : i32, i32, i32
  }
  func.func @transform_2(%arg0: i32, %arg1: i32) -> (i32, i32) {
    %c0_i32 = arith.constant 0 : i32
    %c0_i32_0 = arith.constant 0 : i32
    %c0_i32_1 = arith.constant 0 : i32
    return %c0_i32, %c0_i32_0 : i32, i32
  }
  func.func @transform_3(%arg0: i32, %arg1: i32) -> (i32, i32, i32, i32) {
    %c0_i32 = arith.constant 0 : i32
    %c0_i32_0 = arith.constant 0 : i32
    %c0_i32_1 = arith.constant 0 : i32
    return %arg0, %arg1, %c0_i32, %c0_i32_0 : i32, i32, i32, i32
  }
}

</mosaic_0001>

<bundles_post_ra>
// kernel: pattern_module_forward.1
= control target key start
LH: loop header
LB: loop body
LE: loop exit
PB: predicated region body
PF: predicated region fallthrough
CT: control target
= control target key end

     0   :  { %8 = vsyncpa [#allocation3], 0  ;;  %s8918_s0 = inlined_call_operand.vmem [shape: bf16[2,66,64,96], index: 0, kind: input, shape index: {}]   ;;  %s8919_s1 = inlined_call_operand.vmem [shape: bf16[3,96,192], index: 1, kind: input, shape index: {}]   ;;  %s8920_s2 = inlined_call_operand.vmem [shape: f32[1,192], index: 2, kind: input, shape index: {}]   ;;  %s8921_s3 = inlined_call_operand.hbm [shape: f32[2,64,64,192], index: 3, kind: output, shape index: {}]  }
   0x1   :  { %10 = vsyncpa [#allocation3 + $0x1], 0  ;;  %s6672_s12 = smov 0   ;;  %s6674_s13 = smov 0  }
   0x2   :  { %s6676_s14 = smov 0   ;;  %s6678_s15 = smov 0  }
   0x3   :  { %s6680_s16 = smov 0   ;;  %s6682_s17 = smov 0  }
   0x4   :  { %s6684_s18 = smov 0   ;;  %s6686_s19 = smov 0  }
   0x5 LB: > { %s5495_s20 = sadd.s32 4294967295, %s6646_s19   ;;  %s5496_s21 = sadd.s32 4294967294, %s6646_s19   ;;  %s6646_s19 = sphi %s6686_s19, %s16_s19   ;;  %s6642_s18 = sphi %s6684_s18, %s9351_s18   ;;  %s6638_s17 = sphi %s6682_s17, %s9350_s17   ;;  %s6634_s16 = sphi %s6680_s16, %s9349_s16   ;;  %s6630_s15 = sphi %s6678_s15, %s9348_s15   ;;  %s6626_s14 = sphi %s6676_s14, %s9347_s14   ;;  %s6622_s13 = sphi %s6674_s13, %s9346_s13   ;;  %s6618_s12 = sphi %s6672_s12, %s9345_s12  }
   0x6   : > { %s25_s22 = sadd.s32 1, %s6638_s17  ;;  %s28_s23 = sadd.s32 1, %s6642_s18 }
   0x7   : > { %p26_p0 = scmp.ge.s32.totalorder %s25_s22, 4  ;;  %p115_p1 = scmp.ne.s32.totalorder %s6626_s14, %s6622_s13 }
   0x8   : > { %p116_p2 = scmp.eq.s32.totalorder %s5495_s20, 7  ;;  %p121_p5 = scmp.ne.s32.totalorder %s6622_s13, %s6618_s12 }
   0x9   : > { %s9353_s22 = smov (%p26_p0, %s25_s22), 0  ;;  %s9355_s23 = smov (!%p26_p0, %s28_s23), %s6642_s18 }
   0xa   : > { %s101_s24 = ssub.s32 %s6638_s17, %s9353_s22  ;;  %p6723_p3 = por %p116_p2, %p115_p1 }
   0xb   : > { %p30_p4 = scmp.ge.s32.totalorder %s9355_s23, 2  ;;  %p122_p6 = scmp.eq.s32.totalorder %s5496_s21, 7 }
   0xc   : > { %p5499_p7 = scmp.ge.s32.totalorder %s6646_s19, 1  ;;  %p154_p9 = scmp.lt.s32.totalorder %s6646_s19, 9 }
   0xd   : > { %s9357_s23 = smov (%p30_p4, %s9355_s23), 0  ;;  %p6732_p8 = por %p122_p6, %p121_p5 }
   0xe   : > { %s100_s27 = ssub.s32 %s6642_s18, %s9357_s23  ;;  %s105_s28 = sadd.s32 1, %s6626_s14 }
   0xf   : > { %s102_s29 = sor.u32 %s101_s24, %s100_s27  ;;  %p155_p10 = pnand %p5499_p7, %p154_p9 }
  0x10   : > { %p103_p11 = scmp.eq.s32.totalorder %s102_s29, 0 }
  0x11   : > { %158 = sbr.rel (%p155_p10) target bundleno = 1025 (0x401), region = 32 }
  0x12   : > { %s6741_s30 = scalar_select %p103_p11, %s6626_s14, %s105_s28  }
  0x16   : > { %v6308_v0 = vld [vmem:[%s8919_s1 + $0x54] ss:$8 sps:$4 sm:$0xff]   ;;  %p178_p12 = scmp.lt.s32.totalorder %s6634_s16, 1  ;;  %v6310_v1 = vld [vmem:[%s8919_s1 + $0x50] ss:$8 sps:$4 sm:$0xff]   ;;  %v8922_v2 = vmov 0  }
  0x17   : > { %946 = vmatprep.mubr.bf16.mxu0 %v8922_v2  ;;  %1266 = vmatprep.mubr.bf16.mxu1 %v8922_v2  ;;  %v6311_v3 = vld [vmem:[%s8919_s1 + $0x44] ss:$8 sps:$4 sm:$0xff]   ;;  %v6313_v4 = vld [vmem:[%s8919_s1 + $0x40] ss:$8 sps:$4 sm:$0xff]   ;;  %v6314_v5 = vld [vmem:[%s8919_s1 + $0x34] ss:$8 sps:$4 sm:$0xff]  }
  0x18   : > { %918 = vmatprep.subr.bf16.mxu0 %v6308_v0  ;;  %6221 = vmatprep.subr.bf16.mxu1 %v6308_v0  ;;  %s179_s10 = scalar_select %p178_p12, %s6634_s16, 1  ;;  %v6316_v6 = vld [vmem:[%s8919_s1 + $0x30] ss:$8 sps:$4 sm:$0xff]   ;;  %v6317_v7 = vld [vmem:[%s8919_s1 + $0x24] ss:$8 sps:$4 sm:$0xff]   ;;  %vm721_vm0 = vcmask 785408  }
  0x19   : > { %919 = vmatpush1.bf16.msra.mxu0 %v6310_v1  ;;  %6227 = vmatpush1.bf16.msra.mxu1 %v6310_v1  ;;  %s6217_s28 = sshll.u32 %s6630_s15, 9  ;;  %v6319_v8 = vld [vmem:[%s8919_s1 + $0x20] ss:$8 sps:$4 sm:$0xff]   ;;  %v6320_v9 = vld [vmem:[%s8919_s1 + $0x14] ss:$8 sps:$4 sm:$0xff]   ;;  %vm5136_vm1 = vcmask 523264  }
  0x1a   : > { %920 = vmatprep.subr.bf16.mxu0 %v6311_v3  ;;  %6222 = vmatprep.subr.bf16.mxu1 %v6311_v3  ;;  %s6233_s27 = smul.u32 2112, %s179_s10  ;;  %v6322_v10 = vld [vmem:[%s8919_s1 + $0x10] ss:$8 sps:$4 sm:$0xff]   ;;  %v6323_v11 = vld [vmem:[%s8919_s1 + $0x4] ss:$8 sps:$4 sm:$0xff]   ;;  %s6212_s9 = sshll.u32 %s6634_s16, 10 }
  0x1b   : > { %v6325_v12 = vld [vmem:[%s8919_s1] ss:$8 sps:$4 sm:$0xff]   ;;  %v6330_v13 = vld [vmem:[%s8919_s1 + $0xb4] ss:$8 sps:$4 sm:$0xff]   ;;  %v6328_v17 = vld [vmem:[%s8919_s1 + $0xb0] ss:$8 sps:$4 sm:$0xff]  }
  0x1c   : > { %s182_s5 = scalar_lea.vmem %s8918_s0, %s6233_s27  ;;  %v6333_v14 = vld [vmem:[%s8919_s1 + $0x114] ss:$8 sps:$4 sm:$0xff]   ;;  %v6331_v18 = vld [vmem:[%s8919_s1 + $0x110] ss:$8 sps:$4 sm:$0xff]   ;;  %v6346_v19 = vld [vmem:[%s8919_s1 + $0xa4] ss:$8 sps:$4 sm:$0xff]  }
  0x1d   : > { %921 = vmatpush1.bf16.msra.mxu0 %v6313_v4  ;;  %6228 = vmatpush1.bf16.msra.mxu1 %v6313_v4  ;;  %s6769_s8 = scalar_lea.vmem %s182_s5, %s6217_s28  ;;  %v6349_v20 = vld [vmem:[%s8919_s1 + $0x104] ss:$8 sps:$4 sm:$0xff]   ;;  %v6344_v21 = vld [vmem:[%s8919_s1 + $0xa0] ss:$8 sps:$4 sm:$0xff]   ;;  %v6360_v25 = vld [vmem:[%s8919_s1 + $0x90] ss:$8 sps:$4 sm:$0xff]  }
  0x1e   : > { %922 = vmatprep.subr.bf16.mxu0 %v6314_v5  ;;  %6223 = vmatprep.subr.bf16.mxu1 %v6314_v5  ;;  %v6326_v15 = vld [vmem:[%s6769_s8] sm:$0xff]   ;;  %v6334_v23 = vld [vmem:[%s6769_s8 + $0x8] sm:$0xff]   ;;  %v6362_v26 = vld [vmem:[%s8919_s1 + $0x94] ss:$8 sps:$4 sm:$0xff]   ;;  %s175_s5 = sand.u32 1, %s6622_s13   ;;  %s6649_s28 = smov [#allocation2]  }
  0x1f   : > { %v6327_v16 = vld [vmem:[%s6769_s8 + $0x100] sm:$0xff]   ;;  %v6335_v24 = vld [vmem:[%s6769_s8 + $0x108] sm:$0xff]   ;;  %v6336_v27 = vld [vmem:[%s6769_s8 + $0x10] sm:$0xff]   ;;  %s5500_s6 = sshll.u32 %s175_s5, 11  ;;  %s8867_s24 = scalar_lea.sflag [#allocation3], %s175_s5 }
  0x20   : > { %v6347_v22 = vld [vmem:[%s8919_s1 + $0x100] ss:$8 sps:$4 sm:$0xff]   ;;  %v6337_v28 = vld [vmem:[%s6769_s8 + $0x110] sm:$0xff]   ;;  %v6338_v31 = vld [vmem:[%s6769_s8 + $0x18] sm:$0xff]   ;;  %s7735_s7 = scalar_lea.vmem [#allocation2], %s5500_s6  ;;  %s6558_s29 = sshll.u32 %s6649_s28, 4  ;;  %s6559_s29 = int_to_ptr.vmem [resolvable:$false] %s6558_s29 }
  0x21   : > { %923 = vmatpush1.bf16.msra.mxu0 %v6316_v6  ;;  %6229 = vmatpush1.bf16.msra.mxu1 %v6316_v6  ;;  %v6367_v29 = vld [vmem:[%s8919_s1 + $0xf4] ss:$8 sps:$4 sm:$0xff]   ;;  %v6365_v30 = vld [vmem:[%s8919_s1 + $0xf0] ss:$8 sps:$4 sm:$0xff]   ;;  %v6378_v33 = vld [vmem:[%s8919_s1 + $0x80] ss:$8 sps:$4 sm:$0xff]  }
  0x22   : > { %924 = vmatprep.subr.bf16.mxu0 %v6317_v7  ;;  %6224 = vmatprep.subr.bf16.mxu1 %v6317_v7  ;;  %v6339_v32 = vld [vmem:[%s6769_s8 + $0x118] sm:$0xff]   ;;  %v6380_v34 = vld [vmem:[%s8919_s1 + $0x84] ss:$8 sps:$4 sm:$0xff]   ;;  %v6381_v35 = vld [vmem:[%s8919_s1 + $0xe0] ss:$8 sps:$4 sm:$0xff]   ;;  %s5409_s16 = sshll.u32 %s7735_s7, 4  ;;  %s8860_s16 = int_to_ptr.vmem [resolvable:$true] %s5409_s16 }
  0x23   : > { %v6383_v36 = vld [vmem:[%s8919_s1 + $0xe4] ss:$8 sps:$4 sm:$0xff]   ;;  %v6394_v41 = vld [vmem:[%s8919_s1 + $0x70] ss:$8 sps:$4 sm:$0xff]   ;;  %v6396_v42 = vld [vmem:[%s8919_s1 + $0x74] ss:$8 sps:$4 sm:$0xff]   ;;  %p6561_p2 = scmp.lt.s32.totalorder %s8860_s16, %s6559_s29 }
  0x24   : > { %v6340_v37 = vld [vmem:[%s6769_s8 + $0x20] sm:$0xff]   ;;  %v6342_v39 = vld [vmem:[%s6769_s8 + $0x28] sm:$0xff]   ;;  %v6397_v43 = vld [vmem:[%s8919_s1 + $0xd0] ss:$8 sps:$4 sm:$0xff]   ;;  %s6554_s27 = scalar_lea.vmem %s8860_s16, 32768  ;;  %s6560_s4 = scalar_lea.vmem %s6559_s29, 65536 }
  0x25   : > { %925 = vmatpush1.bf16.msra.mxu0 %v6319_v8  ;;  %6230 = vmatpush1.bf16.msra.mxu1 %v6319_v8  ;;  %v6341_v38 = vld [vmem:[%s6769_s8 + $0x120] sm:$0xff]   ;;  %v6343_v40 = vld [vmem:[%s6769_s8 + $0x128] sm:$0xff]   ;;  %v6399_v44 = vld [vmem:[%s8919_s1 + $0xd4] ss:$8 sps:$4 sm:$0xff]   ;;  %p6555_p13 = scmp.ne.s32.totalorder %s8860_s16, %s6554_s27  ;;  %p6562_p4 = scmp.lt.s32.totalorder %s6560_s4, %s6554_s27 }
  0x26   : > { %926 = vmatprep.subr.bf16.mxu0 %v6320_v9  ;;  %6225 = vmatprep.subr.bf16.mxu1 %v6320_v9  ;;  %v6350_v45 = vld [vmem:[%s6769_s8 + $0x30] sm:$0xff]   ;;  %v6352_v47 = vld [vmem:[%s6769_s8 + $0x38] sm:$0xff]   ;;  %v6354_v49 = vld [vmem:[%s6769_s8 + $0x40] sm:$0xff]  }
  0x27   : > { %v6351_v46 = vld [vmem:[%s6769_s8 + $0x130] sm:$0xff]   ;;  %v6353_v48 = vld [vmem:[%s6769_s8 + $0x138] sm:$0xff]   ;;  %v6355_v50 = vld [vmem:[%s6769_s8 + $0x140] sm:$0xff]   ;;  %p6556_p0 = pnand %p6555_p13, %p6723_p3  ;;  %p6563_p5 = por %p6562_p4, %p6561_p2 }
  0x28   : > { %v6356_v51 = vld [vmem:[%s6769_s8 + $0x48] sm:$0xff]   ;;  %v6358_v53 = vld [vmem:[%s6769_s8 + $0x50] sm:$0xff]   ;;  %v6363_v55 = vld [vmem:[%s6769_s8 + $0x58] sm:$0xff]  }
  0x29   : > { %927 = vmatpush1.bf16.msra.mxu0 %v6322_v10  ;;  %6231 = vmatpush1.bf16.msra.mxu1 %v6322_v10  ;;  %v6357_v52 = vld [vmem:[%s6769_s8 + $0x148] sm:$0xff]   ;;  %v6359_v54 = vld [vmem:[%s6769_s8 + $0x150] sm:$0xff]   ;;  %v6364_v56 = vld [vmem:[%s6769_s8 + $0x158] sm:$0xff]   ;;  %p6557_p1 = pneg %p6556_p0 }
  0x2a   : > { %928 = vmatprep.subr.bf16.mxu0 %v6323_v11  ;;  %6226 = vmatprep.subr.bf16.mxu1 %v6323_v11  ;;  %v6410_v57 = vld [vmem:[%s8919_s1 + $0x60] ss:$8 sps:$4 sm:$0xff]   ;;  %v6412_v58 = vld [vmem:[%s8919_s1 + $0x64] ss:$8 sps:$4 sm:$0xff]   ;;  %v6372_v1 = vld [vmem:[%s6769_s8 + $0x70] sm:$0xff]  }
  0x2b   : > { %v6415_v59 = vld [vmem:[%s8919_s1 + $0xc0] ss:$8 sps:$4 sm:$0xff]   ;;  %v6417_v60 = vld [vmem:[%s8919_s1 + $0xc4] ss:$8 sps:$4 sm:$0xff]   ;;  %v6373_v3 = vld [vmem:[%s6769_s8 + $0x170] sm:$0xff]   ;;  %p6564_p6 = pnand %p6563_p5, %p6557_p1 }
  0x2c   : > { %v6368_v61 = vld [vmem:[%s6769_s8 + $0x60] sm:$0xff]   ;;  %v6370_v63 = vld [vmem:[%s6769_s8 + $0x68] sm:$0xff]   ;;  %v6374_v4 = vld [vmem:[%s6769_s8 + $0x78] sm:$0xff]  }
  0x2d   : > { %929 = vmatpush1.bf16.msra.mxu0 %v6325_v12  ;;  %6232 = vmatpush1.bf16.msra.mxu1 %v6325_v12  ;;  %v6369_v62 = vld [vmem:[%s6769_s8 + $0x160] sm:$0xff]   ;;  %v6371_v0 = vld [vmem:[%s6769_s8 + $0x168] sm:$0xff]   ;;  %v6375_v5 = vld [vmem:[%s6769_s8 + $0x178] sm:$0xff]  }
  0x2e   : > { %2564 = vmatprep.subr.bf16.mxu1 %v6330_v13  ;;  %4210 = vmatprep.subr.bf16.mxu0 %v6333_v14  ;;  %v6376_v6 = vld [vmem:[%s6769_s8 + $0x80] sm:$0xff]   ;;  %v6384_v8 = vld [vmem:[%s6769_s8 + $0x88] sm:$0xff]   ;;  %v6386_v10 = vld [vmem:[%s6769_s8 + $0x90] sm:$0xff]  }
  0x2f   : > { %v6377_v7 = vld [vmem:[%s6769_s8 + $0x180] sm:$0xff]   ;;  %v6385_v9 = vld [vmem:[%s6769_s8 + $0x188] sm:$0xff]   ;;  %v6387_v11 = vld [vmem:[%s6769_s8 + $0x190] sm:$0xff]  }
  0x30   : > { %5581 = vmatmul.mubr.msk.bf16.vlgmr.msra.gmra.mxu0 %vm721_vm0, %v6326_v15  ;;  %5613 = vmatmul.mubr.msk.bf16.vlgmr.msra.gmra.mxu1 %vm721_vm0, %v6327_v16  ;;  %v6388_v12 = vld [vmem:[%s6769_s8 + $0x98] sm:$0xff]   ;;  %v6390_v14 = vld [vmem:[%s6769_s8 + $0xa0] sm:$0xff]   ;;  %v6392_v16 = vld [vmem:[%s6769_s8 + $0xa8] sm:$0xff]  }
  0x31   : > { %2565 = vmatpush1.bf16.msra.mxu1 %v6328_v17  ;;  %4211 = vmatpush1.bf16.msra.mxu0 %v6331_v18  ;;  %v6389_v13 = vld [vmem:[%s6769_s8 + $0x198] sm:$0xff]   ;;  %v6391_v15 = vld [vmem:[%s6769_s8 + $0x1a0] sm:$0xff]   ;;  %v6393_v17 = vld [vmem:[%s6769_s8 + $0x1a8] sm:$0xff]  }
  0x32   : > { %956 = vmatprep.mubr.bf16.mxu0 %v8922_v2  ;;  %1276 = vmatprep.mubr.bf16.mxu1 %v8922_v2  ;;  %v6400_v18 = vld [vmem:[%s6769_s8 + $0xb0] sm:$0xff]  }
  0x33   : > { %2566 = vmatprep.subr.bf16.mxu1 %v6346_v19  ;;  %4212 = vmatprep.subr.bf16.mxu0 %v6349_v20  ;;  %v6401_v19 = vld [vmem:[%s6769_s8 + $0x1b0] sm:$0xff]   ;;  %v6402_v20 = vld [vmem:[%s6769_s8 + $0xb8] sm:$0xff]  }
  0x35   : > { %2567 = vmatpush1.bf16.msra.mxu1 %v6344_v21  ;;  %4213 = vmatpush1.bf16.msra.mxu0 %v6347_v22  ;;  %v6403_v21 = vld [vmem:[%s6769_s8 + $0x1b8] sm:$0xff]   ;;  %v6404_v22 = vld [vmem:[%s6769_s8 + $0xc0] sm:$0xff]  }
  0x36   : > { %2568 = vmatprep.subr.bf16.mxu1 %v6362_v26  ;;  %4214 = vmatprep.subr.bf16.mxu0 %v6367_v29 }
  0x38   : > { %5582 = vmatmul.mubr.msk.bf16.gmra.mxu0 %vm721_vm0, %v6334_v23  ;;  %5614 = vmatmul.mubr.msk.bf16.gmra.mxu1 %vm721_vm0, %v6335_v24  ;;  %v6405_v23 = vld [vmem:[%s6769_s8 + $0x1c0] sm:$0xff]  }
  0x39   : > { %966 = vmatprep.mubr.bf16.mxu0 %v8922_v2  ;;  %1286 = vmatprep.mubr.bf16.mxu1 %v8922_v2 }
  0x3a   : > { %2569 = vmatpush1.bf16.msra.mxu1 %v6360_v25  ;;  %4215 = vmatpush1.bf16.msra.mxu0 %v6365_v30  ;;  %v6406_v30 = vld [vmem:[%s6769_s8 + $0xc8] sm:$0xff]  }
  0x3b   : > { %2570 = vmatprep.subr.bf16.mxu1 %v6380_v34  ;;  %4216 = vmatprep.subr.bf16.mxu0 %v6383_v36 }
  0x3e   : > { %2571 = vmatpush1.bf16.msra.mxu1 %v6378_v33  ;;  %4217 = vmatpush1.bf16.msra.mxu0 %v6381_v35 }
  0x3f   : > { %2572 = vmatprep.subr.bf16.mxu1 %v6396_v42  ;;  %4218 = vmatprep.subr.bf16.mxu0 %v6399_v44 }
  0x40   : > { %5583 = vmatmul.mubr.msk.bf16.gmra.mxu0 %vm721_vm0, %v6336_v27  ;;  %5615 = vmatmul.mubr.msk.bf16.gmra.mxu1 %vm721_vm0, %v6337_v28 }
  0x41   : > { %976 = vmatprep.mubr.bf16.mxu0 %v8922_v2  ;;  %1296 = vmatprep.mubr.bf16.mxu1 %v8922_v2 }
  0x42   : > { %2573 = vmatpush1.bf16.msra.mxu1 %v6394_v41  ;;  %4219 = vmatpush1.bf16.msra.mxu0 %v6397_v43  ;;  %v6409_v41 = vld [vmem:[%s6769_s8 + $0x1d0] sm:$0xff]  }
  0x43   : > { %2574 = vmatprep.subr.bf16.mxu1 %v6412_v58  ;;  %4220 = vmatprep.subr.bf16.mxu0 %v6417_v60  ;;  %v6418_v60 = vld [vmem:[%s6769_s8 + $0xe0] sm:$0xff]  }
  0x46   : > { %2575 = vmatpush1.bf16.msra.mxu1 %v6410_v57  ;;  %4221 = vmatpush1.bf16.msra.mxu0 %v6415_v59 }
  0x48   : > { %5584 = vmatmul.mubr.msk.bf16.gmra.mxu0 %vm721_vm0, %v6338_v31  ;;  %5616 = vmatmul.mubr.msk.bf16.gmra.mxu1 %vm721_vm0, %v6339_v32  ;;  %v6407_v31 = vld [vmem:[%s6769_s8 + $0x1c8] sm:$0xff]  }
  0x49   : > { %986 = vmatprep.mubr.bf16.mxu0 %v8922_v2  ;;  %1306 = vmatprep.mubr.bf16.mxu1 %v8922_v2 }
  0x50   : > { %5585 = vmatmul.mubr.msk.bf16.gmra.mxu0 %vm721_vm0, %v6340_v37  ;;  %5617 = vmatmul.mubr.msk.bf16.gmra.mxu1 %vm721_vm0, %v6341_v38 }
  0x51   : > { %996 = vmatprep.mubr.bf16.mxu0 %v8922_v2  ;;  %1316 = vmatprep.mubr.bf16.mxu1 %v8922_v2 }
  0x58   : > { %5586 = vmatmul.mubr.msk.bf16.gmra.mxu0 %vm721_vm0, %v6342_v39  ;;  %5618 = vmatmul.mubr.msk.bf16.gmra.mxu1 %vm721_vm0, %v6343_v40  ;;  %v6408_v40 = vld [vmem:[%s6769_s8 + $0xd0] sm:$0xff]  }
  0x59   : > { %1006 = vmatprep.mubr.bf16.mxu0 %v8922_v2  ;;  %1326 = vmatprep.mubr.bf16.mxu1 %v8922_v2 }
  0x60   : > { %5587 = vmatmul.mubr.msk.bf16.gmra.mxu0 %vm721_vm0, %v6350_v45  ;;  %5619 = vmatmul.mubr.msk.bf16.gmra.mxu1 %vm721_vm0, %v6351_v46 }
  0x61   : > { %1016 = vmatprep.mubr.bf16.mxu0 %v8922_v2  ;;  %1336 = vmatprep.mubr.bf16.mxu1 %v8922_v2 }
  0x68   : > { %5588 = vmatmul.mubr.msk.bf16.gmra.mxu0 %vm721_vm0, %v6352_v47  ;;  %5620 = vmatmul.mubr.msk.bf16.gmra.mxu1 %vm721_vm0, %v6353_v48 }
  0x69   : > { %1026 = vmatprep.mubr.bf16.mxu0 %v8922_v2  ;;  %1346 = vmatprep.mubr.bf16.mxu1 %v8922_v2 }
  0x70   : > { %5589 = vmatmul.mubr.msk.bf16.gmra.mxu0 %vm721_vm0, %v6354_v49  ;;  %5621 = vmatmul.mubr.msk.bf16.gmra.mxu1 %vm721_vm0, %v6355_v50  ;;  %v6413_v50 = vld [vmem:[%s6769_s8 + $0xd8] sm:$0xff]  }
  0x71   : > { %1036 = vmatprep.mubr.bf16.mxu0 %v8922_v2  ;;  %1356 = vmatprep.mubr.bf16.mxu1 %v8922_v2 }
  0x78   : > { %5590 = vmatmul.mubr.msk.bf16.gmra.mxu0 %vm721_vm0, %v6356_v51  ;;  %5622 = vmatmul.mubr.msk.bf16.gmra.mxu1 %vm721_vm0, %v6357_v52  ;;  %v6414_v51 = vld [vmem:[%s6769_s8 + $0x1d8] sm:$0xff]  }
  0x79   : > { %1046 = vmatprep.mubr.bf16.mxu0 %v8922_v2  ;;  %1366 = vmatprep.mubr.bf16.mxu1 %v8922_v2 }
  0x80   : > { %5591 = vmatmul.mubr.msk.bf16.gmra.mxu0 %vm721_vm0, %v6358_v53  ;;  %5623 = vmatmul.mubr.msk.bf16.gmra.mxu1 %vm721_vm0, %v6359_v54 }
  0x81   : > { %1056 = vmatprep.mubr.bf16.mxu0 %v8922_v2  ;;  %1376 = vmatprep.mubr.bf16.mxu1 %v8922_v2 }
  0x88   : > { %5592 = vmatmul.mubr.msk.bf16.gmra.mxu0 %vm721_vm0, %v6363_v55  ;;  %5624 = vmatmul.mubr.msk.bf16.gmra.mxu1 %vm721_vm0, %v6364_v56 }
  0x89   : > { %1066 = vmatprep.mubr.bf16.mxu0 %v8922_v2  ;;  %1386 = vmatprep.mubr.bf16.mxu1 %v8922_v2 }
  0x90   : > { %5593 = vmatmul.mubr.msk.bf16.gmra.mxu0 %vm721_vm0, %v6368_v61  ;;  %5625 = vmatmul.mubr.msk.bf16.gmra.mxu1 %vm721_vm0, %v6369_v62  ;;  %v6419_v61 = vld [vmem:[%s6769_s8 + $0x1e0] sm:$0xff]  }
  0x91   : > { %1076 = vmatprep.mubr.bf16.mxu0 %v8922_v2  ;;  %1396 = vmatprep.mubr.bf16.mxu1 %v8922_v2 }
  0x98   : > { %5594 = vmatmul.mubr.msk.bf16.gmra.mxu0 %vm721_vm0, %v6370_v63  ;;  %5626 = vmatmul.mubr.msk.bf16.gmra.mxu1 %vm721_vm0, %v6371_v0 }
  0x99   : > { %1086 = vmatprep.mubr.bf16.mxu0 %v8922_v2  ;;  %1406 = vmatprep.mubr.bf16.mxu1 %v8922_v2 }
  0xa0   : > { %5595 = vmatmul.mubr.msk.bf16.gmra.mxu0 %vm721_vm0, %v6372_v1  ;;  %5627 = vmatmul.mubr.msk.bf16.gmra.mxu1 %vm721_vm0, %v6373_v3 }
  0xa1   : > { %1096 = vmatprep.mubr.bf16.mxu0 %v8922_v2  ;;  %1416 = vmatprep.mubr.bf16.mxu1 %v8922_v2 }
  0xa8   : > { %5596 = vmatmul.mubr.msk.bf16.gmra.mxu0 %vm721_vm0, %v6374_v4  ;;  %5628 = vmatmul.mubr.msk.bf16.gmra.mxu1 %vm721_vm0, %v6375_v5 }
  0xa9   : > { %1106 = vmatprep.mubr.bf16.mxu0 %v8922_v2  ;;  %1426 = vmatprep.mubr.bf16.mxu1 %v8922_v2 }
  0xb0   : > { %5597 = vmatmul.mubr.msk.bf16.gmra.mxu0 %vm721_vm0, %v6376_v6  ;;  %5629 = vmatmul.mubr.msk.bf16.gmra.mxu1 %vm721_vm0, %v6377_v7  ;;  %v6420_v7 = vld [vmem:[%s6769_s8 + $0xe8] sm:$0xff]  }
  0xb1   : > { %1116 = vmatprep.mubr.bf16.mxu0 %v8922_v2  ;;  %1436 = vmatprep.mubr.bf16.mxu1 %v8922_v2 }
  0xb8   : > { %5598 = vmatmul.mubr.msk.bf16.gmra.mxu0 %vm721_vm0, %v6384_v8  ;;  %5630 = vmatmul.mubr.msk.bf16.gmra.mxu1 %vm721_vm0, %v6385_v9  ;;  %v6421_v8 = vld [vmem:[%s6769_s8 + $0x1e8] sm:$0xff]  }
  0xb9   : > { %1126 = vmatprep.mubr.bf16.mxu0 %v8922_v2  ;;  %1446 = vmatprep.mubr.bf16.mxu1 %v8922_v2 }
  0xc0   : > { %5599 = vmatmul.mubr.msk.bf16.gmra.mxu0 %vm721_vm0, %v6386_v10  ;;  %5631 = vmatmul.mubr.msk.bf16.gmra.mxu1 %vm721_vm0, %v6387_v11 }
  0xc1   : > { %1136 = vmatprep.mubr.bf16.mxu0 %v8922_v2  ;;  %1456 = vmatprep.mubr.bf16.mxu1 %v8922_v2 }
  0xc8   : > { %5600 = vmatmul.mubr.msk.bf16.gmra.mxu0 %vm721_vm0, %v6388_v12  ;;  %5632 = vmatmul.mubr.msk.bf16.gmra.mxu1 %vm721_vm0, %v6389_v13 }
  0xc9   : > { %1146 = vmatprep.mubr.bf16.mxu0 %v8922_v2  ;;  %1466 = vmatprep.mubr.bf16.mxu1 %v8922_v2 }
  0xd0   : > { %5601 = vmatmul.mubr.msk.bf16.gmra.mxu0 %vm721_vm0, %v6390_v14  ;;  %5633 = vmatmul.mubr.msk.bf16.gmra.mxu1 %vm721_vm0, %v6391_v15 }
  0xd1   : > { %1156 = vmatprep.mubr.bf16.mxu0 %v8922_v2  ;;  %1476 = vmatprep.mubr.bf16.mxu1 %v8922_v2 }
  0xd8   : > { %5602 = vmatmul.mubr.msk.bf16.gmra.mxu0 %vm721_vm0, %v6392_v16  ;;  %5634 = vmatmul.mubr.msk.bf16.gmra.mxu1 %vm721_vm0, %v6393_v17  ;;  %v6422_v17 = vld [vmem:[%s6769_s8 + $0xf0] sm:$0xff]  }
  0xd9   : > { %1166 = vmatprep.mubr.bf16.mxu0 %v8922_v2  ;;  %1486 = vmatprep.mubr.bf16.mxu1 %v8922_v2 }
  0xe0   : > { %5603 = vmatmul.mubr.msk.bf16.gmra.mxu0 %vm721_vm0, %v6400_v18  ;;  %5635 = vmatmul.mubr.msk.bf16.gmra.mxu1 %vm721_vm0, %v6401_v19  ;;  %v6423_v18 = vld [vmem:[%s6769_s8 + $0x1f0] sm:$0xff]  }
  0xe1   : > { %1176 = vmatprep.mubr.bf16.mxu0 %v8922_v2  ;;  %1496 = vmatprep.mubr.bf16.mxu1 %v8922_v2 }
  0xe8   : > { %5604 = vmatmul.mubr.msk.bf16.gmra.mxu0 %vm721_vm0, %v6402_v20  ;;  %5636 = vmatmul.mubr.msk.bf16.gmra.mxu1 %vm721_vm0, %v6403_v21 }
  0xe9   : > { %1186 = vmatprep.mubr.bf16.mxu0 %v8922_v2  ;;  %1506 = vmatprep.mubr.bf16.mxu1 %v8922_v2 }
  0xf0   : > { %v7007_v24 = vpop.f32.mrf.mxu0  ;;  %5605 = vmatmul.mubr.msk.bf16.gmra.mxu0 %vm721_vm0, %v6404_v22  ;;  %v7010_v25 = vpop.f32.mrf.mxu1  ;;  %5637 = vmatmul.mubr.msk.bf16.gmra.mxu1 %vm721_vm0, %v6405_v23 }
  0xf1   : > { %8926 = vst [vmem:[#allocation5_spill] sm:$0xff] %v7010_v25  ;;  %1196 = vmatprep.mubr.bf16.mxu0 %v8922_v2  ;;  %1516 = vmatprep.mubr.bf16.mxu1 %v8922_v2 }
  0xf2   : > { %v7015_v26 = vpop.f32.mrf.mxu0  ;;  %v7017_v27 = vpop.f32.mrf.mxu1 }
  0xf3   : > { %8927 = vst [vmem:[#allocation6_spill] sm:$0xff] %v7017_v27 }
  0xf4   : > { %v7019_v28 = vpop.f32.mrf.mxu0  ;;  %v7021_v29 = vpop.f32.mrf.mxu1 }
  0xf5   : > { %8928 = vst [vmem:[#allocation7_spill] sm:$0xff] %v7021_v29  ;;  %v6438_v29 = vld [vmem:[%s6769_s8 + $0x50] sm:$0xff]  }
  0xf6   : > { %v7025_v32 = vpop.f32.mrf.mxu0  ;;  %v7027_v33 = vpop.f32.mrf.mxu1 }
  0xf7   : > { %8929 = vst [vmem:[#allocation8_spill] sm:$0xff] %v7027_v33 }
  0xf8   : > { %v7029_v34 = vpop.f32.mrf.mxu0  ;;  %5606 = vmatmul.mubr.msk.bf16.gmra.mxu0 %vm721_vm0, %v6406_v30  ;;  %v7032_v35 = vpop.f32.mrf.mxu1  ;;  %5638 = vmatmul.mubr.msk.bf16.gmra.mxu1 %vm721_vm0, %v6407_v31 }
  0xf9   : > { %8930 = vst [vmem:[#allocation9_spill] sm:$0xff] %v7032_v35  ;;  %1206 = vmatprep.mubr.bf16.mxu0 %v8922_v2  ;;  %1526 = vmatprep.mubr.bf16.mxu1 %v8922_v2 }
  0xfa   : > { %v7037_v36 = vpop.f32.mrf.mxu0  ;;  %v7039_v37 = vpop.f32.mrf.mxu1 }
  0xfb   : > { %8931 = vst [vmem:[#allocation10_spill] sm:$0xff] %v7039_v37 }
  0xfc   : > { %v7041_v38 = vpop.f32.mrf.mxu0  ;;  %v7043_v39 = vpop.f32.mrf.mxu1 }
  0xfd   : > { %8932 = vst [vmem:[#allocation11_spill] sm:$0xff] %v7043_v39  ;;  %v6436_v39 = vld [vmem:[%s6769_s8 + $0x48] sm:$0xff]  }
  0xfe   : > { %v7047_v42 = vpop.f32.mrf.mxu0  ;;  %v7049_v43 = vpop.f32.mrf.mxu1 }
  0xff   : > { %8933 = vst [vmem:[#allocation12_spill] sm:$0xff] %v7049_v43 }
 0x100   : > { %v7051_v44 = vpop.f32.mrf.mxu0  ;;  %5607 = vmatmul.mubr.msk.bf16.gmra.mxu0 %vm721_vm0, %v6408_v40  ;;  %v7054_v45 = vpop.f32.mrf.mxu1  ;;  %5639 = vmatmul.mubr.msk.bf16.gmra.mxu1 %vm721_vm0, %v6409_v41  ;;  %v6424_v41 = vld [vmem:[%s6769_s8 + $0xf8] sm:$0xff]  }
 0x101   : > { %8934 = vst [vmem:[#allocation13_spill] sm:$0xff] %v7054_v45  ;;  %1216 = vmatprep.mubr.bf16.mxu0 %v8922_v2  ;;  %1536 = vmatprep.mubr.bf16.mxu1 %v8922_v2 }
 0x102   : > { %v7059_v46 = vpop.f32.mrf.mxu0  ;;  %v7061_v47 = vpop.f32.mrf.mxu1 }
 0x103   : > { %8935 = vst [vmem:[#allocation14_spill] sm:$0xff] %v7061_v47 }
 0x104   : > { %v7063_v48 = vpop.f32.mrf.mxu0  ;;  %v7065_v49 = vpop.f32.mrf.mxu1 }
 0x105   : > { %8936 = vst [vmem:[#allocation15_spill] sm:$0xff] %v7065_v49  ;;  %v6434_v49 = vld [vmem:[%s6769_s8 + $0x40] sm:$0xff]  }
 0x106   : > { %v7069_v52 = vpop.f32.mrf.mxu0  ;;  %v7071_v53 = vpop.f32.mrf.mxu1 }
 0x107   : > { %8937 = vst [vmem:[#allocation16_spill] sm:$0xff] %v7071_v53 }
 0x108   : > { %v7073_v54 = vpop.f32.mrf.mxu0  ;;  %5608 = vmatmul.mubr.msk.bf16.gmra.mxu0 %vm721_vm0, %v6413_v50  ;;  %v7076_v55 = vpop.f32.mrf.mxu1  ;;  %5640 = vmatmul.mubr.msk.bf16.gmra.mxu1 %vm721_vm0, %v6414_v51  ;;  %v6425_v50 = vld [vmem:[%s6769_s8 + $0x1f8] sm:$0xff]  }
 0x109   : > { %8938 = vst [vmem:[#allocation17_spill] sm:$0xff] %v7076_v55  ;;  %1226 = vmatprep.mubr.bf16.mxu0 %v8922_v2  ;;  %1546 = vmatprep.mubr.bf16.mxu1 %v8922_v2 }
 0x10a   : > { %v7081_v56 = vpop.f32.mrf.mxu0  ;;  %v7083_v57 = vpop.f32.mrf.mxu1 }
 0x10b   : > { %8939 = vst [vmem:[#allocation18_spill] sm:$0xff] %v7083_v57 }
 0x10c   : > { %v7085_v58 = vpop.f32.mrf.mxu0  ;;  %v7087_v59 = vpop.f32.mrf.mxu1 }
 0x10d   : > { %8940 = vst [vmem:[#allocation19_spill] sm:$0xff] %v7087_v59  ;;  %v6432_v59 = vld [vmem:[%s6769_s8 + $0x38] sm:$0xff]  }
 0x10e   : > { %v7091_v62 = vpop.f32.mrf.mxu0  ;;  %v7093_v63 = vpop.f32.mrf.mxu1 }
 0x10f   : > { %8941 = vst [vmem:[#allocation20_spill] sm:$0xff] %v7093_v63 }
 0x110   : > { %v7095_v0 = vpop.f32.mrf.mxu0  ;;  %5609 = vmatmul.mubr.msk.bf16.gmra.mxu0 %vm721_vm0, %v6418_v60  ;;  %v7098_v1 = vpop.f32.mrf.mxu1  ;;  %5641 = vmatmul.mubr.msk.bf16.gmra.mxu1 %vm721_vm0, %v6419_v61 }
 0x111   : > { %8942 = vst [vmem:[#allocation21_spill] sm:$0xff] %v7098_v1  ;;  %1236 = vmatprep.mubr.bf16.mxu0 %v8922_v2  ;;  %1556 = vmatprep.mubr.bf16.mxu1 %v8922_v2 }
 0x112   : > { %v7103_v3 = vpop.f32.mrf.mxu0  ;;  %v7105_v4 = vpop.f32.mrf.mxu1 }
 0x113   : > { %8943 = vst [vmem:[#allocation22_spill] sm:$0xff] %v7105_v4 }
 0x114   : > { %v7107_v5 = vpop.f32.mrf.mxu0  ;;  %v7109_v6 = vpop.f32.mrf.mxu1 }
 0x115   : > { %8944 = vst [vmem:[#allocation23_spill] sm:$0xff] %v7109_v6  ;;  %v6430_v6 = vld [vmem:[%s6769_s8 + $0x30] sm:$0xff]  }
 0x116   : > { %v7113_v9 = vpop.f32.mrf.mxu0  ;;  %v7115_v10 = vpop.f32.mrf.mxu1 }
 0x117   : > { %8945 = vst [vmem:[#allocation24_spill] sm:$0xff] %v7115_v10 }
 0x118   : > { %v7117_v11 = vpop.f32.mrf.mxu0  ;;  %5610 = vmatmul.mubr.msk.bf16.gmra.mxu0 %vm721_vm0, %v6420_v7  ;;  %v7120_v12 = vpop.f32.mrf.mxu1  ;;  %5642 = vmatmul.mubr.msk.bf16.gmra.mxu1 %vm721_vm0, %v6421_v8 }
 0x119   : > { %8946 = vst [vmem:[#allocation25_spill] sm:$0xff] %v7120_v12  ;;  %1246 = vmatprep.mubr.bf16.mxu0 %v8922_v2  ;;  %1566 = vmatprep.mubr.bf16.mxu1 %v8922_v2 }
 0x11a   : > { %v7125_v13 = vpop.f32.mrf.mxu0  ;;  %v7127_v14 = vpop.f32.mrf.mxu1 }
 0x11b   : > { %8947 = vst [vmem:[#allocation26_spill] sm:$0xff] %v7127_v14 }
 0x11c   : > { %v7129_v15 = vpop.f32.mrf.mxu0  ;;  %v7131_v16 = vpop.f32.mrf.mxu1 }
 0x11d   : > { %8948 = vst [vmem:[#allocation27_spill] sm:$0xff] %v7131_v16  ;;  %v6428_v16 = vld [vmem:[%s6769_s8 + $0x28] sm:$0xff]  }
 0x11e   : > { %v7135_v19 = vpop.f32.mrf.mxu0  ;;  %v7137_v20 = vpop.f32.mrf.mxu1 }
 0x11f   : > { %8949 = vst [vmem:[#allocation28_spill] sm:$0xff] %v7137_v20 }
 0x120   : > { %v7139_v21 = vpop.f32.mrf.mxu0  ;;  %5611 = vmatmul.mubr.msk.bf16.gmra.mxu0 %vm721_vm0, %v6422_v17  ;;  %v7142_v22 = vpop.f32.mrf.mxu1  ;;  %5643 = vmatmul.mubr.msk.bf16.gmra.mxu1 %vm721_vm0, %v6423_v18 }
 0x121   : > { %8950 = vst [vmem:[#allocation29_spill] sm:$0xff] %v7142_v22  ;;  %1256 = vmatprep.mubr.bf16.mxu0 %v8922_v2  ;;  %1576 = vmatprep.mubr.bf16.mxu1 %v8922_v2 }
 0x122   : > { %v7147_v23 = vpop.f32.mrf.mxu0  ;;  %v7149_v30 = vpop.f32.mrf.mxu1 }
 0x123   : > { %8951 = vst [vmem:[#allocation30_spill] sm:$0xff] %v7149_v30 }
 0x124   : > { %v7151_v31 = vpop.f32.mrf.mxu0  ;;  %v7153_v40 = vpop.f32.mrf.mxu1 }
 0x125   : > { %8952 = vst [vmem:[#allocation31_spill] sm:$0xff] %v7153_v40  ;;  %v6426_v40 = vld [vmem:[%s6769_s8 + $0x20] sm:$0xff]  }
 0x126   : > { %v7157_v51 = vpop.f32.mrf.mxu0  ;;  %v7159_v60 = vpop.f32.mrf.mxu1 }
 0x127   : > { %8953 = vst [vmem:[#allocation32_spill] sm:$0xff] %v7159_v60 }
 0x128   : > { %v7161_v61 = vpop.f32.mrf.mxu0  ;;  %5612 = vmatmul.mubr.msk.bf16.gmra.mxu0 %vm721_vm0, %v6424_v41  ;;  %v7164_v7 = vpop.f32.mrf.mxu1  ;;  %5644 = vmatmul.mubr.msk.bf16.gmra.mxu1 %vm721_vm0, %v6425_v50  ;;  %v6427_v41 = vld [vmem:[%s6769_s8 + $0x40] sm:$0xff]  }
 0x129   : > { %8954 = vst [vmem:[#allocation33_spill] sm:$0xff] %v7164_v7  ;;  %2592 = vmatprep.mubr.bf16.mxu1 %v8922_v2  ;;  %4238 = vmatprep.mubr.bf16.mxu0 %v8922_v2 }
 0x12a   : > { %v7169_v8 = vpop.f32.mrf.mxu0  ;;  %v7171_v17 = vpop.f32.mrf.mxu1 }
 0x12b   : > { %8955 = vst [vmem:[#allocation34_spill] sm:$0xff] %v7171_v17 }
 0x12c   : > { %v7173_v18 = vpop.f32.mrf.mxu0  ;;  %v7175_v60 = vpop.f32.mrf.mxu1 }
 0x12d   : > { %8956 = vst [vmem:[#allocation35_spill] sm:$0xff] %v7175_v60 }
 0x12e   : > { %v7179_v30 = vpop.f32.mrf.mxu0  ;;  %v7181_v7 = vpop.f32.mrf.mxu1 }
 0x12f   : > { %8957 = vst [vmem:[#allocation36_spill] sm:$0xff] %v7181_v7 }
 0x130   : > { %v7183_v50 = vpop.f32.mrf.mxu0  ;;  %v7185_v22 = vpop.f32.mrf.mxu1  ;;  %5863 = vmatmul.mubr.msk.bf16.vlgmr.msra.gmra.mxu1 %vm721_vm0, %v6426_v40  ;;  %6145 = vmatmul.mubr.msk.bf16.vlgmr.msra.gmra.mxu0 %vm721_vm0, %v6427_v41 }
 0x131   : > { %8958 = vst [vmem:[#allocation37_spill] sm:$0xff] %v7185_v22  ;;  %2602 = vmatprep.mubr.bf16.mxu1 %v8922_v2  ;;  %4248 = vmatprep.mubr.bf16.mxu0 %v8922_v2  ;;  %v6429_v22 = vld [vmem:[%s6769_s8 + $0x48] sm:$0xff]  }
 0x132   : > { %v7191_v60 = vpop.f32.mrf.mxu0  ;;  %v7193_v17 = vpop.f32.mrf.mxu1 }
 0x133   : > { %8959 = vst [vmem:[#allocation38_spill] sm:$0xff] %v7193_v17 }
 0x134   : > { %v7195_v20 = vpop.f32.mrf.mxu0  ;;  %v7197_v7 = vpop.f32.mrf.mxu1 }
 0x135   : > { %8960 = vst [vmem:[#allocation39_spill] sm:$0xff] %v7197_v7 }
 0x136   : > { %v7201_v14 = vpop.f32.mrf.mxu0  ;;  %v7203_v40 = vpop.f32.mrf.mxu1 }
 0x137   : > { %8961 = vst [vmem:[#allocation40_spill] sm:$0xff] %v7203_v40 }
 0x138   : > { %v7205_v41 = vpop.f32.mrf.mxu0  ;;  %v7207_v12 = vpop.f32.mrf.mxu1  ;;  %5864 = vmatmul.mubr.msk.bf16.gmra.mxu1 %vm721_vm0, %v6428_v16  ;;  %6146 = vmatmul.mubr.msk.bf16.gmra.mxu0 %vm721_vm0, %v6429_v22 }
 0x139   : > { %8962 = vst [vmem:[#allocation41_spill] sm:$0xff] %v7207_v12  ;;  %2612 = vmatprep.mubr.bf16.mxu1 %v8922_v2  ;;  %4258 = vmatprep.mubr.bf16.mxu0 %v8922_v2  ;;  %v6431_v12 = vld [vmem:[%s6769_s8 + $0x50] sm:$0xff]  }
 0x13a   : > { %v7213_v7 = vpop.f32.mrf.mxu0  ;;  %v7215_v17 = vpop.f32.mrf.mxu1 }
 0x13b   : > { %8963 = vst [vmem:[#allocation42_spill] sm:$0xff] %v7215_v17 }
 0x13c   : > { %v7217_v10 = vpop.f32.mrf.mxu0  ;;  %v7219_v40 = vpop.f32.mrf.mxu1 }
 0x13d   : > { %8964 = vst [vmem:[#allocation43_spill] sm:$0xff] %v7219_v40 }
 0x13e   : > { %v7223_v4 = vpop.f32.mrf.mxu0  ;;  %v7225_v16 = vpop.f32.mrf.mxu1 }
 0x13f   : > { %8965 = vst [vmem:[#allocation44_spill] sm:$0xff] %v7225_v16 }
 0x140   : > { %v7227_v22 = vpop.f32.mrf.mxu0  ;;  %v7229_v1 = vpop.f32.mrf.mxu1  ;;  %5865 = vmatmul.mubr.msk.bf16.gmra.mxu1 %vm721_vm0, %v6430_v6  ;;  %6147 = vmatmul.mubr.msk.bf16.gmra.mxu0 %vm721_vm0, %v6431_v12 }
 0x141   : > { %8966 = vst [vmem:[#allocation45_spill] sm:$0xff] %v7229_v1  ;;  %2622 = vmatprep.mubr.bf16.mxu1 %v8922_v2  ;;  %4268 = vmatprep.mubr.bf16.mxu0 %v8922_v2  ;;  %v6433_v1 = vld [vmem:[%s6769_s8 + $0x58] sm:$0xff]  }
 0x142   : > { %v7235_v40 = vpop.f32.mrf.mxu0  ;;  %v7237_v17 = vpop.f32.mrf.mxu1 }
 0x143   : > { %8967 = vst [vmem:[#allocation46_spill] sm:$0xff] %v7237_v17 }
 0x144   : > { %v7239_v63 = vpop.f32.mrf.mxu0  ;;  %v7241_v16 = vpop.f32.mrf.mxu1 }
 0x145   : > { %8968 = vst [vmem:[#allocation47_spill] sm:$0xff] %v7241_v16 }
 0x146   : > { %v7245_v57 = vpop.f32.mrf.mxu0  ;;  %v7247_v6 = vpop.f32.mrf.mxu1 }
 0x147   : > { %8969 = vst [vmem:[#allocation48_spill] sm:$0xff] %v7247_v6 }
 0x148   : > { %v7249_v12 = vpop.f32.mrf.mxu0  ;;  %v7251_v55 = vpop.f32.mrf.mxu1  ;;  %5866 = vmatmul.mubr.msk.bf16.gmra.mxu1 %vm721_vm0, %v6432_v59  ;;  %6148 = vmatmul.mubr.msk.bf16.gmra.mxu0 %vm721_vm0, %v6433_v1 }
 0x149   : > { %8970 = vst [vmem:[#allocation49_spill] sm:$0xff] %v7251_v55  ;;  %2632 = vmatprep.mubr.bf16.mxu1 %v8922_v2  ;;  %4278 = vmatprep.mubr.bf16.mxu0 %v8922_v2  ;;  %v6435_v55 = vld [vmem:[%s6769_s8 + $0x60] sm:$0xff]  }
 0x14a   : > { %v7257_v16 = vpop.f32.mrf.mxu0  ;;  %v7259_v17 = vpop.f32.mrf.mxu1 }
 0x14b   : > { %8971 = vst [vmem:[#allocation50_spill] sm:$0xff] %v7259_v17 }
 0x14c   : > { %v7261_v53 = vpop.f32.mrf.mxu0  ;;  %v7263_v6 = vpop.f32.mrf.mxu1 }
 0x14d   : > { %8972 = vst [vmem:[#allocation51_spill] sm:$0xff] %v7263_v6 }
 0x14e   : > { %v7267_v47 = vpop.f32.mrf.mxu0  ;;  %v7269_v59 = vpop.f32.mrf.mxu1 }
 0x14f   : > { %8973 = vst [vmem:[#allocation52_spill] sm:$0xff] %v7267_v47  ;;  %8974 = vst [vmem:[#allocation53_spill] sm:$0xff] %v7269_v59 }
 0x150   : > { %v7271_v1 = vpop.f32.mrf.mxu0  ;;  %v7273_v45 = vpop.f32.mrf.mxu1  ;;  %5867 = vmatmul.mubr.msk.bf16.gmra.mxu1 %vm721_vm0, %v6434_v49  ;;  %6149 = vmatmul.mubr.msk.bf16.gmra.mxu0 %vm721_vm0, %v6435_v55 }
 0x151   : > { %8975 = vst [vmem:[#allocation54_spill] sm:$0xff] %v7271_v1  ;;  %8976 = vst [vmem:[#allocation55_spill] sm:$0xff] %v7273_v45  ;;  %2642 = vmatprep.mubr.bf16.mxu1 %v8922_v2  ;;  %4288 = vmatprep.mubr.bf16.mxu0 %v8922_v2  ;;  %v6437_v45 = vld [vmem:[%s6769_s8 + $0x68] sm:$0xff]  }
 0x152   : > { %v7279_v6 = vpop.f32.mrf.mxu0  ;;  %v7281_v17 = vpop.f32.mrf.mxu1  ;;  %v6476_v1 = vld [vmem:[%s6769_s8 + $0xe8] sm:$0xff]  }
 0x153   : > { %8977 = vst [vmem:[#allocation56_spill] sm:$0xff] %v7279_v6  ;;  %8978 = vst [vmem:[#allocation57_spill] sm:$0xff] %v7281_v17 }
 0x154   : > { %v7283_v43 = vpop.f32.mrf.mxu0  ;;  %v7285_v59 = vpop.f32.mrf.mxu1 }
 0x155   : > { %8979 = vst [vmem:[#allocation58_spill] sm:$0xff] %v7283_v43  ;;  %8980 = vst [vmem:[#allocation59_spill] sm:$0xff] %v7285_v59 }
 0x156   : > { %v7289_v37 = vpop.f32.mrf.mxu0  ;;  %v7291_v49 = vpop.f32.mrf.mxu1 }
 0x157   : > { %8981 = vst [vmem:[#allocation60_spill] sm:$0xff] %v7289_v37  ;;  %8982 = vst [vmem:[#allocation61_spill] sm:$0xff] %v7291_v49 }
 0x158   : > { %v7293_v55 = vpop.f32.mrf.mxu0  ;;  %v7295_v35 = vpop.f32.mrf.mxu1  ;;  %5868 = vmatmul.mubr.msk.bf16.gmra.mxu1 %vm721_vm0, %v6436_v39  ;;  %6150 = vmatmul.mubr.msk.bf16.gmra.mxu0 %vm721_vm0, %v6437_v45 }
 0x159   : > { %8983 = vst [vmem:[#allocation62_spill] sm:$0xff] %v7293_v55  ;;  %8984 = vst [vmem:[#allocation63_spill] sm:$0xff] %v7295_v35  ;;  %2652 = vmatprep.mubr.bf16.mxu1 %v8922_v2  ;;  %4298 = vmatprep.mubr.bf16.mxu0 %v8922_v2  ;;  %v6439_v35 = vld [vmem:[%s6769_s8 + $0x70] sm:$0xff]  }
 0x15a   : > { %v7301_v59 = vpop.f32.mrf.mxu0  ;;  %v7303_v17 = vpop.f32.mrf.mxu1 }
 0x15b   : > { %8985 = vst [vmem:[#allocation64_spill] sm:$0xff] %v7301_v59  ;;  %8986 = vst [vmem:[#allocation65_spill] sm:$0xff] %v7303_v17 }
 0x15c   : > { %v7305_v33 = vpop.f32.mrf.mxu0  ;;  %v7307_v49 = vpop.f32.mrf.mxu1 }
 0x15d   : > { %8987 = vst [vmem:[#allocation66_spill] sm:$0xff] %v7305_v33  ;;  %8988 = vst [vmem:[#allocation67_spill] sm:$0xff] %v7307_v49 }
 0x15e   : > { %v7311_v27 = vpop.f32.mrf.mxu0  ;;  %v7313_v39 = vpop.f32.mrf.mxu1 }
 0x15f   : > { %8989 = vst [vmem:[#allocation68_spill] sm:$0xff] %v7311_v27  ;;  %8990 = vst [vmem:[#allocation69_spill] sm:$0xff] %v7313_v39 }
 0x160   : > { %v7315_v45 = vpop.f32.mrf.mxu0  ;;  %v7317_v25 = vpop.f32.mrf.mxu1  ;;  %5869 = vmatmul.mubr.msk.bf16.gmra.mxu1 %vm721_vm0, %v6438_v29  ;;  %6151 = vmatmul.mubr.msk.bf16.gmra.mxu0 %vm721_vm0, %v6439_v35 }
 0x161   : > { %8991 = vst [vmem:[#allocation70_spill] sm:$0xff] %v7315_v45  ;;  %8992 = vst [vmem:[#allocation71_spill] sm:$0xff] %v7317_v25  ;;  %2662 = vmatprep.mubr.bf16.mxu1 %v8922_v2  ;;  %4308 = vmatprep.mubr.bf16.mxu0 %v8922_v2  ;;  %v6440_v45 = vld [vmem:[%s6769_s8 + $0x58] sm:$0xff]  }
 0x162   : > { %v7323_v49 = vpop.f32.mrf.mxu0  ;;  %v7325_v17 = vpop.f32.mrf.mxu1  ;;  %v6441_v25 = vld [vmem:[%s6769_s8 + $0x78] sm:$0xff]  }
 0x163   : > { %8993 = vst [vmem:[#allocation72_spill] sm:$0xff] %v7323_v49  ;;  %8994 = vst [vmem:[#allocation73_spill] sm:$0xff] %v7325_v17 }
 0x164   : > { %v7327_v33 = vpop.f32.mrf.mxu0  ;;  %v7329_v39 = vpop.f32.mrf.mxu1 }
 0x165   : > { %8995 = vst [vmem:[#allocation74_spill] sm:$0xff] %v7327_v33  ;;  %8996 = vst [vmem:[#allocation75_spill] sm:$0xff] %v7329_v39 }
 0x166   : > { %v7333_v27 = vpop.f32.mrf.mxu0  ;;  %v7335_v29 = vpop.f32.mrf.mxu1 }
 0x167   : > { %8997 = vst [vmem:[#allocation76_spill] sm:$0xff] %v7333_v27  ;;  %8998 = vst [vmem:[#allocation77_spill] sm:$0xff] %v7335_v29 }
 0x168   : > { %v7337_v35 = vpop.f32.mrf.mxu0  ;;  %v7339_v59 = vpop.f32.mrf.mxu1  ;;  %5870 = vmatmul.mubr.msk.bf16.gmra.mxu1 %vm721_vm0, %v6440_v45  ;;  %6152 = vmatmul.mubr.msk.bf16.gmra.mxu0 %vm721_vm0, %v6441_v25 }
 0x169   : > { %8999 = vst [vmem:[#allocation78_spill] sm:$0xff] %v7337_v35  ;;  %9000 = vst [vmem:[#allocation79_spill] sm:$0xff] %v7339_v59  ;;  %2672 = vmatprep.mubr.bf16.mxu1 %v8922_v2  ;;  %4318 = vmatprep.mubr.bf16.mxu0 %v8922_v2  ;;  %v6442_v35 = vld [vmem:[%s6769_s8 + $0x60] sm:$0xff]  }
 0x16a   : > { %v7345_v39 = vpop.f32.mrf.mxu0  ;;  %v7347_v17 = vpop.f32.mrf.mxu1  ;;  %v6443_v59 = vld [vmem:[%s6769_s8 + $0x80] sm:$0xff]  }
 0x16b   : > { %9001 = vst [vmem:[#allocation80_spill] sm:$0xff] %v7345_v39  ;;  %9002 = vst [vmem:[#allocation81_spill] sm:$0xff] %v7347_v17 }
 0x16c   : > { %v7349_v33 = vpop.f32.mrf.mxu0  ;;  %v7351_v29 = vpop.f32.mrf.mxu1 }
 0x16d   : > { %9003 = vst [vmem:[#allocation82_spill] sm:$0xff] %v7349_v33  ;;  %9004 = vst [vmem:[#allocation83_spill] sm:$0xff] %v7351_v29 }
 0x16e   : > { %v7355_v27 = vpop.f32.mrf.mxu0  ;;  %v7357_v45 = vpop.f32.mrf.mxu1 }
 0x16f   : > { %9005 = vst [vmem:[#allocation84_spill] sm:$0xff] %v7355_v27  ;;  %9006 = vst [vmem:[#allocation85_spill] sm:$0xff] %v7357_v45 }
 0x170   : > { %v7359_v25 = vpop.f32.mrf.mxu0  ;;  %v7361_v49 = vpop.f32.mrf.mxu1  ;;  %5871 = vmatmul.mubr.msk.bf16.gmra.mxu1 %vm721_vm0, %v6442_v35  ;;  %6153 = vmatmul.mubr.msk.bf16.gmra.mxu0 %vm721_vm0, %v6443_v59 }
 0x171   : > { %9007 = vst [vmem:[#allocation86_spill] sm:$0xff] %v7359_v25  ;;  %9008 = vst [vmem:[#allocation87_spill] sm:$0xff] %v7361_v49  ;;  %2682 = vmatprep.mubr.bf16.mxu1 %v8922_v2  ;;  %4328 = vmatprep.mubr.bf16.mxu0 %v8922_v2  ;;  %v6444_v25 = vld [vmem:[%s6769_s8 + $0x68] sm:$0xff]  }
 0x172   : > { %v7367_v29 = vpop.f32.mrf.mxu0  ;;  %v7369_v17 = vpop.f32.mrf.mxu1  ;;  %v6445_v49 = vld [vmem:[%s6769_s8 + $0x88] sm:$0xff]  }
 0x173   : > { %9009 = vst [vmem:[#allocation88_spill] sm:$0xff] %v7367_v29  ;;  %9010 = vst [vmem:[#allocation89_spill] sm:$0xff] %v7369_v17 }
 0x174   : > { %v7371_v33 = vpop.f32.mrf.mxu0  ;;  %v7373_v45 = vpop.f32.mrf.mxu1 }
 0x175   : > { %9011 = vst [vmem:[#allocation90_spill] sm:$0xff] %v7371_v33  ;;  %9012 = vst [vmem:[#allocation91_spill] sm:$0xff] %v7373_v45 }
 0x176   : > { %v7377_v27 = vpop.f32.mrf.mxu0  ;;  %v7379_v35 = vpop.f32.mrf.mxu1 }
 0x177   : > { %9013 = vst [vmem:[#allocation92_spill] sm:$0xff] %v7377_v27  ;;  %9014 = vst [vmem:[#allocation93_spill] sm:$0xff] %v7379_v35 }
 0x178   : > { %v7381_v59 = vpop.f32.mrf.mxu0  ;;  %v7383_v39 = vpop.f32.mrf.mxu1  ;;  %5872 = vmatmul.mubr.msk.bf16.gmra.mxu1 %vm721_vm0, %v6444_v25  ;;  %6154 = vmatmul.mubr.msk.bf16.gmra.mxu0 %vm721_vm0, %v6445_v49 }
 0x179   : > { %9015 = vst [vmem:[#allocation94_spill] sm:$0xff] %v7381_v59  ;;  %9016 = vst [vmem:[#allocation95_spill] sm:$0xff] %v7383_v39  ;;  %2692 = vmatprep.mubr.bf16.mxu1 %v8922_v2  ;;  %4338 = vmatprep.mubr.bf16.mxu0 %v8922_v2  ;;  %v6446_v59 = vld [vmem:[%s6769_s8 + $0x70] sm:$0xff]  }
 0x17a   : > { %v7389_v45 = vpop.f32.mrf.mxu0  ;;  %v7391_v17 = vpop.f32.mrf.mxu1  ;;  %v6447_v39 = vld [vmem:[%s6769_s8 + $0x90] sm:$0xff]  }
 0x17b   : > { %9017 = vst [vmem:[#allocation96_spill] sm:$0xff] %v7389_v45  ;;  %9018 = vst [vmem:[#allocation97_spill] sm:$0xff] %v7391_v17 }
 0x17c   : > { %v7393_v33 = vpop.f32.mrf.mxu0  ;;  %v7395_v35 = vpop.f32.mrf.mxu1 }
 0x17d   : > { %9019 = vst [vmem:[#allocation98_spill] sm:$0xff] %v7393_v33  ;;  %9020 = vst [vmem:[#allocation99_spill] sm:$0xff] %v7395_v35 }
 0x17e   : > { %v7399_v27 = vpop.f32.mrf.mxu0  ;;  %v7401_v25 = vpop.f32.mrf.mxu1 }
 0x17f   : > { %9021 = vst [vmem:[#allocation100_spill] sm:$0xff] %v7399_v27  ;;  %9022 = vst [vmem:[#allocation101_spill] sm:$0xff] %v7401_v25 }
 0x180   : > { %v7403_v49 = vpop.f32.mrf.mxu0  ;;  %v7405_v29 = vpop.f32.mrf.mxu1  ;;  %5873 = vmatmul.mubr.msk.bf16.gmra.mxu1 %vm721_vm0, %v6446_v59  ;;  %6155 = vmatmul.mubr.msk.bf16.gmra.mxu0 %vm721_vm0, %v6447_v39 }
 0x181   : > { %9023 = vst [vmem:[#allocation102_spill] sm:$0xff] %v7403_v49  ;;  %9024 = vst [vmem:[#allocation103_spill] sm:$0xff] %v7405_v29  ;;  %2702 = vmatprep.mubr.bf16.mxu1 %v8922_v2  ;;  %4348 = vmatprep.mubr.bf16.mxu0 %v8922_v2  ;;  %v6448_v49 = vld [vmem:[%s6769_s8 + $0x78] sm:$0xff]  }
 0x182   : > { %v7411_v35 = vpop.f32.mrf.mxu0  ;;  %v7413_v17 = vpop.f32.mrf.mxu1  ;;  %v6449_v29 = vld [vmem:[%s6769_s8 + $0x98] sm:$0xff]  }
 0x183   : > { %9025 = vst [vmem:[#allocation104_spill] sm:$0xff] %v7411_v35  ;;  %9026 = vst [vmem:[#allocation105_spill] sm:$0xff] %v7413_v17 }
 0x184   : > { %v7415_v33 = vpop.f32.mrf.mxu0  ;;  %v7417_v25 = vpop.f32.mrf.mxu1 }
 0x185   : > { %9027 = vst [vmem:[#allocation106_spill] sm:$0xff] %v7415_v33  ;;  %9028 = vst [vmem:[#allocation107_spill] sm:$0xff] %v7417_v25 }
 0x186   : > { %v7421_v27 = vpop.f32.mrf.mxu0  ;;  %v7423_v59 = vpop.f32.mrf.mxu1 }
 0x187   : > { %9029 = vst [vmem:[#allocation108_spill] sm:$0xff] %v7421_v27  ;;  %9030 = vst [vmem:[#allocation109_spill] sm:$0xff] %v7423_v59 }
 0x188   : > { %v7425_v39 = vpop.f32.mrf.mxu0  ;;  %v7427_v45 = vpop.f32.mrf.mxu1  ;;  %5874 = vmatmul.mubr.msk.bf16.gmra.mxu1 %vm721_vm0, %v6448_v49  ;;  %6156 = vmatmul.mubr.msk.bf16.gmra.mxu0 %vm721_vm0, %v6449_v29 }
 0x189   : > { %9031 = vst [vmem:[#allocation110_spill] sm:$0xff] %v7425_v39  ;;  %9032 = vst [vmem:[#allocation111_spill] sm:$0xff] %v7427_v45  ;;  %2712 = vmatprep.mubr.bf16.mxu1 %v8922_v2  ;;  %4358 = vmatprep.mubr.bf16.mxu0 %v8922_v2  ;;  %v6450_v39 = vld [vmem:[%s6769_s8 + $0x80] sm:$0xff]  }
 0x18a   : > { %v7433_v25 = vpop.f32.mrf.mxu0  ;;  %v7435_v17 = vpop.f32.mrf.mxu1  ;;  %v6451_v45 = vld [vmem:[%s6769_s8 + $0xa0] sm:$0xff]  }
 0x18b   : > { %9033 = vst [vmem:[#allocation112_spill] sm:$0xff] %v7433_v25  ;;  %9034 = vst [vmem:[#allocation113_spill] sm:$0xff] %v7435_v17 }
 0x18c   : > { %v7437_v33 = vpop.f32.mrf.mxu0  ;;  %v7439_v59 = vpop.f32.mrf.mxu1 }
 0x18d   : > { %9035 = vst [vmem:[#allocation114_spill] sm:$0xff] %v7437_v33  ;;  %9036 = vst [vmem:[#allocation115_spill] sm:$0xff] %v7439_v59 }
 0x18e   : > { %v7443_v27 = vpop.f32.mrf.mxu0  ;;  %v7445_v49 = vpop.f32.mrf.mxu1 }
 0x18f   : > { %9037 = vst [vmem:[#allocation116_spill] sm:$0xff] %v7443_v27  ;;  %9038 = vst [vmem:[#allocation117_spill] sm:$0xff] %v7445_v49 }
 0x190   : > { %v7447_v29 = vpop.f32.mrf.mxu0  ;;  %v7449_v35 = vpop.f32.mrf.mxu1  ;;  %5875 = vmatmul.mubr.msk.bf16.gmra.mxu1 %vm721_vm0, %v6450_v39  ;;  %6157 = vmatmul.mubr.msk.bf16.gmra.mxu0 %vm721_vm0, %v6451_v45 }
 0x191   : > { %9039 = vst [vmem:[#allocation118_spill] sm:$0xff] %v7447_v29  ;;  %9040 = vst [vmem:[#allocation119_spill] sm:$0xff] %v7449_v35  ;;  %2722 = vmatprep.mubr.bf16.mxu1 %v8922_v2  ;;  %4368 = vmatprep.mubr.bf16.mxu0 %v8922_v2  ;;  %v6452_v29 = vld [vmem:[%s6769_s8 + $0x88] sm:$0xff]  }
 0x192   : > { %v7455_v59 = vpop.f32.mrf.mxu0  ;;  %v7457_v17 = vpop.f32.mrf.mxu1  ;;  %v6453_v35 = vld [vmem:[%s6769_s8 + $0xa8] sm:$0xff]  }
 0x193   : > { %9041 = vst [vmem:[#allocation120_spill] sm:$0xff] %v7455_v59  ;;  %9042 = vst [vmem:[#allocation121_spill] sm:$0xff] %v7457_v17 }
 0x194   : > { %v7459_v33 = vpop.f32.mrf.mxu0  ;;  %v7461_v49 = vpop.f32.mrf.mxu1 }
 0x195   : > { %9043 = vst [vmem:[#allocation122_spill] sm:$0xff] %v7459_v33  ;;  %9044 = vst [vmem:[#allocation123_spill] sm:$0xff] %v7461_v49 }
 0x196   : > { %v7465_v27 = vpop.f32.mrf.mxu0  ;;  %v7467_v39 = vpop.f32.mrf.mxu1 }
 0x197   : > { %9045 = vst [vmem:[#allocation124_spill] sm:$0xff] %v7465_v27  ;;  %9046 = vst [vmem:[#allocation125_spill] sm:$0xff] %v7467_v39 }
 0x198   : > { %v7469_v45 = vpop.f32.mrf.mxu0  ;;  %v7471_v25 = vpop.f32.mrf.mxu1  ;;  %5876 = vmatmul.mubr.msk.bf16.gmra.mxu1 %vm721_vm0, %v6452_v29  ;;  %6158 = vmatmul.mubr.msk.bf16.gmra.mxu0 %vm721_vm0, %v6453_v35 }
 0x199   : > { %9047 = vst [vmem:[#allocation126_spill] sm:$0xff] %v7469_v45  ;;  %9048 = vst [vmem:[#allocation127_spill] sm:$0xff] %v7471_v25  ;;  %2732 = vmatprep.mubr.bf16.mxu1 %v8922_v2  ;;  %4378 = vmatprep.mubr.bf16.mxu0 %v8922_v2  ;;  %v6454_v45 = vld [vmem:[%s6769_s8 + $0x90] sm:$0xff]  }
 0x19a   : > { %v7477_v49 = vpop.f32.mrf.mxu0  ;;  %v7479_v17 = vpop.f32.mrf.mxu1  ;;  %v6455_v25 = vld [vmem:[%s6769_s8 + $0xb0] sm:$0xff]  }
 0x19b   : > { %9049 = vst [vmem:[#allocation128_spill] sm:$0xff] %v7477_v49  ;;  %9050 = vst [vmem:[#allocation129_spill] sm:$0xff] %v7479_v17 }
 0x19c   : > { %v7481_v33 = vpop.f32.mrf.mxu0  ;;  %v7483_v39 = vpop.f32.mrf.mxu1 }
 0x19d   : > { %9051 = vst [vmem:[#allocation130_spill] sm:$0xff] %v7481_v33  ;;  %9052 = vst [vmem:[#allocation131_spill] sm:$0xff] %v7483_v39 }
 0x19e   : > { %v7487_v27 = vpop.f32.mrf.mxu0  ;;  %v7489_v29 = vpop.f32.mrf.mxu1 }
 0x19f   : > { %9053 = vst [vmem:[#allocation132_spill] sm:$0xff] %v7487_v27  ;;  %9054 = vst [vmem:[#allocation133_spill] sm:$0xff] %v7489_v29 }
 0x1a0   : > { %v7491_v35 = vpop.f32.mrf.mxu0  ;;  %v7493_v59 = vpop.f32.mrf.mxu1  ;;  %5877 = vmatmul.mubr.msk.bf16.gmra.mxu1 %vm721_vm0, %v6454_v45  ;;  %6159 = vmatmul.mubr.msk.bf16.gmra.mxu0 %vm721_vm0, %v6455_v25 }
 0x1a1   : > { %9055 = vst [vmem:[#allocation134_spill] sm:$0xff] %v7491_v35  ;;  %9056 = vst [vmem:[#allocation135_spill] sm:$0xff] %v7493_v59  ;;  %2742 = vmatprep.mubr.bf16.mxu1 %v8922_v2  ;;  %4388 = vmatprep.mubr.bf16.mxu0 %v8922_v2  ;;  %v6456_v35 = vld [vmem:[%s6769_s8 + $0x98] sm:$0xff]  }
 0x1a2   : > { %v7499_v39 = vpop.f32.mrf.mxu0  ;;  %v7501_v17 = vpop.f32.mrf.mxu1  ;;  %v6457_v59 = vld [vmem:[%s6769_s8 + $0xb8] sm:$0xff]  }
 0x1a3   : > { %9057 = vst [vmem:[#allocation136_spill] sm:$0xff] %v7499_v39  ;;  %9058 = vst [vmem:[#allocation137_spill] sm:$0xff] %v7501_v17 }
 0x1a4   : > { %v7503_v33 = vpop.f32.mrf.mxu0  ;;  %v7505_v29 = vpop.f32.mrf.mxu1 }
 0x1a5   : > { %9059 = vst [vmem:[#allocation138_spill] sm:$0xff] %v7503_v33  ;;  %9060 = vst [vmem:[#allocation139_spill] sm:$0xff] %v7505_v29 }
 0x1a6   : > { %v7509_v27 = vpop.f32.mrf.mxu0  ;;  %v7511_v45 = vpop.f32.mrf.mxu1 }
 0x1a7   : > { %9061 = vst [vmem:[#allocation140_spill] sm:$0xff] %v7509_v27  ;;  %9062 = vst [vmem:[#allocation141_spill] sm:$0xff] %v7511_v45 }
 0x1a8   : > { %v7513_v25 = vpop.f32.mrf.mxu0  ;;  %v7515_v49 = vpop.f32.mrf.mxu1  ;;  %5878 = vmatmul.mubr.msk.bf16.gmra.mxu1 %vm721_vm0, %v6456_v35  ;;  %6160 = vmatmul.mubr.msk.bf16.gmra.mxu0 %vm721_vm0, %v6457_v59 }
 0x1a9   : > { %9063 = vst [vmem:[#allocation142_spill] sm:$0xff] %v7513_v25  ;;  %9064 = vst [vmem:[#allocation143_spill] sm:$0xff] %v7515_v49  ;;  %2752 = vmatprep.mubr.bf16.mxu1 %v8922_v2  ;;  %4398 = vmatprep.mubr.bf16.mxu0 %v8922_v2  ;;  %v6458_v25 = vld [vmem:[%s6769_s8 + $0xa0] sm:$0xff]  }
 0x1aa   : > { %v7521_v29 = vpop.f32.mrf.mxu0  ;;  %v7523_v17 = vpop.f32.mrf.mxu1  ;;  %v6459_v49 = vld [vmem:[%s6769_s8 + $0xc0] sm:$0xff]  }
 0x1ab   : > { %9065 = vst [vmem:[#allocation144_spill] sm:$0xff] %v7521_v29  ;;  %9066 = vst [vmem:[#allocation145_spill] sm:$0xff] %v7523_v17 }
 0x1ac   : > { %v7525_v33 = vpop.f32.mrf.mxu0  ;;  %v7527_v45 = vpop.f32.mrf.mxu1 }
 0x1ad   : > { %9067 = vst [vmem:[#allocation146_spill] sm:$0xff] %v7525_v33  ;;  %9068 = vst [vmem:[#allocation147_spill] sm:$0xff] %v7527_v45 }
 0x1ae   : > { %v7531_v27 = vpop.f32.mrf.mxu0  ;;  %v7533_v35 = vpop.f32.mrf.mxu1 }
 0x1af   : > { %9069 = vst [vmem:[#allocation148_spill] sm:$0xff] %v7531_v27  ;;  %9070 = vst [vmem:[#allocation149_spill] sm:$0xff] %v7533_v35 }
 0x1b0   : > { %v7535_v59 = vpop.f32.mrf.mxu0  ;;  %v7537_v39 = vpop.f32.mrf.mxu1  ;;  %5879 = vmatmul.mubr.msk.bf16.gmra.mxu1 %vm721_vm0, %v6458_v25  ;;  %6161 = vmatmul.mubr.msk.bf16.gmra.mxu0 %vm721_vm0, %v6459_v49 }
 0x1b1   : > { %9071 = vst [vmem:[#allocation150_spill] sm:$0xff] %v7535_v59  ;;  %9072 = vst [vmem:[#allocation151_spill] sm:$0xff] %v7537_v39  ;;  %2762 = vmatprep.mubr.bf16.mxu1 %v8922_v2  ;;  %4408 = vmatprep.mubr.bf16.mxu0 %v8922_v2  ;;  %v6460_v59 = vld [vmem:[%s6769_s8 + $0xa8] sm:$0xff]  }
 0x1b2   : > { %v7543_v45 = vpop.f32.mrf.mxu0  ;;  %v7545_v17 = vpop.f32.mrf.mxu1  ;;  %v6461_v39 = vld [vmem:[%s6769_s8 + $0xc8] sm:$0xff]  }
 0x1b3   : > { %9073 = vst [vmem:[#allocation152_spill] sm:$0xff] %v7543_v45  ;;  %9074 = vst [vmem:[#allocation153_spill] sm:$0xff] %v7545_v17 }
 0x1b4   : > { %v7547_v33 = vpop.f32.mrf.mxu0  ;;  %v7549_v35 = vpop.f32.mrf.mxu1 }
 0x1b5   : > { %9075 = vst [vmem:[#allocation154_spill] sm:$0xff] %v7547_v33  ;;  %9076 = vst [vmem:[#allocation155_spill] sm:$0xff] %v7549_v35 }
 0x1b6   : > { %v7553_v27 = vpop.f32.mrf.mxu0  ;;  %v7555_v25 = vpop.f32.mrf.mxu1 }
 0x1b7   : > { %9077 = vst [vmem:[#allocation156_spill] sm:$0xff] %v7553_v27  ;;  %9078 = vst [vmem:[#allocation157_spill] sm:$0xff] %v7555_v25 }
 0x1b8   : > { %v7557_v49 = vpop.f32.mrf.mxu0  ;;  %v7559_v29 = vpop.f32.mrf.mxu1  ;;  %5880 = vmatmul.mubr.msk.bf16.gmra.mxu1 %vm721_vm0, %v6460_v59  ;;  %6162 = vmatmul.mubr.msk.bf16.gmra.mxu0 %vm721_vm0, %v6461_v39 }
 0x1b9   : > { %9079 = vst [vmem:[#allocation158_spill] sm:$0xff] %v7557_v49  ;;  %9080 = vst [vmem:[#allocation159_spill] sm:$0xff] %v7559_v29  ;;  %2772 = vmatprep.mubr.bf16.mxu1 %v8922_v2  ;;  %4418 = vmatprep.mubr.bf16.mxu0 %v8922_v2  ;;  %v6462_v49 = vld [vmem:[%s6769_s8 + $0xb0] sm:$0xff]  }
 0x1ba   : > { %v7565_v35 = vpop.f32.mrf.mxu0  ;;  %v7567_v17 = vpop.f32.mrf.mxu1  ;;  %v6463_v29 = vld [vmem:[%s6769_s8 + $0xd0] sm:$0xff]  }
 0x1bb   : > { %9081 = vst [vmem:[#allocation160_spill] sm:$0xff] %v7565_v35  ;;  %9082 = vst [vmem:[#allocation161_spill] sm:$0xff] %v7567_v17 }
 0x1bc   : > { %v7569_v33 = vpop.f32.mrf.mxu0  ;;  %v7571_v25 = vpop.f32.mrf.mxu1 }
 0x1bd   : > { %9083 = vst [vmem:[#allocation162_spill] sm:$0xff] %v7569_v33  ;;  %9084 = vst [vmem:[#allocation163_spill] sm:$0xff] %v7571_v25 }
 0x1be   : > { %v7575_v27 = vpop.f32.mrf.mxu0  ;;  %v7577_v59 = vpop.f32.mrf.mxu1 }
 0x1bf   : > { %9085 = vst [vmem:[#allocation164_spill] sm:$0xff] %v7575_v27  ;;  %9086 = vst [vmem:[#allocation165_spill] sm:$0xff] %v7577_v59 }
 0x1c0   : > { %v7579_v39 = vpop.f32.mrf.mxu0  ;;  %v7581_v45 = vpop.f32.mrf.mxu1  ;;  %5881 = vmatmul.mubr.msk.bf16.gmra.mxu1 %vm721_vm0, %v6462_v49  ;;  %6163 = vmatmul.mubr.msk.bf16.gmra.mxu0 %vm721_vm0, %v6463_v29 }
 0x1c1   : > { %9087 = vst [vmem:[#allocation166_spill] sm:$0xff] %v7579_v39  ;;  %9088 = vst [vmem:[#allocation167_spill] sm:$0xff] %v7581_v45  ;;  %2782 = vmatprep.mubr.bf16.mxu1 %v8922_v2  ;;  %4428 = vmatprep.mubr.bf16.mxu0 %v8922_v2  ;;  %v6464_v39 = vld [vmem:[%s6769_s8 + $0xb8] sm:$0xff]  }
 0x1c2   : > { %v7587_v25 = vpop.f32.mrf.mxu0  ;;  %v7589_v17 = vpop.f32.mrf.mxu1  ;;  %v6465_v45 = vld [vmem:[%s6769_s8 + $0xd8] sm:$0xff]  }
 0x1c3   : > { %9089 = vst [vmem:[#allocation168_spill] sm:$0xff] %v7587_v25  ;;  %9090 = vst [vmem:[#allocation169_spill] sm:$0xff] %v7589_v17 }
 0x1c4   : > { %v7591_v33 = vpop.f32.mrf.mxu0  ;;  %v7593_v59 = vpop.f32.mrf.mxu1 }
 0x1c5   : > { %9091 = vst [vmem:[#allocation170_spill] sm:$0xff] %v7591_v33  ;;  %9092 = vst [vmem:[#allocation171_spill] sm:$0xff] %v7593_v59 }
 0x1c6   : > { %v7597_v27 = vpop.f32.mrf.mxu0  ;;  %v7599_v49 = vpop.f32.mrf.mxu1 }
 0x1c7   : > { %9093 = vst [vmem:[#allocation172_spill] sm:$0xff] %v7597_v27  ;;  %9094 = vst [vmem:[#allocation173_spill] sm:$0xff] %v7599_v49 }
 0x1c8   : > { %v7601_v29 = vpop.f32.mrf.mxu0  ;;  %v7603_v35 = vpop.f32.mrf.mxu1  ;;  %5882 = vmatmul.mubr.msk.bf16.gmra.mxu1 %vm721_vm0, %v6464_v39  ;;  %6164 = vmatmul.mubr.msk.bf16.gmra.mxu0 %vm721_vm0, %v6465_v45 }
 0x1c9   : > { %9095 = vst [vmem:[#allocation174_spill] sm:$0xff] %v7601_v29  ;;  %9096 = vst [vmem:[#allocation175_spill] sm:$0xff] %v7603_v35  ;;  %2792 = vmatprep.mubr.bf16.mxu1 %v8922_v2  ;;  %4438 = vmatprep.mubr.bf16.mxu0 %v8922_v2  ;;  %v6466_v29 = vld [vmem:[%s6769_s8 + $0xc0] sm:$0xff]  }
 0x1ca   : > { %v7609_v59 = vpop.f32.mrf.mxu0  ;;  %v7611_v17 = vpop.f32.mrf.mxu1  ;;  %v6467_v35 = vld [vmem:[%s6769_s8 + $0xe0] sm:$0xff]  }
 0x1cb   : > { %9097 = vst [vmem:[#allocation176_spill] sm:$0xff] %v7609_v59  ;;  %9098 = vst [vmem:[#allocation177_spill] sm:$0xff] %v7611_v17 }
 0x1cc   : > { %v7613_v33 = vpop.f32.mrf.mxu0  ;;  %v7615_v49 = vpop.f32.mrf.mxu1 }
 0x1cd   : > { %9099 = vst [vmem:[#allocation178_spill] sm:$0xff] %v7613_v33  ;;  %9100 = vst [vmem:[#allocation179_spill] sm:$0xff] %v7615_v49 }
 0x1ce   : > { %v7619_v27 = vpop.f32.mrf.mxu0  ;;  %v7621_v39 = vpop.f32.mrf.mxu1 }
 0x1cf   : > { %9101 = vst [vmem:[#allocation180_spill] sm:$0xff] %v7619_v27  ;;  %9102 = vst [vmem:[#allocation181_spill] sm:$0xff] %v7621_v39 }
 0x1d0   : > { %v7623_v45 = vpop.f32.mrf.mxu0  ;;  %v7625_v25 = vpop.f32.mrf.mxu1  ;;  %5883 = vmatmul.mubr.msk.bf16.gmra.mxu1 %vm721_vm0, %v6466_v29  ;;  %6165 = vmatmul.mubr.msk.bf16.gmra.mxu0 %vm721_vm0, %v6467_v35 }
 0x1d1   : > { %9103 = vst [vmem:[#allocation182_spill] sm:$0xff] %v7623_v45  ;;  %9104 = vst [vmem:[#allocation183_spill] sm:$0xff] %v7625_v25  ;;  %2802 = vmatprep.mubr.bf16.mxu1 %v8922_v2  ;;  %4448 = vmatprep.mubr.bf16.mxu0 %v8922_v2  ;;  %v6468_v45 = vld [vmem:[%s6769_s8 + $0xc8] sm:$0xff]  }
 0x1d2   : > { %v7631_v49 = vpop.f32.mrf.mxu0  ;;  %v7633_v17 = vpop.f32.mrf.mxu1  ;;  %v6469_v25 = vld [vmem:[%s6769_s8 + $0xe8] sm:$0xff]  }
 0x1d3   : > { %9105 = vst [vmem:[#allocation184_spill] sm:$0xff] %v7631_v49  ;;  %9106 = vst [vmem:[#allocation185_spill] sm:$0xff] %v7633_v17 }
 0x1d4   : > { %v7635_v33 = vpop.f32.mrf.mxu0  ;;  %v7637_v39 = vpop.f32.mrf.mxu1 }
 0x1d5   : > { %9107 = vst [vmem:[#allocation186_spill] sm:$0xff] %v7635_v33  ;;  %9108 = vst [vmem:[#allocation187_spill] sm:$0xff] %v7637_v39 }
 0x1d6   : > { %v7641_v27 = vpop.f32.mrf.mxu0  ;;  %v7643_v29 = vpop.f32.mrf.mxu1 }
 0x1d7   : > { %9109 = vst [vmem:[#allocation188_spill] sm:$0xff] %v7641_v27  ;;  %9110 = vst [vmem:[#allocation189_spill] sm:$0xff] %v7643_v29  ;;  %v6470_v29 = vld [vmem:[%s6769_s8 + $0xd0] sm:$0xff]  }
 0x1d8   : > { %v7645_v35 = vpop.f32.mrf.mxu0  ;;  %v7647_v59 = vpop.f32.mrf.mxu1  ;;  %5884 = vmatmul.mubr.msk.bf16.gmra.mxu1 %vm721_vm0, %v6468_v45  ;;  %6166 = vmatmul.mubr.msk.bf16.gmra.mxu0 %vm721_vm0, %v6469_v25 }
 0x1d9   : > { %9111 = vst [vmem:[#allocation190_spill] sm:$0xff] %v7645_v35  ;;  %9112 = vst [vmem:[#allocation191_spill] sm:$0xff] %v7647_v59  ;;  %2812 = vmatprep.mubr.bf16.mxu1 %v8922_v2  ;;  %4458 = vmatprep.mubr.bf16.mxu0 %v8922_v2  ;;  %v6471_v59 = vld [vmem:[%s6769_s8 + $0xf0] sm:$0xff]   ;;  %v188_v2 = vlaneseq }
 0x1da   : > { %v7653_v39 = vpop.f32.mrf.mxu0  ;;  %v7655_v17 = vpop.f32.mrf.mxu1 }
 0x1db   : > { %9113 = vst [vmem:[#allocation192_spill] sm:$0xff] %v7653_v39  ;;  %9114 = vst [vmem:[#allocation193_spill] sm:$0xff] %v7655_v17  ;;  %v9121_v17 = vmov 0   ;;  %v6473_v39 = vld [vmem:[%s6769_s8 + $0xf8] sm:$0xff]  }
 0x1dc   : > { %v7657_v33 = vpop.f32.mrf.mxu0  ;;  %v7659_v27 = vpop.f32.mrf.mxu1 }
 0x1dd   : > { %9115 = vst [vmem:[#allocation194_spill] sm:$0xff] %v7657_v33  ;;  %9116 = vst [vmem:[#allocation195_spill] sm:$0xff] %v7659_v27 }
 0x1de   : > { %v7663_v35 = vpop.f32.mrf.mxu0  ;;  %v7665_v45 = vpop.f32.mrf.mxu1 }
 0x1df   : > { %9117 = vst [vmem:[#allocation196_spill] sm:$0xff] %v7663_v35  ;;  %9118 = vst [vmem:[#allocation197_spill] sm:$0xff] %v7665_v45 }
 0x1e0   : > { %v7667_v25 = vpop.f32.mrf.mxu0  ;;  %v7669_v49 = vpop.f32.mrf.mxu1  ;;  %5885 = vmatmul.mubr.msk.bf16.gmra.mxu1 %vm721_vm0, %v6470_v29  ;;  %6167 = vmatmul.mubr.msk.bf16.gmra.mxu0 %vm721_vm0, %v6471_v59 }
 0x1e1   : > { %9119 = vst [vmem:[#allocation198_spill] sm:$0xff] %v7667_v25  ;;  %9120 = vst [vmem:[#allocation199_spill] sm:$0xff] %v7669_v49  ;;  %2822 = vmatprep.mubr.bf16.mxu1 %v9121_v17  ;;  %4468 = vmatprep.mubr.bf16.mxu0 %v9121_v17  ;;  %v6472_v25 = vld [vmem:[%s6769_s8 + $0xd8] sm:$0xff]   ;;  %v189_v49 = vshrl.u32 %v188_v2, 7  ;;  %v186_v2 = vld [vmem:[%s8920_s2] sm:$0x3] }
 0x1e2   : > { %v7675_v27 = vpop.f32.mrf.mxu0  ;;  %v7677_v33 = vpop.f32.mrf.mxu1 }
 0x1e3   : > { %9122 = vst [vmem:[#allocation200_spill] sm:$0xff] %v7675_v27  ;;  %9123 = vst [vmem:[#allocation201_spill] sm:$0xff] %v7677_v33  ;;  %v190_v33 = vsub.s32 0, %v189_v49 }
 0x1e4   : > { %v7679_v35 = vpop.f32.mrf.mxu0  ;;  %v7681_v45 = vpop.f32.mrf.mxu1 }
 0x1e5   : > { %9124 = vst [vmem:[#allocation202_spill] sm:$0xff] %v7679_v35  ;;  %9125 = vst [vmem:[#allocation203_spill] sm:$0xff] %v7681_v45  ;;  %v194_v45 = vsub.s32 1, %v189_v49  ;;  %v6475_v49 = vld [vmem:[%s6769_s8 + $0x100] sm:$0xff]  }
 0x1e6   : > { %v7685_v29 = vpop.f32.mrf.mxu0  ;;  %v7687_v59 = vpop.f32.mrf.mxu1 }
 0x1e7   : > { %9126 = vst [vmem:[#allocation204_spill] sm:$0xff] %v7685_v29  ;;  %9127 = vst [vmem:[#allocation205_spill] sm:$0xff] %v7687_v59  ;;  %v7711_v29 = vrot.slane %v186_v2, %v190_v33  ;;  %v7713_v35 = vrot.slane %v186_v2, %v194_v45 }
 0x1e8   : > { %v7689_v55 = vpop.f32.mrf.mxu0  ;;  %v7691_v37 = vpop.f32.mrf.mxu1  ;;  %5886 = vmatmul.mubr.msk.bf16.gmra.mxu1 %vm721_vm0, %v6472_v25  ;;  %6168 = vmatmul.mubr.msk.bf16.gmra.mxu0 %vm721_vm0, %v6473_v39  ;;  %v6474_v39 = vld [vmem:[%s6769_s8 + $0xe0] sm:$0xff]  }
 0x1e9   : > { %9128 = vst [vmem:[#allocation206_spill] sm:$0xff] %v7689_v55  ;;  %9129 = vst [vmem:[#allocation207_spill] sm:$0xff] %v7691_v37  ;;  %2832 = vmatprep.mubr.bf16.mxu1 %v9121_v17  ;;  %4478 = vmatprep.mubr.bf16.mxu0 %v9121_v17  ;;  %v1588_v33 = vadd.f32 %v7015_v26, %v7713_v35  ;;  %v1590_v26 = vadd.f32 %v7025_v32, %v7713_v35 }
 0x1ea   : > { %v7700_v59 = vpop.f32.mrf.mxu0  ;;  %v7702_v55 = vpop.f32.mrf.mxu1 }
 0x1eb   : > { %9130 = vst [vmem:[#allocation208_spill] sm:$0xff] %v7700_v59  ;;  %9131 = vst [vmem:[#allocation209_spill] sm:$0xff] %v7702_v55  ;;  %v1587_v59 = vadd.f32 %v7007_v24, %v7711_v29 }
 0x1ec   : > { %v7704_v37 = vpop.f32.mrf.mxu0  ;;  %v7706_v25 = vpop.f32.mrf.mxu1 }
 0x1ed   : > { %9132 = vst [vmem:[#allocation210_spill] sm:$0xff] %v7704_v37  ;;  %9133 = vst [vmem:[#allocation211_spill] sm:$0xff] %v7706_v25 }
 0x1ee   : > { %v7715_v27 = vpop.f32.mrf.mxu0  ;;  %v7717_v43 = vpop.f32.mrf.mxu1 }
 0x1ef   : > { %9134 = vst [vmem:[#allocation212_spill] sm:$0xff] %v7715_v27  ;;  %9135 = vst [vmem:[#allocation213_spill] sm:$0xff] %v7717_v43  ;;  %v1589_v43 = vadd.f32 %v7019_v28, %v7711_v29 }
 0x1f0   : > { %v2594_v55 = vpop.f32.mrf.mxu1  ;;  %5887 = vmatmul.mubr.msk.bf16.gmra.mxu1 %vm721_vm0, %v6474_v39  ;;  %v4240_v25 = vpop.f32.mrf.mxu0  ;;  %6169 = vmatmul.mubr.msk.bf16.gmra.mxu0 %vm721_vm0, %v6475_v49  ;;  %v6477_v49 = vld [vmem:[%s6769_s8 + $0x108] sm:$0xff]  }
 0x1f1   : > { %v3233_v45 = vadd.f32 %v2594_v55, %v1587_v59  ;;  %2842 = vmatprep.mubr.bf16.mxu1 %v9121_v17  ;;  %4488 = vmatprep.mubr.bf16.mxu0 %v9121_v17 }
 0x1f2   : > { %v2596_v2 = vpop.f32.mrf.mxu1  ;;  %v4242_v24 = vpop.f32.mrf.mxu0 }
 0x1f3   : > { %v4879_v27 = vadd.f32 %v4240_v25, %v3233_v45  ;;  %v3234_v37 = vadd.f32 %v2596_v2, %v1588_v33  ;;  %v1591_v25 = vadd.f32 %v7029_v34, %v7711_v29 }
 0x1f4   : > { %v2598_v39 = vpop.f32.mrf.mxu1  ;;  %v4244_v6 = vpop.f32.mrf.mxu0 }
 0x1f5   : > { %5135 = vst [vmem:[%s7735_s7] sm:$0xff] %v4879_v27  ;;  %v4880_v55 = vadd.f32 %v4242_v24, %v3234_v37  ;;  %v3235_v59 = vadd.f32 %v2598_v39, %v1589_v43  ;;  %v1592_v27 = vadd.f32 %v7037_v36, %v7713_v35 }
 0x1f6   : > { %v2600_v47 = vpop.f32.mrf.mxu1  ;;  %v4246_v28 = vpop.f32.mrf.mxu0 }
 0x1f7   : > { %5137 = vst.msk [vmem:[%s7735_s7 + $0x8] sm:$0xff] %vm5136_vm1, %v4880_v55  ;;  %v4881_v33 = vadd.f32 %v4244_v6, %v3235_v59  ;;  %v3236_v45 = vadd.f32 %v2600_v47, %v1590_v26  ;;  %v1593_v6 = vadd.f32 %v7041_v38, %v7711_v29  ;;  %v6479_v26 = vld [vmem:[%s6769_s8 + $0x110] sm:$0xff]   ;;  %v1594_v55 = vadd.f32 %v7047_v42, %v7713_v35 }
 0x1f8   : > { %v2604_v2 = vpop.f32.mrf.mxu1  ;;  %5888 = vmatmul.mubr.msk.bf16.gmra.mxu1 %vm721_vm0, %v6476_v1  ;;  %v4250_v32 = vpop.f32.mrf.mxu0  ;;  %6170 = vmatmul.mubr.msk.bf16.gmra.mxu0 %vm721_vm0, %v6477_v49  ;;  %v6478_v49 = vld [vmem:[%s6769_s8 + $0xf0] sm:$0xff]   ;;  %v1595_v38 = vadd.f32 %v7051_v44, %v7711_v29  ;;  %v1596_v42 = vadd.f32 %v7059_v46, %v7713_v35 }
 0x1f9   : > { %5138 = vst [vmem:[%s7735_s7 + $0x10] sm:$0xff] %v4881_v33  ;;  %v4882_v37 = vadd.f32 %v4246_v28, %v3236_v45  ;;  %v3237_v34 = vadd.f32 %v2604_v2, %v1591_v25  ;;  %2852 = vmatprep.mubr.bf16.mxu1 %v9121_v17  ;;  %4498 = vmatprep.mubr.bf16.mxu0 %v9121_v17 }
 0x1fa   : > { %v2606_v43 = vpop.f32.mrf.mxu1  ;;  %v4252_v47 = vpop.f32.mrf.mxu0 }
 0x1fb   : > { %5139 = vst.msk [vmem:[%s7735_s7 + $0x18] sm:$0xff] %vm5136_vm1, %v4882_v37  ;;  %v4883_v1 = vadd.f32 %v4250_v32, %v3237_v34  ;;  %v3238_v24 = vadd.f32 %v2606_v43, %v1592_v27 }
 0x1fc   : > { %v2608_v39 = vpop.f32.mrf.mxu1  ;;  %v4254_v36 = vpop.f32.mrf.mxu0 }
 0x1fd   : > { %5140 = vst [vmem:[%s7735_s7 + $0x20] sm:$0xff] %v4883_v1  ;;  %v4884_v59 = vadd.f32 %v4252_v47, %v3238_v24  ;;  %v3239_v28 = vadd.f32 %v2608_v39, %v1593_v6  ;;  %v1597_v47 = vadd.f32 %v7063_v48, %v7711_v29  ;;  %v6480_v39 = vld [vmem:[%s6769_s8 + $0xf8] sm:$0xff]   ;;  %v1599_v48 = vadd.f32 %v7073_v54, %v7711_v29 }
 0x1fe   : > { %v2610_v25 = vpop.f32.mrf.mxu1  ;;  %v4256_v33 = vpop.f32.mrf.mxu0 }
 0x1ff   : > { %5141 = vst.msk [vmem:[%s7735_s7 + $0x28] sm:$0xff] %vm5136_vm1, %v4884_v59  ;;  %v4885_v45 = vadd.f32 %v4254_v36, %v3239_v28  ;;  %v3240_v2 = vadd.f32 %v2610_v25, %v1594_v55  ;;  %v6481_v36 = vld [vmem:[%s6769_s8 + $0x118] sm:$0xff]  }
 0x200   : > { %v2614_v32 = vpop.f32.mrf.mxu1  ;;  %5889 = vmatmul.mubr.msk.bf16.gmra.mxu1 %vm721_vm0, %v6478_v49  ;;  %v4260_v27 = vpop.f32.mrf.mxu0  ;;  %6171 = vmatmul.mubr.msk.bf16.gmra.mxu0 %vm721_vm0, %v6479_v26  ;;  %v1598_v49 = vadd.f32 %v7069_v52, %v7713_v35  ;;  %v1600_v52 = vadd.f32 %v7081_v56, %v7713_v35 }
 0x201   : > { %5142 = vst [vmem:[%s7735_s7 + $0x30] sm:$0xff] %v4885_v45  ;;  %v4886_v37 = vadd.f32 %v4256_v33, %v3240_v2  ;;  %v3241_v44 = vadd.f32 %v2614_v32, %v1595_v38  ;;  %2862 = vmatprep.mubr.bf16.mxu1 %v9121_v17  ;;  %4508 = vmatprep.mubr.bf16.mxu0 %v9121_v17 }
 0x202   : > { %v2616_v34 = vpop.f32.mrf.mxu1  ;;  %v4262_v43 = vpop.f32.mrf.mxu0 }
 0x203   : > { %5143 = vst.msk [vmem:[%s7735_s7 + $0x38] sm:$0xff] %vm5136_vm1, %v4886_v37  ;;  %v4887_v6 = vadd.f32 %v4260_v27, %v3241_v44  ;;  %v3242_v1 = vadd.f32 %v2616_v34, %v1596_v42  ;;  %v1601_v42 = vadd.f32 %v7085_v58, %v7711_v29  ;;  %v1603_v58 = vadd.f32 %v7095_v0, %v7711_v29 }
 0x204   : > { %v2618_v24 = vpop.f32.mrf.mxu1  ;;  %v4264_v46 = vpop.f32.mrf.mxu0 }
 0x205   : > { %5144 = vst [vmem:[%s7735_s7 + $0x40] sm:$0xff] %v4887_v6  ;;  %v4888_v26 = vadd.f32 %v4262_v43, %v3242_v1  ;;  %v3243_v55 = vadd.f32 %v2618_v24, %v1597_v47  ;;  %v6482_v43 = vld [vmem:[%s6769_s8 + $0x100] sm:$0xff]   ;;  %v1602_v6 = vadd.f32 %v7091_v62, %v7713_v35  ;;  %v1604_v62 = vadd.f32 %v7103_v3, %v7713_v35 }
 0x206   : > { %v2620_v59 = vpop.f32.mrf.mxu1  ;;  %v4266_v28 = vpop.f32.mrf.mxu0  ;;  %v6483_v47 = vld [vmem:[%s6769_s8 + $0x120] sm:$0xff]  }
 0x207   : > { %5145 = vst.msk [vmem:[%s7735_s7 + $0x48] sm:$0xff] %vm5136_vm1, %v4888_v26  ;;  %v4889_v25 = vadd.f32 %v4264_v46, %v3243_v55  ;;  %v3244_v33 = vadd.f32 %v2620_v59, %v1598_v49 }
 0x208   : > { %v2624_v38 = vpop.f32.mrf.mxu1  ;;  %5890 = vmatmul.mubr.msk.bf16.gmra.mxu1 %vm721_vm0, %v6480_v39  ;;  %v4270_v45 = vpop.f32.mrf.mxu0  ;;  %6172 = vmatmul.mubr.msk.bf16.gmra.mxu0 %vm721_vm0, %v6481_v36 }
 0x209   : > { %5146 = vst [vmem:[%s7735_s7 + $0x50] sm:$0xff] %v4889_v25  ;;  %v4890_v2 = vadd.f32 %v4266_v28, %v3244_v33  ;;  %v3245_v54 = vadd.f32 %v2624_v38, %v1599_v48  ;;  %2872 = vmatprep.mubr.bf16.mxu1 %v9121_v17  ;;  %4518 = vmatprep.mubr.bf16.mxu0 %v9121_v17 }
 0x20a   : > { %v2626_v32 = vpop.f32.mrf.mxu1  ;;  %v4272_v27 = vpop.f32.mrf.mxu0  ;;  %v1605_v25 = vadd.f32 %v7107_v5, %v7711_v29  ;;  %v1607_v5 = vadd.f32 %v7117_v11, %v7711_v29 }
 0x20b   : > { %5147 = vst.msk [vmem:[%s7735_s7 + $0x58] sm:$0xff] %vm5136_vm1, %v4890_v2  ;;  %v4891_v37 = vadd.f32 %v4270_v45, %v3245_v54  ;;  %v3246_v44 = vadd.f32 %v2626_v32, %v1600_v52  ;;  %v6484_v52 = vld [vmem:[%s6769_s8 + $0x108] sm:$0xff]   ;;  %v1606_v54 = vadd.f32 %v7113_v9, %v7713_v35  ;;  %v1608_v9 = vadd.f32 %v7125_v13, %v7713_v35 }
 0x20c   : > { %v2628_v34 = vpop.f32.mrf.mxu1  ;;  %v4274_v56 = vpop.f32.mrf.mxu0  ;;  %v6485_v2 = vld [vmem:[%s6769_s8 + $0x128] sm:$0xff]  }
 0x20d   : > { %5148 = vst [vmem:[%s7735_s7 + $0x60] sm:$0xff] %v4891_v37  ;;  %v4892_v1 = vadd.f32 %v4272_v27, %v3246_v44  ;;  %v3247_v24 = vadd.f32 %v2628_v34, %v1601_v42 }
 0x20e   : > { %v2630_v46 = vpop.f32.mrf.mxu1  ;;  %v4276_v39 = vpop.f32.mrf.mxu0 }
 0x20f   : > { %5149 = vst.msk [vmem:[%s7735_s7 + $0x68] sm:$0xff] %vm5136_vm1, %v4892_v1  ;;  %v4893_v36 = vadd.f32 %v4274_v56, %v3247_v24  ;;  %v3248_v49 = vadd.f32 %v2630_v46, %v1602_v6  ;;  %v1609_v24 = vadd.f32 %v7129_v15, %v7711_v29  ;;  %v1611_v15 = vadd.f32 %v7139_v21, %v7711_v29 }
 0x210   : > { %v2634_v26 = vpop.f32.mrf.mxu1  ;;  %5891 = vmatmul.mubr.msk.bf16.gmra.mxu1 %vm721_vm0, %v6482_v43  ;;  %v4280_v55 = vpop.f32.mrf.mxu0  ;;  %6173 = vmatmul.mubr.msk.bf16.gmra.mxu0 %vm721_vm0, %v6483_v47 }
 0x211   : > { %5150 = vst [vmem:[%s7735_s7 + $0x70] sm:$0xff] %v4893_v36  ;;  %v4894_v59 = vadd.f32 %v4276_v39, %v3248_v49  ;;  %v3249_v0 = vadd.f32 %v2634_v26, %v1603_v58  ;;  %2882 = vmatprep.mubr.bf16.mxu1 %v9121_v17  ;;  %4528 = vmatprep.mubr.bf16.mxu0 %v9121_v17  ;;  %v6486_v36 = vld [vmem:[%s6769_s8 + $0x110] sm:$0xff]  }
 0x212   : > { %v2636_v28 = vpop.f32.mrf.mxu1  ;;  %v4282_v48 = vpop.f32.mrf.mxu0  ;;  %v6487_v49 = vld [vmem:[%s6769_s8 + $0x130] sm:$0xff]   ;;  %v1610_v26 = vadd.f32 %v7135_v19, %v7713_v35  ;;  %v1612_v19 = vadd.f32 %v7147_v23, %v7713_v35 }
 0x213   : > { %5151 = vst.msk [vmem:[%s7735_s7 + $0x78] sm:$0xff] %vm5136_vm1, %v4894_v59  ;;  %v4895_v33 = vadd.f32 %v4280_v55, %v3249_v0  ;;  %v3250_v38 = vadd.f32 %v2636_v28, %v1604_v62 }
 0x214   : > { %v2638_v45 = vpop.f32.mrf.mxu1  ;;  %v4284_v3 = vpop.f32.mrf.mxu0 }
 0x215   : > { %5152 = vst [vmem:[%s7735_s7 + $0x80] sm:$0xff] %v4895_v33  ;;  %v4896_v32 = vadd.f32 %v4282_v48, %v3250_v38  ;;  %v3251_v27 = vadd.f32 %v2638_v45, %v1605_v25 }
 0x216   : > { %v2640_v42 = vpop.f32.mrf.mxu1  ;;  %v4286_v37 = vpop.f32.mrf.mxu0 }
 0x217   : > { %5153 = vst.msk [vmem:[%s7735_s7 + $0x88] sm:$0xff] %vm5136_vm1, %v4896_v32  ;;  %v4897_v44 = vadd.f32 %v4284_v3, %v3251_v27  ;;  %v3252_v34 = vadd.f32 %v2640_v42, %v1606_v54  ;;  %v6488_v27 = vld [vmem:[%s6769_s8 + $0x118] sm:$0xff]  }
 0x218   : > { %v2644_v56 = vpop.f32.mrf.mxu1  ;;  %5892 = vmatmul.mubr.msk.bf16.gmra.mxu1 %vm721_vm0, %v6484_v52  ;;  %v4290_v43 = vpop.f32.mrf.mxu0  ;;  %6174 = vmatmul.mubr.msk.bf16.gmra.mxu0 %vm721_vm0, %v6485_v2  ;;  %v1613_v52 = vadd.f32 %v7151_v31, %v7711_v29  ;;  %v6489_v42 = vld [vmem:[%s6769_s8 + $0x138] sm:$0xff]   ;;  %v1615_v31 = vadd.f32 %v7161_v61, %v7711_v29 }
 0x219   : > { %5154 = vst [vmem:[%s7735_s7 + $0x90] sm:$0xff] %v4897_v44  ;;  %v4898_v47 = vadd.f32 %v4286_v37, %v3252_v34  ;;  %v3253_v11 = vadd.f32 %v2644_v56, %v1607_v5  ;;  %2892 = vmatprep.mubr.bf16.mxu1 %v9121_v17  ;;  %4538 = vmatprep.mubr.bf16.mxu0 %v9121_v17 }
 0x21a   : > { %v2646_v6 = vpop.f32.mrf.mxu1  ;;  %v4292_v1 = vpop.f32.mrf.mxu0  ;;  %v1614_v37 = vadd.f32 %v7157_v51, %v7713_v35  ;;  %v1616_v51 = vadd.f32 %v7169_v8, %v7713_v35 }
 0x21b   : > { %5155 = vst.msk [vmem:[%s7735_s7 + $0x98] sm:$0xff] %vm5136_vm1, %v4898_v47  ;;  %v4899_v46 = vadd.f32 %v4290_v43, %v3253_v11  ;;  %v3254_v39 = vadd.f32 %v2646_v6, %v1608_v9 }
 0x21c   : > { %v2648_v58 = vpop.f32.mrf.mxu1  ;;  %v4294_v13 = vpop.f32.mrf.mxu0 }
 0x21d   : > { %5156 = vst [vmem:[%s7735_s7 + $0xa0] sm:$0xff] %v4899_v46  ;;  %v4900_v55 = vadd.f32 %v4292_v1, %v3254_v39  ;;  %v3255_v62 = vadd.f32 %v2648_v58, %v1609_v24  ;;  %v1617_v46 = vadd.f32 %v7173_v18, %v7711_v29  ;;  %v1619_v18 = vadd.f32 %v7183_v50, %v7711_v29 }
 0x21e   : > { %v2650_v59 = vpop.f32.mrf.mxu1  ;;  %v4296_v0 = vpop.f32.mrf.mxu0 }
 0x21f   : > { %5157 = vst.msk [vmem:[%s7735_s7 + $0xa8] sm:$0xff] %vm5136_vm1, %v4900_v55  ;;  %v4901_v28 = vadd.f32 %v4294_v13, %v3255_v62  ;;  %v3256_v48 = vadd.f32 %v2650_v59, %v1610_v26  ;;  %v1618_v26 = vadd.f32 %v7179_v30, %v7713_v35  ;;  %v1620_v30 = vadd.f32 %v7191_v60, %v7713_v35 }
 0x220   : > { %v2654_v25 = vpop.f32.mrf.mxu1  ;;  %5893 = vmatmul.mubr.msk.bf16.gmra.mxu1 %vm721_vm0, %v6486_v36  ;;  %v4300_v33 = vpop.f32.mrf.mxu0  ;;  %6175 = vmatmul.mubr.msk.bf16.gmra.mxu0 %vm721_vm0, %v6487_v49  ;;  %v6490_v36 = vld [vmem:[%s6769_s8 + $0x120] sm:$0xff]  }
 0x221   : > { %5158 = vst [vmem:[%s7735_s7 + $0xb0] sm:$0xff] %v4901_v28  ;;  %v4902_v38 = vadd.f32 %v4296_v0, %v3256_v48  ;;  %v3257_v21 = vadd.f32 %v2654_v25, %v1611_v15  ;;  %2902 = vmatprep.mubr.bf16.mxu1 %v9121_v17  ;;  %4548 = vmatprep.mubr.bf16.mxu0 %v9121_v17  ;;  %v6491_v49 = vld [vmem:[%s6769_s8 + $0x140] sm:$0xff]  }
 0x222   : > { %v2656_v45 = vpop.f32.mrf.mxu1  ;;  %v4302_v3 = vpop.f32.mrf.mxu0 }
 0x223   : > { %5159 = vst.msk [vmem:[%s7735_s7 + $0xb8] sm:$0xff] %vm5136_vm1, %v4902_v38  ;;  %v4903_v2 = vadd.f32 %v4300_v33, %v3257_v21  ;;  %v3258_v54 = vadd.f32 %v2656_v45, %v1612_v19  ;;  %v1621_v21 = vadd.f32 %v7195_v20, %v7711_v29  ;;  %v1623_v20 = vadd.f32 %v7205_v41, %v7711_v29 }
 0x224   : > { %v2658_v32 = vpop.f32.mrf.mxu1  ;;  %v4304_v23 = vpop.f32.mrf.mxu0 }
 0x225   : > { %5160 = vst [vmem:[%s7735_s7 + $0xc0] sm:$0xff] %v4903_v2  ;;  %v4904_v5 = vadd.f32 %v4302_v3, %v3258_v54  ;;  %v3259_v44 = vadd.f32 %v2658_v32, %v1613_v52  ;;  %v6492_v2 = vld [vmem:[%s6769_s8 + $0x128] sm:$0xff]   ;;  %v1622_v32 = vadd.f32 %v7201_v14, %v7713_v35  ;;  %v1624_v14 = vadd.f32 %v7213_v7, %v7713_v35 }
 0x226   : > { %v2660_v34 = vpop.f32.mrf.mxu1  ;;  %v4306_v56 = vpop.f32.mrf.mxu0  ;;  %v6493_v54 = vld [vmem:[%s6769_s8 + $0x148] sm:$0xff]  }
 0x227   : > { %5161 = vst.msk [vmem:[%s7735_s7 + $0xc8] sm:$0xff] %vm5136_vm1, %v4904_v5  ;;  %v4905_v43 = vadd.f32 %v4304_v23, %v3259_v44  ;;  %v3260_v9 = vadd.f32 %v2660_v34, %v1614_v37 }
 0x228   : > { %v2664_v47 = vpop.f32.mrf.mxu1  ;;  %5894 = vmatmul.mubr.msk.bf16.gmra.mxu1 %vm721_vm0, %v6488_v27  ;;  %v4310_v11 = vpop.f32.mrf.mxu0  ;;  %6176 = vmatmul.mubr.msk.bf16.gmra.mxu0 %vm721_vm0, %v6489_v42 }
 0x229   : > { %5162 = vst [vmem:[%s7735_s7 + $0xd0] sm:$0xff] %v4905_v43  ;;  %v4906_v6 = vadd.f32 %v4306_v56, %v3260_v9  ;;  %v3261_v61 = vadd.f32 %v2664_v47, %v1615_v31  ;;  %2912 = vmatprep.mubr.bf16.mxu1 %v9121_v17  ;;  %4558 = vmatprep.mubr.bf16.mxu0 %v9121_v17 }
 0x22a   : > { %v2666_v1 = vpop.f32.mrf.mxu1  ;;  %v4312_v24 = vpop.f32.mrf.mxu0  ;;  %v1625_v47 = vadd.f32 %v7217_v10, %v7711_v29  ;;  %v1627_v10 = vadd.f32 %v7227_v22, %v7711_v29 }
 0x22b   : > { %5163 = vst.msk [vmem:[%s7735_s7 + $0xd8] sm:$0xff] %vm5136_vm1, %v4906_v6  ;;  %v4907_v39 = vadd.f32 %v4310_v11, %v3261_v61  ;;  %v3262_v58 = vadd.f32 %v2666_v1, %v1616_v51  ;;  %v6494_v61 = vld [vmem:[%s6769_s8 + $0x130] sm:$0xff]  }
 0x22c   : > { %v2668_v13 = vpop.f32.mrf.mxu1  ;;  %v4314_v8 = vpop.f32.mrf.mxu0  ;;  %v6495_v1 = vld [vmem:[%s6769_s8 + $0x150] sm:$0xff]  }
 0x22d   : > { %5164 = vst [vmem:[%s7735_s7 + $0xe0] sm:$0xff] %v4907_v39  ;;  %v4908_v55 = vadd.f32 %v4312_v24, %v3262_v58  ;;  %v3263_v62 = vadd.f32 %v2668_v13, %v1617_v46  ;;  %v1626_v24 = vadd.f32 %v7223_v4, %v7713_v35  ;;  %v1628_v4 = vadd.f32 %v7235_v40, %v7713_v35 }
 0x22e   : > { %v2670_v59 = vpop.f32.mrf.mxu1  ;;  %v4316_v0 = vpop.f32.mrf.mxu0 }
 0x22f   : > { %5165 = vst.msk [vmem:[%s7735_s7 + $0xe8] sm:$0xff] %vm5136_vm1, %v4908_v55  ;;  %v4909_v15 = vadd.f32 %v4314_v8, %v3263_v62  ;;  %v3264_v28 = vadd.f32 %v2670_v59, %v1618_v26 }
 0x230   : > { %v2674_v48 = vpop.f32.mrf.mxu1  ;;  %5895 = vmatmul.mubr.msk.bf16.gmra.mxu1 %vm721_vm0, %v6490_v36  ;;  %v4320_v25 = vpop.f32.mrf.mxu0  ;;  %6177 = vmatmul.mubr.msk.bf16.gmra.mxu0 %vm721_vm0, %v6491_v49 }
 0x231   : > { %5166 = vst [vmem:[%s7735_s7 + $0xf0] sm:$0xff] %v4909_v15  ;;  %v4910_v33 = vadd.f32 %v4316_v0, %v3264_v28  ;;  %v3265_v50 = vadd.f32 %v2674_v48, %v1619_v18  ;;  %2922 = vmatprep.mubr.bf16.mxu1 %v9121_v17  ;;  %4568 = vmatprep.mubr.bf16.mxu0 %v9121_v17  ;;  %v6496_v48 = vld [vmem:[%s6769_s8 + $0x138] sm:$0xff]  }
 0x232   : > { %v2676_v19 = vpop.f32.mrf.mxu1  ;;  %v4322_v38 = vpop.f32.mrf.mxu0  ;;  %v1629_v0 = vadd.f32 %v7239_v63, %v7711_v29  ;;  %v1631_v63 = vadd.f32 %v7249_v12, %v7711_v29 }
 0x233   : > { %5167 = vst.msk [vmem:[%s7735_s7 + $0xf8] sm:$0xff] %vm5136_vm1, %v4910_v33  ;;  %v4911_v45 = vadd.f32 %v4320_v25, %v3265_v50  ;;  %v3266_v3 = vadd.f32 %v2676_v19, %v1620_v30  ;;  %v6497_v25 = vld [vmem:[%s6769_s8 + $0x158] sm:$0xff]   ;;  %v1630_v30 = vadd.f32 %v7245_v57, %v7713_v35  ;;  %v1632_v57 = vadd.f32 %v7257_v16, %v7713_v35 }
 0x234   : > { %v2678_v52 = vpop.f32.mrf.mxu1  ;;  %v4324_v60 = vpop.f32.mrf.mxu0 }
 0x235   : > { %5168 = vst [vmem:[%s7735_s7 + $0x100] sm:$0xff] %v4911_v45  ;;  %v4912_v23 = vadd.f32 %v4322_v38, %v3266_v3  ;;  %v3267_v27 = vadd.f32 %v2678_v52, %v1621_v21 }
 0x236   : > { %v2680_v42 = vpop.f32.mrf.mxu1  ;;  %v4326_v37 = vpop.f32.mrf.mxu0 }
 0x237   : > { %5169 = vst.msk [vmem:[%s7735_s7 + $0x108] sm:$0xff] %vm5136_vm1, %v4912_v23  ;;  %v4913_v5 = vadd.f32 %v4324_v60, %v3267_v27  ;;  %v3268_v44 = vadd.f32 %v2680_v42, %v1622_v32  ;;  %v1633_v32 = vadd.f32 %v7261_v53, %v7711_v29 }
 0x238   : > { %v2684_v34 = vpop.f32.mrf.mxu1  ;;  %5896 = vmatmul.mubr.msk.bf16.gmra.mxu1 %vm721_vm0, %v6492_v2  ;;  %v4330_v56 = vpop.f32.mrf.mxu0  ;;  %6178 = vmatmul.mubr.msk.bf16.gmra.mxu0 %vm721_vm0, %v6493_v54 }
 0x239   : > { %5170 = vst [vmem:[%s7735_s7 + $0x110] sm:$0xff] %v4913_v5  ;;  %v4914_v31 = vadd.f32 %v4326_v37, %v3268_v44  ;;  %v3269_v41 = vadd.f32 %v2684_v34, %v1623_v20  ;;  %2932 = vmatprep.mubr.bf16.mxu1 %v9121_v17  ;;  %4578 = vmatprep.mubr.bf16.mxu0 %v9121_v17  ;;  %v6498_v37 = vld [vmem:[%s6769_s8 + $0x140] sm:$0xff]   ;;  %v9136_v5 = vld [vmem:[#allocation52_spill] sm:$0xff] }
 0x23a   : > { %v2686_v43 = vpop.f32.mrf.mxu1  ;;  %v4332_v9 = vpop.f32.mrf.mxu0  ;;  %v6499_v20 = vld [vmem:[%s6769_s8 + $0x160] sm:$0xff]   ;;  %v1634_v44 = vadd.f32 %v9136_v5, %v7713_v35 }
 0x23b   : > { %5171 = vst.msk [vmem:[%s7735_s7 + $0x118] sm:$0xff] %vm5136_vm1, %v4914_v31  ;;  %v4915_v11 = vadd.f32 %v4330_v56, %v3269_v41  ;;  %v3270_v51 = vadd.f32 %v2686_v43, %v1624_v14  ;;  %v9137_v41 = vld [vmem:[#allocation54_spill] sm:$0xff] }
 0x23c   : > { %v2688_v6 = vpop.f32.mrf.mxu1  ;;  %v4334_v7 = vpop.f32.mrf.mxu0  ;;  %v1635_v53 = vadd.f32 %v9137_v41, %v7711_v29 }
 0x23d   : > { %5172 = vst [vmem:[%s7735_s7 + $0x120] sm:$0xff] %v4915_v11  ;;  %v4916_v46 = vadd.f32 %v4332_v9, %v3270_v51  ;;  %v3271_v39 = vadd.f32 %v2688_v6, %v1625_v47  ;;  %v9138_v51 = vld [vmem:[#allocation56_spill] sm:$0xff] }
 0x23e   : > { %v2690_v58 = vpop.f32.mrf.mxu1  ;;  %v4336_v13 = vpop.f32.mrf.mxu0  ;;  %v1636_v6 = vadd.f32 %v9138_v51, %v7713_v35 }
 0x23f   : > { %5173 = vst.msk [vmem:[%s7735_s7 + $0x128] sm:$0xff] %vm5136_vm1, %v4916_v46  ;;  %v4917_v8 = vadd.f32 %v4334_v7, %v3271_v39  ;;  %v3272_v36 = vadd.f32 %v2690_v58, %v1626_v24  ;;  %v9139_v46 = vld [vmem:[#allocation58_spill] sm:$0xff] }
 0x240   : > { %v2694_v49 = vpop.f32.mrf.mxu1  ;;  %5897 = vmatmul.mubr.msk.bf16.gmra.mxu1 %vm721_vm0, %v6494_v61  ;;  %v4340_v26 = vpop.f32.mrf.mxu0  ;;  %6179 = vmatmul.mubr.msk.bf16.gmra.mxu0 %vm721_vm0, %v6495_v1  ;;  %v1637_v39 = vadd.f32 %v9139_v46, %v7711_v29 }
 0x241   : > { %5174 = vst [vmem:[%s7735_s7 + $0x130] sm:$0xff] %v4917_v8  ;;  %v4918_v55 = vadd.f32 %v4336_v13, %v3272_v36  ;;  %v3273_v22 = vadd.f32 %v2694_v49, %v1627_v10  ;;  %2942 = vmatprep.mubr.bf16.mxu1 %v9121_v17  ;;  %4588 = vmatprep.mubr.bf16.mxu0 %v9121_v17  ;;  %v6500_v36 = vld [vmem:[%s6769_s8 + $0x148] sm:$0xff]  }
 0x242   : > { %v2696_v62 = vpop.f32.mrf.mxu1  ;;  %v4342_v59 = vpop.f32.mrf.mxu0  ;;  %v6501_v49 = vld [vmem:[%s6769_s8 + $0x168] sm:$0xff]  }
 0x243   : > { %5175 = vst.msk [vmem:[%s7735_s7 + $0x138] sm:$0xff] %vm5136_vm1, %v4918_v55  ;;  %v4919_v18 = vadd.f32 %v4340_v26, %v3273_v22  ;;  %v3274_v15 = vadd.f32 %v2696_v62, %v1628_v4  ;;  %v9140_v26 = vld [vmem:[#allocation60_spill] sm:$0xff] }
 0x244   : > { %v2698_v28 = vpop.f32.mrf.mxu1  ;;  %v4344_v40 = vpop.f32.mrf.mxu0  ;;  %v1638_v4 = vadd.f32 %v9140_v26, %v7713_v35 }
 0x245   : > { %5176 = vst [vmem:[%s7735_s7 + $0x140] sm:$0xff] %v4919_v18  ;;  %v4920_v33 = vadd.f32 %v4342_v59, %v3274_v15  ;;  %v3275_v50 = vadd.f32 %v2698_v28, %v1629_v0  ;;  %v9141_v0 = vld [vmem:[#allocation62_spill] sm:$0xff] }
 0x246   : > { %v2700_v19 = vpop.f32.mrf.mxu1  ;;  %v4346_v38 = vpop.f32.mrf.mxu0  ;;  %v1639_v18 = vadd.f32 %v9141_v0, %v7711_v29 }
 0x247   : > { %5177 = vst.msk [vmem:[%s7735_s7 + $0x148] sm:$0xff] %vm5136_vm1, %v4920_v33  ;;  %v4921_v21 = vadd.f32 %v4344_v40, %v3275_v50  ;;  %v3276_v45 = vadd.f32 %v2700_v19, %v1630_v30 }
 0x248   : > { %v2704_v3 = vpop.f32.mrf.mxu1  ;;  %5898 = vmatmul.mubr.msk.bf16.gmra.mxu1 %vm721_vm0, %v6496_v48  ;;  %v4350_v52 = vpop.f32.mrf.mxu0  ;;  %6180 = vmatmul.mubr.msk.bf16.gmra.mxu0 %vm721_vm0, %v6497_v25  ;;  %v9142_v25 = vld [vmem:[#allocation64_spill] sm:$0xff] }
 0x249   : > { %5178 = vst [vmem:[%s7735_s7 + $0x150] sm:$0xff] %v4921_v21  ;;  %v4922_v60 = vadd.f32 %v4346_v38, %v3276_v45  ;;  %v3277_v12 = vadd.f32 %v2704_v3, %v1631_v63  ;;  %2952 = vmatprep.mubr.bf16.mxu1 %v9121_v17  ;;  %4598 = vmatprep.mubr.bf16.mxu0 %v9121_v17  ;;  %v9143_v63 = vld [vmem:[#allocation66_spill] sm:$0xff] }
 0x24a   : > { %v2706_v2 = vpop.f32.mrf.mxu1  ;;  %v4352_v54 = vpop.f32.mrf.mxu0  ;;  %v1640_v30 = vadd.f32 %v9142_v25, %v7713_v35  ;;  %v1641_v21 = vadd.f32 %v9143_v63, %v7711_v29 }
 0x24b   : > { %5179 = vst.msk [vmem:[%s7735_s7 + $0x158] sm:$0xff] %vm5136_vm1, %v4922_v60  ;;  %v4923_v23 = vadd.f32 %v4350_v52, %v3277_v12  ;;  %v3278_v27 = vadd.f32 %v2706_v2, %v1632_v57  ;;  %v6502_v60 = vld [vmem:[%s6769_s8 + $0x150] sm:$0xff]   ;;  %v9144_v2 = vld [vmem:[#allocation68_spill] sm:$0xff] }
 0x24c   : > { %v2708_v42 = vpop.f32.mrf.mxu1  ;;  %v4354_v16 = vpop.f32.mrf.mxu0  ;;  %v6503_v12 = vld [vmem:[%s6769_s8 + $0x170] sm:$0xff]  }
 0x24d   : > { %5180 = vst [vmem:[%s7735_s7 + $0x160] sm:$0xff] %v4923_v23  ;;  %v4924_v34 = vadd.f32 %v4352_v54, %v3278_v27  ;;  %v3279_v56 = vadd.f32 %v2708_v42, %v1633_v32  ;;  %v1642_v54 = vadd.f32 %v9144_v2, %v7713_v35 }
 0x24e   : > { %v2710_v14 = vpop.f32.mrf.mxu1  ;;  %v4356_v31 = vpop.f32.mrf.mxu0 }
 0x24f   : > { %5181 = vst.msk [vmem:[%s7735_s7 + $0x168] sm:$0xff] %vm5136_vm1, %v4924_v34  ;;  %v4925_v43 = vadd.f32 %v4354_v16, %v3279_v56  ;;  %v3280_v9 = vadd.f32 %v2710_v14, %v1634_v44  ;;  %v9145_v16 = vld [vmem:[#allocation70_spill] sm:$0xff]  ;;  %v9146_v56 = vld [vmem:[#allocation72_spill] sm:$0xff] }
 0x250   : > { %v2714_v47 = vpop.f32.mrf.mxu1  ;;  %5899 = vmatmul.mubr.msk.bf16.gmra.mxu1 %vm721_vm0, %v6498_v37  ;;  %v4360_v11 = vpop.f32.mrf.mxu0  ;;  %6181 = vmatmul.mubr.msk.bf16.gmra.mxu0 %vm721_vm0, %v6499_v20  ;;  %v1643_v37 = vadd.f32 %v9145_v16, %v7711_v29  ;;  %v1644_v14 = vadd.f32 %v9146_v56, %v7713_v35 }
 0x251   : > { %5182 = vst [vmem:[%s7735_s7 + $0x170] sm:$0xff] %v4925_v43  ;;  %v4926_v7 = vadd.f32 %v4356_v31, %v3280_v9  ;;  %v3281_v61 = vadd.f32 %v2714_v47, %v1635_v53  ;;  %2962 = vmatprep.mubr.bf16.mxu1 %v9121_v17  ;;  %4608 = vmatprep.mubr.bf16.mxu0 %v9121_v17  ;;  %v9147_v9 = vld [vmem:[#allocation74_spill] sm:$0xff] }
 0x252   : > { %v2716_v1 = vpop.f32.mrf.mxu1  ;;  %v4362_v24 = vpop.f32.mrf.mxu0  ;;  %v1645_v47 = vadd.f32 %v9147_v9, %v7711_v29 }
 0x253   : > { %5183 = vst.msk [vmem:[%s7735_s7 + $0x178] sm:$0xff] %vm5136_vm1, %v4926_v7  ;;  %v4927_v58 = vadd.f32 %v4360_v11, %v3281_v61  ;;  %v3282_v13 = vadd.f32 %v2716_v1, %v1636_v6  ;;  %v6504_v61 = vld [vmem:[%s6769_s8 + $0x158] sm:$0xff]  }
 0x254   : > { %v2718_v10 = vpop.f32.mrf.mxu1  ;;  %v4364_v8 = vpop.f32.mrf.mxu0  ;;  %v6505_v1 = vld [vmem:[%s6769_s8 + $0x178] sm:$0xff]  }
 0x255   : > { %5184 = vst [vmem:[%s7735_s7 + $0x180] sm:$0xff] %v4927_v58  ;;  %v4928_v55 = vadd.f32 %v4362_v24, %v3282_v13  ;;  %v3283_v22 = vadd.f32 %v2718_v10, %v1637_v39  ;;  %v9148_v24 = vld [vmem:[#allocation76_spill] sm:$0xff] }
 0x256   : > { %v2720_v62 = vpop.f32.mrf.mxu1  ;;  %v4366_v59 = vpop.f32.mrf.mxu0  ;;  %v1646_v46 = vadd.f32 %v9148_v24, %v7713_v35 }
 0x257   : > { %5185 = vst.msk [vmem:[%s7735_s7 + $0x188] sm:$0xff] %vm5136_vm1, %v4928_v55  ;;  %v4929_v15 = vadd.f32 %v4364_v8, %v3283_v22  ;;  %v3284_v28 = vadd.f32 %v2720_v62, %v1638_v4  ;;  %v9149_v8 = vld [vmem:[#allocation78_spill] sm:$0xff]  ;;  %v9150_v22 = vld [vmem:[#allocation80_spill] sm:$0xff] }
 0x258   : > { %v2724_v40 = vpop.f32.mrf.mxu1  ;;  %5900 = vmatmul.mubr.msk.bf16.gmra.mxu1 %vm721_vm0, %v6500_v36  ;;  %v4370_v48 = vpop.f32.mrf.mxu0  ;;  %6182 = vmatmul.mubr.msk.bf16.gmra.mxu0 %vm721_vm0, %v6501_v49  ;;  %v1647_v36 = vadd.f32 %v9149_v8, %v7711_v29  ;;  %v1648_v62 = vadd.f32 %v9150_v22, %v7713_v35 }
 0x259   : > { %5186 = vst [vmem:[%s7735_s7 + $0x190] sm:$0xff] %v4929_v15  ;;  %v4930_v33 = vadd.f32 %v4366_v59, %v3284_v28  ;;  %v3285_v50 = vadd.f32 %v2724_v40, %v1639_v18  ;;  %2972 = vmatprep.mubr.bf16.mxu1 %v9121_v17  ;;  %4618 = vmatprep.mubr.bf16.mxu0 %v9121_v17  ;;  %v9151_v28 = vld [vmem:[#allocation82_spill] sm:$0xff] }
 0x25a   : > { %v2726_v19 = vpop.f32.mrf.mxu1  ;;  %v4372_v38 = vpop.f32.mrf.mxu0  ;;  %v1649_v40 = vadd.f32 %v9151_v28, %v7711_v29 }
 0x25b   : > { %5187 = vst.msk [vmem:[%s7735_s7 + $0x198] sm:$0xff] %vm5136_vm1, %v4930_v33  ;;  %v4931_v45 = vadd.f32 %v4370_v48, %v3285_v50  ;;  %v3286_v3 = vadd.f32 %v2726_v19, %v1640_v30  ;;  %v6506_v50 = vld [vmem:[%s6769_s8 + $0x160] sm:$0xff]  }
 0x25c   : > { %v2728_v52 = vpop.f32.mrf.mxu1  ;;  %v4374_v57 = vpop.f32.mrf.mxu0  ;;  %v6507_v19 = vld [vmem:[%s6769_s8 + $0x180] sm:$0xff]  }
 0x25d   : > { %5188 = vst [vmem:[%s7735_s7 + $0x1a0] sm:$0xff] %v4931_v45  ;;  %v4932_v32 = vadd.f32 %v4372_v38, %v3286_v3  ;;  %v3287_v23 = vadd.f32 %v2728_v52, %v1641_v21  ;;  %v9152_v38 = vld [vmem:[#allocation84_spill] sm:$0xff] }
 0x25e   : > { %v2730_v27 = vpop.f32.mrf.mxu1  ;;  %v4376_v42 = vpop.f32.mrf.mxu0  ;;  %v1650_v63 = vadd.f32 %v9152_v38, %v7713_v35 }
 0x25f   : > { %5189 = vst.msk [vmem:[%s7735_s7 + $0x1a8] sm:$0xff] %vm5136_vm1, %v4932_v32  ;;  %v4933_v20 = vadd.f32 %v4374_v57, %v3287_v23  ;;  %v3288_v5 = vadd.f32 %v2730_v27, %v1642_v54  ;;  %v9153_v57 = vld [vmem:[#allocation86_spill] sm:$0xff]  ;;  %v9154_v23 = vld [vmem:[#allocation88_spill] sm:$0xff] }
 0x260   : > { %v2734_v44 = vpop.f32.mrf.mxu1  ;;  %5901 = vmatmul.mubr.msk.bf16.gmra.mxu1 %vm721_vm0, %v6502_v60  ;;  %v4380_v34 = vpop.f32.mrf.mxu0  ;;  %6183 = vmatmul.mubr.msk.bf16.gmra.mxu0 %vm721_vm0, %v6503_v12  ;;  %v1651_v60 = vadd.f32 %v9153_v57, %v7711_v29  ;;  %v1652_v27 = vadd.f32 %v9154_v23, %v7713_v35 }
 0x261   : > { %5190 = vst [vmem:[%s7735_s7 + $0x1b0] sm:$0xff] %v4933_v20  ;;  %v4934_v31 = vadd.f32 %v4376_v42, %v3288_v5  ;;  %v3289_v41 = vadd.f32 %v2734_v44, %v1643_v37  ;;  %2982 = vmatprep.mubr.bf16.mxu1 %v9121_v17  ;;  %4628 = vmatprep.mubr.bf16.mxu0 %v9121_v17  ;;  %v9155_v5 = vld [vmem:[#allocation90_spill] sm:$0xff] }
 0x262   : > { %v2736_v53 = vpop.f32.mrf.mxu1  ;;  %v4382_v43 = vpop.f32.mrf.mxu0  ;;  %v1653_v44 = vadd.f32 %v9155_v5, %v7711_v29 }
 0x263   : > { %5191 = vst.msk [vmem:[%s7735_s7 + $0x1b8] sm:$0xff] %vm5136_vm1, %v4934_v31  ;;  %v4935_v11 = vadd.f32 %v4380_v34, %v3289_v41  ;;  %v3290_v51 = vadd.f32 %v2736_v53, %v1644_v14  ;;  %v6508_v41 = vld [vmem:[%s6769_s8 + $0x168] sm:$0xff]  }
 0x264   : > { %v2738_v6 = vpop.f32.mrf.mxu1  ;;  %v4384_v7 = vpop.f32.mrf.mxu0  ;;  %v6509_v53 = vld [vmem:[%s6769_s8 + $0x188] sm:$0xff]  }
 0x265   : > { %5192 = vst [vmem:[%s7735_s7 + $0x1c0] sm:$0xff] %v4935_v11  ;;  %v4936_v39 = vadd.f32 %v4382_v43, %v3290_v51  ;;  %v3291_v58 = vadd.f32 %v2738_v6, %v1645_v47  ;;  %v9156_v43 = vld [vmem:[#allocation92_spill] sm:$0xff] }
 0x266   : > { %v2740_v13 = vpop.f32.mrf.mxu1  ;;  %v4386_v10 = vpop.f32.mrf.mxu0  ;;  %v1654_v9 = vadd.f32 %v9156_v43, %v7713_v35 }
 0x267   : > { %5193 = vst.msk [vmem:[%s7735_s7 + $0x1c8] sm:$0xff] %vm5136_vm1, %v4936_v39  ;;  %v4937_v49 = vadd.f32 %v4384_v7, %v3291_v58  ;;  %v3292_v26 = vadd.f32 %v2740_v13, %v1646_v46  ;;  %v9157_v7 = vld [vmem:[#allocation94_spill] sm:$0xff]  ;;  %v9158_v58 = vld [vmem:[#allocation96_spill] sm:$0xff] }
 0x268   : > { %v2744_v4 = vpop.f32.mrf.mxu1  ;;  %5902 = vmatmul.mubr.msk.bf16.gmra.mxu1 %vm721_vm0, %v6504_v61  ;;  %v4390_v55 = vpop.f32.mrf.mxu0  ;;  %6184 = vmatmul.mubr.msk.bf16.gmra.mxu0 %vm721_vm0, %v6505_v1  ;;  %v1655_v61 = vadd.f32 %v9157_v7, %v7711_v29  ;;  %v1656_v13 = vadd.f32 %v9158_v58, %v7713_v35 }
 0x269   : > { %5194 = vst [vmem:[%s7735_s7 + $0x1d0] sm:$0xff] %v4937_v49  ;;  %v4938_v59 = vadd.f32 %v4386_v10, %v3292_v26  ;;  %v3293_v0 = vadd.f32 %v2744_v4, %v1647_v36  ;;  %2992 = vmatprep.mubr.bf16.mxu1 %v9121_v17  ;;  %4638 = vmatprep.mubr.bf16.mxu0 %v9121_v17  ;;  %v9159_v26 = vld [vmem:[#allocation98_spill] sm:$0xff] }
 0x26a   : > { %v2746_v18 = vpop.f32.mrf.mxu1  ;;  %v4392_v15 = vpop.f32.mrf.mxu0  ;;  %v1657_v4 = vadd.f32 %v9159_v26, %v7711_v29 }
 0x26b   : > { %5195 = vst.msk [vmem:[%s7735_s7 + $0x1d8] sm:$0xff] %vm5136_vm1, %v4938_v59  ;;  %v4939_v48 = vadd.f32 %v4390_v55, %v3293_v0  ;;  %v3294_v25 = vadd.f32 %v2746_v18, %v1648_v62  ;;  %v6510_v0 = vld [vmem:[%s6769_s8 + $0x170] sm:$0xff]  }
 0x26c   : > { %v2748_v30 = vpop.f32.mrf.mxu1  ;;  %v4394_v33 = vpop.f32.mrf.mxu0  ;;  %v6511_v18 = vld [vmem:[%s6769_s8 + $0x190] sm:$0xff]  }
 0x26d   : > { %5196 = vst [vmem:[%s7735_s7 + $0x1e0] sm:$0xff] %v4939_v48  ;;  %v4940_v21 = vadd.f32 %v4392_v15, %v3294_v25  ;;  %v3295_v45 = vadd.f32 %v2748_v30, %v1649_v40  ;;  %v9160_v15 = vld [vmem:[#allocation100_spill] sm:$0xff] }
 0x26e   : > { %v2750_v3 = vpop.f32.mrf.mxu1  ;;  %v4396_v52 = vpop.f32.mrf.mxu0  ;;  %v1658_v28 = vadd.f32 %v9160_v15, %v7713_v35 }
 0x26f   : > { %5197 = vst.msk [vmem:[%s7735_s7 + $0x1e8] sm:$0xff] %vm5136_vm1, %v4940_v21  ;;  %v4941_v12 = vadd.f32 %v4394_v33, %v3295_v45  ;;  %v3296_v2 = vadd.f32 %v2750_v3, %v1650_v63  ;;  %v9161_v33 = vld [vmem:[#allocation102_spill] sm:$0xff]  ;;  %v9162_v45 = vld [vmem:[#allocation104_spill] sm:$0xff] }
 0x270   : > { %v2754_v54 = vpop.f32.mrf.mxu1  ;;  %5903 = vmatmul.mubr.msk.bf16.gmra.mxu1 %vm721_vm0, %v6506_v50  ;;  %v4400_v32 = vpop.f32.mrf.mxu0  ;;  %6185 = vmatmul.mubr.msk.bf16.gmra.mxu0 %vm721_vm0, %v6507_v19  ;;  %v1659_v50 = vadd.f32 %v9161_v33, %v7711_v29  ;;  %v1660_v3 = vadd.f32 %v9162_v45, %v7713_v35 }
 0x271   : > { %5198 = vst [vmem:[%s7735_s7 + $0x1f0] sm:$0xff] %v4941_v12  ;;  %v4942_v42 = vadd.f32 %v4396_v52, %v3296_v2  ;;  %v3297_v16 = vadd.f32 %v2754_v54, %v1651_v60  ;;  %3002 = vmatprep.mubr.bf16.mxu1 %v9121_v17  ;;  %4648 = vmatprep.mubr.bf16.mxu0 %v9121_v17  ;;  %v9163_v2 = vld [vmem:[#allocation106_spill] sm:$0xff] }
 0x272   : > { %v2756_v37 = vpop.f32.mrf.mxu1  ;;  %v4402_v20 = vpop.f32.mrf.mxu0  ;;  %v1661_v54 = vadd.f32 %v9163_v2, %v7711_v29 }
 0x273   : > { %5199 = vst.msk [vmem:[%s7735_s7 + $0x1f8] sm:$0xff] %vm5136_vm1, %v4942_v42  ;;  %v4943_v34 = vadd.f32 %v4400_v32, %v3297_v16  ;;  %v3298_v56 = vadd.f32 %v2756_v37, %v1652_v27  ;;  %v6512_v16 = vld [vmem:[%s6769_s8 + $0x178] sm:$0xff]  }
 0x274   : > { %v2758_v14 = vpop.f32.mrf.mxu1  ;;  %v4404_v31 = vpop.f32.mrf.mxu0  ;;  %v6513_v37 = vld [vmem:[%s6769_s8 + $0x198] sm:$0xff]  }
 0x275   : > { %5200 = vst [vmem:[%s7735_s7 + $0x200] sm:$0xff] %v4943_v34  ;;  %v4944_v47 = vadd.f32 %v4402_v20, %v3298_v56  ;;  %v3299_v11 = vadd.f32 %v2758_v14, %v1653_v44  ;;  %v9164_v20 = vld [vmem:[#allocation108_spill] sm:$0xff] }
 0x276   : > { %v2760_v51 = vpop.f32.mrf.mxu1  ;;  %v4406_v6 = vpop.f32.mrf.mxu0  ;;  %v1662_v5 = vadd.f32 %v9164_v20, %v7713_v35 }
 0x277   : > { %5201 = vst.msk [vmem:[%s7735_s7 + $0x208] sm:$0xff] %vm5136_vm1, %v4944_v47  ;;  %v4945_v1 = vadd.f32 %v4404_v31, %v3299_v11  ;;  %v3300_v24 = vadd.f32 %v2760_v51, %v1654_v9  ;;  %v9165_v31 = vld [vmem:[#allocation110_spill] sm:$0xff]  ;;  %v9166_v11 = vld [vmem:[#allocation112_spill] sm:$0xff] }
 0x278   : > { %v2764_v46 = vpop.f32.mrf.mxu1  ;;  %5904 = vmatmul.mubr.msk.bf16.gmra.mxu1 %vm721_vm0, %v6508_v41  ;;  %v4410_v39 = vpop.f32.mrf.mxu0  ;;  %6186 = vmatmul.mubr.msk.bf16.gmra.mxu0 %vm721_vm0, %v6509_v53  ;;  %v1663_v41 = vadd.f32 %v9165_v31, %v7711_v29  ;;  %v1664_v51 = vadd.f32 %v9166_v11, %v7713_v35 }
 0x279   : > { %5202 = vst [vmem:[%s7735_s7 + $0x210] sm:$0xff] %v4945_v1  ;;  %v4946_v10 = vadd.f32 %v4406_v6, %v3300_v24  ;;  %v3301_v8 = vadd.f32 %v2764_v46, %v1655_v61  ;;  %3012 = vmatprep.mubr.bf16.mxu1 %v9121_v17  ;;  %4658 = vmatprep.mubr.bf16.mxu0 %v9121_v17  ;;  %v9167_v24 = vld [vmem:[#allocation114_spill] sm:$0xff] }
 0x27a   : > { %v2766_v36 = vpop.f32.mrf.mxu1  ;;  %v4412_v49 = vpop.f32.mrf.mxu0  ;;  %v1665_v46 = vadd.f32 %v9167_v24, %v7711_v29 }
 0x27b   : > { %5203 = vst.msk [vmem:[%s7735_s7 + $0x218] sm:$0xff] %vm5136_vm1, %v4946_v10  ;;  %v4947_v55 = vadd.f32 %v4410_v39, %v3301_v8  ;;  %v3302_v22 = vadd.f32 %v2766_v36, %v1656_v13  ;;  %v6514_v8 = vld [vmem:[%s6769_s8 + $0x180] sm:$0xff]  }
 0x27c   : > { %v2768_v62 = vpop.f32.mrf.mxu1  ;;  %v4414_v59 = vpop.f32.mrf.mxu0  ;;  %v6515_v36 = vld [vmem:[%s6769_s8 + $0x1a0] sm:$0xff]  }
 0x27d   : > { %5204 = vst [vmem:[%s7735_s7 + $0x220] sm:$0xff] %v4947_v55  ;;  %v4948_v40 = vadd.f32 %v4412_v49, %v3302_v22  ;;  %v3303_v48 = vadd.f32 %v2768_v62, %v1657_v4  ;;  %v9168_v49 = vld [vmem:[#allocation116_spill] sm:$0xff] }
 0x27e   : > { %v2770_v25 = vpop.f32.mrf.mxu1  ;;  %v4416_v30 = vpop.f32.mrf.mxu0  ;;  %v1666_v26 = vadd.f32 %v9168_v49, %v7713_v35 }
 0x27f   : > { %5205 = vst.msk [vmem:[%s7735_s7 + $0x228] sm:$0xff] %vm5136_vm1, %v4948_v40  ;;  %v4949_v19 = vadd.f32 %v4414_v59, %v3303_v48  ;;  %v3304_v38 = vadd.f32 %v2770_v25, %v1658_v28  ;;  %v9169_v59 = vld [vmem:[#allocation118_spill] sm:$0xff]  ;;  %v9170_v48 = vld [vmem:[#allocation120_spill] sm:$0xff] }
 0x280   : > { %v2774_v63 = vpop.f32.mrf.mxu1  ;;  %5905 = vmatmul.mubr.msk.bf16.gmra.mxu1 %vm721_vm0, %v6510_v0  ;;  %v4420_v21 = vpop.f32.mrf.mxu0  ;;  %6187 = vmatmul.mubr.msk.bf16.gmra.mxu0 %vm721_vm0, %v6511_v18  ;;  %v1667_v0 = vadd.f32 %v9169_v59, %v7711_v29  ;;  %v1668_v25 = vadd.f32 %v9170_v48, %v7713_v35 }
 0x281   : > { %5206 = vst [vmem:[%s7735_s7 + $0x230] sm:$0xff] %v4949_v19  ;;  %v4950_v52 = vadd.f32 %v4416_v30, %v3304_v38  ;;  %v3305_v57 = vadd.f32 %v2774_v63, %v1659_v50  ;;  %3022 = vmatprep.mubr.bf16.mxu1 %v9121_v17  ;;  %4668 = vmatprep.mubr.bf16.mxu0 %v9121_v17  ;;  %v9171_v38 = vld [vmem:[#allocation122_spill] sm:$0xff] }
 0x282   : > { %v2776_v60 = vpop.f32.mrf.mxu1  ;;  %v4422_v12 = vpop.f32.mrf.mxu0  ;;  %v1669_v63 = vadd.f32 %v9171_v38, %v7711_v29 }
 0x283   : > { %5207 = vst.msk [vmem:[%s7735_s7 + $0x238] sm:$0xff] %vm5136_vm1, %v4950_v52  ;;  %v4951_v32 = vadd.f32 %v4420_v21, %v3305_v57  ;;  %v3306_v23 = vadd.f32 %v2776_v60, %v1660_v3  ;;  %v6516_v57 = vld [vmem:[%s6769_s8 + $0x188] sm:$0xff]  }
 0x284   : > { %v2778_v27 = vpop.f32.mrf.mxu1  ;;  %v4424_v42 = vpop.f32.mrf.mxu0  ;;  %v6517_v60 = vld [vmem:[%s6769_s8 + $0x1a8] sm:$0xff]  }
 0x285   : > { %5208 = vst [vmem:[%s7735_s7 + $0x240] sm:$0xff] %v4951_v32  ;;  %v4952_v44 = vadd.f32 %v4422_v12, %v3306_v23  ;;  %v3307_v34 = vadd.f32 %v2778_v27, %v1661_v54  ;;  %v9172_v12 = vld [vmem:[#allocation124_spill] sm:$0xff] }
 0x286   : > { %v2780_v56 = vpop.f32.mrf.mxu1  ;;  %v4426_v14 = vpop.f32.mrf.mxu0  ;;  %v1670_v2 = vadd.f32 %v9172_v12, %v7713_v35 }
 0x287   : > { %5209 = vst.msk [vmem:[%s7735_s7 + $0x248] sm:$0xff] %vm5136_vm1, %v4952_v44  ;;  %v4953_v53 = vadd.f32 %v4424_v42, %v3307_v34  ;;  %v3308_v43 = vadd.f32 %v2780_v56, %v1662_v5  ;;  %v9173_v42 = vld [vmem:[#allocation126_spill] sm:$0xff]  ;;  %v9174_v34 = vld [vmem:[#allocation128_spill] sm:$0xff] }
 0x288   : > { %v2784_v9 = vpop.f32.mrf.mxu1  ;;  %5906 = vmatmul.mubr.msk.bf16.gmra.mxu1 %vm721_vm0, %v6512_v16  ;;  %v4430_v47 = vpop.f32.mrf.mxu0  ;;  %6188 = vmatmul.mubr.msk.bf16.gmra.mxu0 %vm721_vm0, %v6513_v37  ;;  %v1671_v16 = vadd.f32 %v9173_v42, %v7711_v29  ;;  %v1672_v56 = vadd.f32 %v9174_v34, %v7713_v35 }
 0x289   : > { %5210 = vst [vmem:[%s7735_s7 + $0x250] sm:$0xff] %v4953_v53  ;;  %v4954_v6 = vadd.f32 %v4426_v14, %v3308_v43  ;;  %v3309_v7 = vadd.f32 %v2784_v9, %v1663_v41  ;;  %3032 = vmatprep.mubr.bf16.mxu1 %v9121_v17  ;;  %4678 = vmatprep.mubr.bf16.mxu0 %v9121_v17  ;;  %v9175_v43 = vld [vmem:[#allocation130_spill] sm:$0xff] }
 0x28a   : > { %v2786_v61 = vpop.f32.mrf.mxu1  ;;  %v4432_v1 = vpop.f32.mrf.mxu0  ;;  %v1673_v9 = vadd.f32 %v9175_v43, %v7711_v29 }
 0x28b   : > { %5211 = vst.msk [vmem:[%s7735_s7 + $0x258] sm:$0xff] %vm5136_vm1, %v4954_v6  ;;  %v4955_v39 = vadd.f32 %v4430_v47, %v3309_v7  ;;  %v3310_v58 = vadd.f32 %v2786_v61, %v1664_v51  ;;  %v6518_v7 = vld [vmem:[%s6769_s8 + $0x190] sm:$0xff]  }
 0x28c   : > { %v2788_v13 = vpop.f32.mrf.mxu1  ;;  %v4434_v10 = vpop.f32.mrf.mxu0  ;;  %v6519_v61 = vld [vmem:[%s6769_s8 + $0x1b0] sm:$0xff]  }
 0x28d   : > { %5212 = vst [vmem:[%s7735_s7 + $0x260] sm:$0xff] %v4955_v39  ;;  %v4956_v4 = vadd.f32 %v4432_v1, %v3310_v58  ;;  %v3311_v55 = vadd.f32 %v2788_v13, %v1665_v46  ;;  %v9176_v1 = vld [vmem:[#allocation132_spill] sm:$0xff] }
 0x28e   : > { %v2790_v22 = vpop.f32.mrf.mxu1  ;;  %v4436_v62 = vpop.f32.mrf.mxu0  ;;  %v1674_v24 = vadd.f32 %v9176_v1, %v7713_v35 }
 0x28f   : > { %5213 = vst.msk [vmem:[%s7735_s7 + $0x268] sm:$0xff] %vm5136_vm1, %v4956_v4  ;;  %v4957_v18 = vadd.f32 %v4434_v10, %v3311_v55  ;;  %v3312_v15 = vadd.f32 %v2790_v22, %v1666_v26  ;;  %v9177_v10 = vld [vmem:[#allocation134_spill] sm:$0xff]  ;;  %v9178_v55 = vld [vmem:[#allocation136_spill] sm:$0xff] }
 0x290   : > { %v2794_v28 = vpop.f32.mrf.mxu1  ;;  %5907 = vmatmul.mubr.msk.bf16.gmra.mxu1 %vm721_vm0, %v6514_v8  ;;  %v4440_v40 = vpop.f32.mrf.mxu0  ;;  %6189 = vmatmul.mubr.msk.bf16.gmra.mxu0 %vm721_vm0, %v6515_v36  ;;  %v1675_v8 = vadd.f32 %v9177_v10, %v7711_v29  ;;  %v1676_v22 = vadd.f32 %v9178_v55, %v7713_v35 }
 0x291   : > { %5214 = vst [vmem:[%s7735_s7 + $0x270] sm:$0xff] %v4957_v18  ;;  %v4958_v30 = vadd.f32 %v4436_v62, %v3312_v15  ;;  %v3313_v33 = vadd.f32 %v2794_v28, %v1667_v0  ;;  %3042 = vmatprep.mubr.bf16.mxu1 %v9121_v17  ;;  %4688 = vmatprep.mubr.bf16.mxu0 %v9121_v17  ;;  %v9179_v15 = vld [vmem:[#allocation138_spill] sm:$0xff] }
 0x292   : > { %v2796_v50 = vpop.f32.mrf.mxu1  ;;  %v4442_v19 = vpop.f32.mrf.mxu0  ;;  %v1677_v28 = vadd.f32 %v9179_v15, %v7711_v29 }
 0x293   : > { %5215 = vst.msk [vmem:[%s7735_s7 + $0x278] sm:$0xff] %vm5136_vm1, %v4958_v30  ;;  %v4959_v21 = vadd.f32 %v4440_v40, %v3313_v33  ;;  %v3314_v45 = vadd.f32 %v2796_v50, %v1668_v25  ;;  %v6520_v33 = vld [vmem:[%s6769_s8 + $0x198] sm:$0xff]  }
 0x294   : > { %v2798_v3 = vpop.f32.mrf.mxu1  ;;  %v4444_v52 = vpop.f32.mrf.mxu0  ;;  %v6521_v50 = vld [vmem:[%s6769_s8 + $0x1b8] sm:$0xff]  }
 0x295   : > { %5216 = vst [vmem:[%s7735_s7 + $0x280] sm:$0xff] %v4959_v21  ;;  %v4960_v54 = vadd.f32 %v4442_v19, %v3314_v45  ;;  %v3315_v32 = vadd.f32 %v2798_v3, %v1669_v63  ;;  %v9180_v19 = vld [vmem:[#allocation140_spill] sm:$0xff] }
 0x296   : > { %v2800_v23 = vpop.f32.mrf.mxu1  ;;  %v4446_v27 = vpop.f32.mrf.mxu0  ;;  %v1678_v38 = vadd.f32 %v9180_v19, %v7713_v35 }
 0x297   : > { %5217 = vst.msk [vmem:[%s7735_s7 + $0x288] sm:$0xff] %vm5136_vm1, %v4960_v54  ;;  %v4961_v37 = vadd.f32 %v4444_v52, %v3315_v32  ;;  %v3316_v20 = vadd.f32 %v2800_v23, %v1670_v2  ;;  %v9181_v52 = vld [vmem:[#allocation142_spill] sm:$0xff]  ;;  %v9182_v32 = vld [vmem:[#allocation144_spill] sm:$0xff] }
 0x298   : > { %v2804_v5 = vpop.f32.mrf.mxu1  ;;  %5908 = vmatmul.mubr.msk.bf16.gmra.mxu1 %vm721_vm0, %v6516_v57  ;;  %v4450_v44 = vpop.f32.mrf.mxu0  ;;  %6190 = vmatmul.mubr.msk.bf16.gmra.mxu0 %vm721_vm0, %v6517_v60  ;;  %v1679_v57 = vadd.f32 %v9181_v52, %v7711_v29  ;;  %v1680_v23 = vadd.f32 %v9182_v32, %v7713_v35 }
 0x299   : > { %5218 = vst [vmem:[%s7735_s7 + $0x290] sm:$0xff] %v4961_v37  ;;  %v4962_v14 = vadd.f32 %v4446_v27, %v3316_v20  ;;  %v3317_v31 = vadd.f32 %v2804_v5, %v1671_v16  ;;  %3052 = vmatprep.mubr.bf16.mxu1 %v9121_v17  ;;  %4698 = vmatprep.mubr.bf16.mxu0 %v9121_v17  ;;  %v9183_v20 = vld [vmem:[#allocation146_spill] sm:$0xff] }
 0x29a   : > { %v2806_v41 = vpop.f32.mrf.mxu1  ;;  %v4452_v53 = vpop.f32.mrf.mxu0  ;;  %v1681_v5 = vadd.f32 %v9183_v20, %v7711_v29 }
 0x29b   : > { %5219 = vst.msk [vmem:[%s7735_s7 + $0x298] sm:$0xff] %vm5136_vm1, %v4962_v14  ;;  %v4963_v47 = vadd.f32 %v4450_v44, %v3317_v31  ;;  %v3318_v11 = vadd.f32 %v2806_v41, %v1672_v56  ;;  %v6522_v31 = vld [vmem:[%s6769_s8 + $0x1a0] sm:$0xff]  }
 0x29c   : > { %v2808_v51 = vpop.f32.mrf.mxu1  ;;  %v4454_v6 = vpop.f32.mrf.mxu0  ;;  %v6523_v41 = vld [vmem:[%s6769_s8 + $0x1c0] sm:$0xff]  }
 0x29d   : > { %5220 = vst [vmem:[%s7735_s7 + $0x2a0] sm:$0xff] %v4963_v47  ;;  %v4964_v46 = vadd.f32 %v4452_v53, %v3318_v11  ;;  %v3319_v39 = vadd.f32 %v2808_v51, %v1673_v9  ;;  %v9184_v53 = vld [vmem:[#allocation148_spill] sm:$0xff] }
 0x29e   : > { %v2810_v58 = vpop.f32.mrf.mxu1  ;;  %v4456_v13 = vpop.f32.mrf.mxu0  ;;  %v1682_v43 = vadd.f32 %v9184_v53, %v7713_v35 }
 0x29f   : > { %5221 = vst.msk [vmem:[%s7735_s7 + $0x2a8] sm:$0xff] %vm5136_vm1, %v4964_v46  ;;  %v4965_v36 = vadd.f32 %v4454_v6, %v3319_v39  ;;  %v3320_v49 = vadd.f32 %v2810_v58, %v1674_v24  ;;  %v9185_v6 = vld [vmem:[#allocation150_spill] sm:$0xff]  ;;  %v9186_v39 = vld [vmem:[#allocation152_spill] sm:$0xff] }
 0x2a0   : > { %v2814_v26 = vpop.f32.mrf.mxu1  ;;  %5909 = vmatmul.mubr.msk.bf16.gmra.mxu1 %vm721_vm0, %v6518_v7  ;;  %v4460_v4 = vpop.f32.mrf.mxu0  ;;  %6191 = vmatmul.mubr.msk.bf16.gmra.mxu0 %vm721_vm0, %v6519_v61  ;;  %v1683_v7 = vadd.f32 %v9185_v6, %v7711_v29  ;;  %v1684_v58 = vadd.f32 %v9186_v39, %v7713_v35 }
 0x2a1   : > { %5222 = vst [vmem:[%s7735_s7 + $0x2b0] sm:$0xff] %v4965_v36  ;;  %v4966_v62 = vadd.f32 %v4456_v13, %v3320_v49  ;;  %v3321_v59 = vadd.f32 %v2814_v26, %v1675_v8  ;;  %3062 = vmatprep.mubr.bf16.mxu1 %v9121_v17  ;;  %4708 = vmatprep.mubr.bf16.mxu0 %v9121_v17  ;;  %v9187_v49 = vld [vmem:[#allocation154_spill] sm:$0xff] }
 0x2a2   : > { %v2816_v0 = vpop.f32.mrf.mxu1  ;;  %v4462_v18 = vpop.f32.mrf.mxu0  ;;  %v1685_v26 = vadd.f32 %v9187_v49, %v7711_v29 }
 0x2a3   : > { %5223 = vst.msk [vmem:[%s7735_s7 + $0x2b8] sm:$0xff] %vm5136_vm1, %v4966_v62  ;;  %v4967_v40 = vadd.f32 %v4460_v4, %v3321_v59  ;;  %v3322_v48 = vadd.f32 %v2816_v0, %v1676_v22  ;;  %v6524_v59 = vld [vmem:[%s6769_s8 + $0x1a8] sm:$0xff]  }
 0x2a4   : > { %v2818_v25 = vpop.f32.mrf.mxu1  ;;  %v4464_v30 = vpop.f32.mrf.mxu0  ;;  %v6525_v0 = vld [vmem:[%s6769_s8 + $0x1c8] sm:$0xff]  }
 0x2a5   : > { %5224 = vst [vmem:[%s7735_s7 + $0x2c0] sm:$0xff] %v4967_v40  ;;  %v4968_v63 = vadd.f32 %v4462_v18, %v3322_v48  ;;  %v3323_v21 = vadd.f32 %v2818_v25, %v1677_v28  ;;  %v9188_v18 = vld [vmem:[#allocation156_spill] sm:$0xff] }
 0x2a6   : > { %v2820_v45 = vpop.f32.mrf.mxu1  ;;  %v4466_v3 = vpop.f32.mrf.mxu0  ;;  %v1686_v15 = vadd.f32 %v9188_v18, %v7713_v35 }
 0x2a7   : > { %5225 = vst.msk [vmem:[%s7735_s7 + $0x2c8] sm:$0xff] %vm5136_vm1, %v4968_v63  ;;  %v4969_v60 = vadd.f32 %v4464_v30, %v3323_v21  ;;  %v3324_v12 = vadd.f32 %v2820_v45, %v1678_v38  ;;  %v9189_v30 = vld [vmem:[#allocation158_spill] sm:$0xff]  ;;  %v9190_v21 = vld [vmem:[#allocation160_spill] sm:$0xff] }
 0x2a8   : > { %v2824_v2 = vpop.f32.mrf.mxu1  ;;  %5910 = vmatmul.mubr.msk.bf16.gmra.mxu1 %vm721_vm0, %v6520_v33  ;;  %v4470_v54 = vpop.f32.mrf.mxu0  ;;  %6192 = vmatmul.mubr.msk.bf16.gmra.mxu0 %vm721_vm0, %v6521_v50  ;;  %v1687_v33 = vadd.f32 %v9189_v30, %v7711_v29  ;;  %v1688_v45 = vadd.f32 %v9190_v21, %v7713_v35 }
 0x2a9   : > { %5226 = vst [vmem:[%s7735_s7 + $0x2d0] sm:$0xff] %v4969_v60  ;;  %v4970_v27 = vadd.f32 %v4466_v3, %v3324_v12  ;;  %v3325_v42 = vadd.f32 %v2824_v2, %v1679_v57  ;;  %3072 = vmatprep.mubr.bf16.mxu1 %v9121_v17  ;;  %4718 = vmatprep.mubr.bf16.mxu0 %v9121_v17  ;;  %v9191_v12 = vld [vmem:[#allocation162_spill] sm:$0xff] }
 0x2aa   : > { %v2826_v16 = vpop.f32.mrf.mxu1  ;;  %v4472_v37 = vpop.f32.mrf.mxu0  ;;  %v1689_v2 = vadd.f32 %v9191_v12, %v7711_v29 }
 0x2ab   : > { %5227 = vst.msk [vmem:[%s7735_s7 + $0x2d8] sm:$0xff] %vm5136_vm1, %v4970_v27  ;;  %v4971_v44 = vadd.f32 %v4470_v54, %v3325_v42  ;;  %v3326_v34 = vadd.f32 %v2826_v16, %v1680_v23  ;;  %v6526_v42 = vld [vmem:[%s6769_s8 + $0x1b0] sm:$0xff]  }
 0x2ac   : > { %v2828_v56 = vpop.f32.mrf.mxu1  ;;  %v4474_v14 = vpop.f32.mrf.mxu0  ;;  %v6527_v16 = vld [vmem:[%s6769_s8 + $0x1d0] sm:$0xff]  }
 0x2ad   : > { %5228 = vst [vmem:[%s7735_s7 + $0x2e0] sm:$0xff] %v4971_v44  ;;  %v4972_v9 = vadd.f32 %v4472_v37, %v3326_v34  ;;  %v3327_v47 = vadd.f32 %v2828_v56, %v1681_v5  ;;  %v9192_v37 = vld [vmem:[#allocation164_spill] sm:$0xff] }
 0x2ae   : > { %v2830_v11 = vpop.f32.mrf.mxu1  ;;  %v4476_v51 = vpop.f32.mrf.mxu0  ;;  %v1690_v20 = vadd.f32 %v9192_v37, %v7713_v35 }
 0x2af   : > { %5229 = vst.msk [vmem:[%s7735_s7 + $0x2e8] sm:$0xff] %vm5136_vm1, %v4972_v9  ;;  %v4973_v61 = vadd.f32 %v4474_v14, %v3327_v47  ;;  %v3328_v1 = vadd.f32 %v2830_v11, %v1682_v43  ;;  %v9193_v14 = vld [vmem:[#allocation166_spill] sm:$0xff]  ;;  %v9194_v47 = vld [vmem:[#allocation168_spill] sm:$0xff] }
 0x2b0   : > { %v2834_v24 = vpop.f32.mrf.mxu1  ;;  %5911 = vmatmul.mubr.msk.bf16.gmra.mxu1 %vm721_vm0, %v6522_v31  ;;  %v4480_v46 = vpop.f32.mrf.mxu0  ;;  %6193 = vmatmul.mubr.msk.bf16.gmra.mxu0 %vm721_vm0, %v6523_v41  ;;  %v1691_v31 = vadd.f32 %v9193_v14, %v7711_v29  ;;  %v1692_v11 = vadd.f32 %v9194_v47, %v7713_v35 }
 0x2b1   : > { %5230 = vst [vmem:[%s7735_s7 + $0x2f0] sm:$0xff] %v4973_v61  ;;  %v4974_v13 = vadd.f32 %v4476_v51, %v3328_v1  ;;  %v3329_v10 = vadd.f32 %v2834_v24, %v1683_v7  ;;  %3082 = vmatprep.mubr.bf16.mxu1 %v9121_v17  ;;  %4728 = vmatprep.mubr.bf16.mxu0 %v9121_v17  ;;  %v9195_v1 = vld [vmem:[#allocation170_spill] sm:$0xff] }
 0x2b2   : > { %v2836_v8 = vpop.f32.mrf.mxu1  ;;  %v4482_v36 = vpop.f32.mrf.mxu0  ;;  %v1693_v24 = vadd.f32 %v9195_v1, %v7711_v29 }
 0x2b3   : > { %5231 = vst.msk [vmem:[%s7735_s7 + $0x2f8] sm:$0xff] %vm5136_vm1, %v4974_v13  ;;  %v4975_v4 = vadd.f32 %v4480_v46, %v3329_v10  ;;  %v3330_v55 = vadd.f32 %v2836_v8, %v1684_v58  ;;  %v6528_v10 = vld [vmem:[%s6769_s8 + $0x1b8] sm:$0xff]  }
 0x2b4   : > { %v2838_v22 = vpop.f32.mrf.mxu1  ;;  %v4484_v62 = vpop.f32.mrf.mxu0  ;;  %v6529_v8 = vld [vmem:[%s6769_s8 + $0x1d8] sm:$0xff]  }
 0x2b5   : > { %5232 = vst [vmem:[%s7735_s7 + $0x300] sm:$0xff] %v4975_v4  ;;  %v4976_v28 = vadd.f32 %v4482_v36, %v3330_v55  ;;  %v3331_v40 = vadd.f32 %v2838_v22, %v1685_v26  ;;  %v9196_v36 = vld [vmem:[#allocation172_spill] sm:$0xff] }
 0x2b6   : > { %v2840_v48 = vpop.f32.mrf.mxu1  ;;  %v4486_v25 = vpop.f32.mrf.mxu0  ;;  %v1694_v49 = vadd.f32 %v9196_v36, %v7713_v35 }
 0x2b7   : > { %5233 = vst.msk [vmem:[%s7735_s7 + $0x308] sm:$0xff] %vm5136_vm1, %v4976_v28  ;;  %v4977_v50 = vadd.f32 %v4484_v62, %v3331_v40  ;;  %v3332_v19 = vadd.f32 %v2840_v48, %v1686_v15  ;;  %v9197_v62 = vld [vmem:[#allocation174_spill] sm:$0xff]  ;;  %v9198_v40 = vld [vmem:[#allocation176_spill] sm:$0xff] }
 0x2b8   : > { %v2844_v38 = vpop.f32.mrf.mxu1  ;;  %5912 = vmatmul.mubr.msk.bf16.gmra.mxu1 %vm721_vm0, %v6524_v59  ;;  %v4490_v63 = vpop.f32.mrf.mxu0  ;;  %6194 = vmatmul.mubr.msk.bf16.gmra.mxu0 %vm721_vm0, %v6525_v0  ;;  %v1695_v59 = vadd.f32 %v9197_v62, %v7711_v29  ;;  %v1696_v48 = vadd.f32 %v9198_v40, %v7713_v35 }
 0x2b9   : > { %5234 = vst [vmem:[%s7735_s7 + $0x310] sm:$0xff] %v4977_v50  ;;  %v4978_v3 = vadd.f32 %v4486_v25, %v3332_v19  ;;  %v3333_v52 = vadd.f32 %v2844_v38, %v1687_v33  ;;  %3092 = vmatprep.mubr.bf16.mxu1 %v9121_v17  ;;  %4738 = vmatprep.mubr.bf16.mxu0 %v9121_v17  ;;  %v9199_v19 = vld [vmem:[#allocation178_spill] sm:$0xff] }
 0x2ba   : > { %v2846_v57 = vpop.f32.mrf.mxu1  ;;  %v4492_v60 = vpop.f32.mrf.mxu0  ;;  %v1697_v38 = vadd.f32 %v9199_v19, %v7711_v29 }
 0x2bb   : > { %5235 = vst.msk [vmem:[%s7735_s7 + $0x318] sm:$0xff] %vm5136_vm1, %v4978_v3  ;;  %v4979_v54 = vadd.f32 %v4490_v63, %v3333_v52  ;;  %v3334_v32 = vadd.f32 %v2846_v57, %v1688_v45  ;;  %v6530_v52 = vld [vmem:[%s6769_s8 + $0x1c0] sm:$0xff]  }
 0x2bc   : > { %v2848_v23 = vpop.f32.mrf.mxu1  ;;  %v4494_v27 = vpop.f32.mrf.mxu0  ;;  %v6531_v57 = vld [vmem:[%s6769_s8 + $0x1e0] sm:$0xff]  }
 0x2bd   : > { %5236 = vst [vmem:[%s7735_s7 + $0x320] sm:$0xff] %v4979_v54  ;;  %v4980_v5 = vadd.f32 %v4492_v60, %v3334_v32  ;;  %v3335_v44 = vadd.f32 %v2848_v23, %v1689_v2  ;;  %v9200_v60 = vld [vmem:[#allocation180_spill] sm:$0xff] }
 0x2be   : > { %v2850_v34 = vpop.f32.mrf.mxu1  ;;  %v4496_v56 = vpop.f32.mrf.mxu0  ;;  %v1698_v12 = vadd.f32 %v9200_v60, %v7713_v35 }
 0x2bf   : > { %5237 = vst.msk [vmem:[%s7735_s7 + $0x328] sm:$0xff] %vm5136_vm1, %v4980_v5  ;;  %v4981_v41 = vadd.f32 %v4494_v27, %v3335_v44  ;;  %v3336_v53 = vadd.f32 %v2850_v34, %v1690_v20  ;;  %v9201_v27 = vld [vmem:[#allocation182_spill] sm:$0xff]  ;;  %v9202_v44 = vld [vmem:[#allocation184_spill] sm:$0xff] }
 0x2c0   : > { %v2854_v43 = vpop.f32.mrf.mxu1  ;;  %5913 = vmatmul.mubr.msk.bf16.gmra.mxu1 %vm721_vm0, %v6526_v42  ;;  %v4500_v9 = vpop.f32.mrf.mxu0  ;;  %6195 = vmatmul.mubr.msk.bf16.gmra.mxu0 %vm721_vm0, %v6527_v16  ;;  %v1699_v42 = vadd.f32 %v9201_v27, %v7711_v29  ;;  %v1700_v34 = vadd.f32 %v9202_v44, %v7713_v35 }
 0x2c1   : > { %5238 = vst [vmem:[%s7735_s7 + $0x330] sm:$0xff] %v4981_v41  ;;  %v4982_v51 = vadd.f32 %v4496_v56, %v3336_v53  ;;  %v3337_v6 = vadd.f32 %v2854_v43, %v1691_v31  ;;  %3102 = vmatprep.mubr.bf16.mxu1 %v9121_v17  ;;  %4748 = vmatprep.mubr.bf16.mxu0 %v9121_v17  ;;  %v9203_v53 = vld [vmem:[#allocation186_spill] sm:$0xff] }
 0x2c2   : > { %v2856_v7 = vpop.f32.mrf.mxu1  ;;  %v4502_v61 = vpop.f32.mrf.mxu0  ;;  %v1701_v43 = vadd.f32 %v9203_v53, %v7711_v29 }
 0x2c3   : > { %5239 = vst.msk [vmem:[%s7735_s7 + $0x338] sm:$0xff] %vm5136_vm1, %v4982_v51  ;;  %v4983_v46 = vadd.f32 %v4500_v9, %v3337_v6  ;;  %v3338_v39 = vadd.f32 %v2856_v7, %v1692_v11  ;;  %v6532_v6 = vld [vmem:[%s6769_s8 + $0x1c8] sm:$0xff]  }
 0x2c4   : > { %v2858_v58 = vpop.f32.mrf.mxu1  ;;  %v4504_v13 = vpop.f32.mrf.mxu0  ;;  %v6533_v7 = vld [vmem:[%s6769_s8 + $0x1e8] sm:$0xff]  }
 0x2c5   : > { %5240 = vst [vmem:[%s7735_s7 + $0x340] sm:$0xff] %v4983_v46  ;;  %v4984_v26 = vadd.f32 %v4502_v61, %v3338_v39  ;;  %v3339_v4 = vadd.f32 %v2858_v58, %v1693_v24  ;;  %v9204_v61 = vld [vmem:[#allocation188_spill] sm:$0xff] }
 0x2c6   : > { %v2860_v55 = vpop.f32.mrf.mxu1  ;;  %v4506_v22 = vpop.f32.mrf.mxu0  ;;  %v1702_v1 = vadd.f32 %v9204_v61, %v7713_v35 }
 0x2c7   : > { %5241 = vst.msk [vmem:[%s7735_s7 + $0x348] sm:$0xff] %vm5136_vm1, %v4984_v26  ;;  %v4985_v0 = vadd.f32 %v4504_v13, %v3339_v4  ;;  %v3340_v18 = vadd.f32 %v2860_v55, %v1694_v49  ;;  %v9205_v13 = vld [vmem:[#allocation190_spill] sm:$0xff]  ;;  %v9206_v4 = vld [vmem:[#allocation192_spill] sm:$0xff] }
 0x2c8   : > { %v2864_v15 = vpop.f32.mrf.mxu1  ;;  %5914 = vmatmul.mubr.msk.bf16.gmra.mxu1 %vm721_vm0, %v6528_v10  ;;  %v4510_v28 = vpop.f32.mrf.mxu0  ;;  %6196 = vmatmul.mubr.msk.bf16.gmra.mxu0 %vm721_vm0, %v6529_v8  ;;  %v1703_v10 = vadd.f32 %v9205_v13, %v7711_v29  ;;  %v1704_v55 = vadd.f32 %v9206_v4, %v7713_v35 }
 0x2c9   : > { %5242 = vst [vmem:[%s7735_s7 + $0x350] sm:$0xff] %v4985_v0  ;;  %v4986_v25 = vadd.f32 %v4506_v22, %v3340_v18  ;;  %v3341_v30 = vadd.f32 %v2864_v15, %v1695_v59  ;;  %3112 = vmatprep.mubr.bf16.mxu1 %v9121_v17  ;;  %4758 = vmatprep.mubr.bf16.mxu0 %v9121_v17  ;;  %v9207_v18 = vld [vmem:[#allocation194_spill] sm:$0xff] }
 0x2ca   : > { %v2866_v33 = vpop.f32.mrf.mxu1  ;;  %v4512_v50 = vpop.f32.mrf.mxu0  ;;  %v1705_v15 = vadd.f32 %v9207_v18, %v7711_v29 }
 0x2cb   : > { %5243 = vst.msk [vmem:[%s7735_s7 + $0x358] sm:$0xff] %vm5136_vm1, %v4986_v25  ;;  %v4987_v63 = vadd.f32 %v4510_v28, %v3341_v30  ;;  %v3342_v21 = vadd.f32 %v2866_v33, %v1696_v48  ;;  %v6534_v30 = vld [vmem:[%s6769_s8 + $0x1d0] sm:$0xff]  }
 0x2cc   : > { %v2868_v45 = vpop.f32.mrf.mxu1  ;;  %v4514_v3 = vpop.f32.mrf.mxu0  ;;  %v6535_v33 = vld [vmem:[%s6769_s8 + $0x1f0] sm:$0xff]  }
 0x2cd   : > { %5244 = vst [vmem:[%s7735_s7 + $0x360] sm:$0xff] %v4987_v63  ;;  %v4988_v2 = vadd.f32 %v4512_v50, %v3342_v21  ;;  %v3343_v54 = vadd.f32 %v2868_v45, %v1697_v38  ;;  %v9208_v50 = vld [vmem:[#allocation196_spill] sm:$0xff] }
 0x2ce   : > { %v2870_v32 = vpop.f32.mrf.mxu1  ;;  %v4516_v23 = vpop.f32.mrf.mxu0  ;;  %v1706_v19 = vadd.f32 %v9208_v50, %v7713_v35 }
 0x2cf   : > { %5245 = vst.msk [vmem:[%s7735_s7 + $0x368] sm:$0xff] %vm5136_vm1, %v4988_v2  ;;  %v4989_v16 = vadd.f32 %v4514_v3, %v3343_v54  ;;  %v3344_v37 = vadd.f32 %v2870_v32, %v1698_v12  ;;  %v9209_v3 = vld [vmem:[#allocation198_spill] sm:$0xff]  ;;  %v9210_v54 = vld [vmem:[#allocation200_spill] sm:$0xff] }
 0x2d0   : > { %v2874_v20 = vpop.f32.mrf.mxu1  ;;  %5915 = vmatmul.mubr.msk.bf16.gmra.mxu1 %vm721_vm0, %v6530_v52  ;;  %v4520_v5 = vpop.f32.mrf.mxu0  ;;  %6197 = vmatmul.mubr.msk.bf16.gmra.mxu0 %vm721_vm0, %v6531_v57  ;;  %v1707_v52 = vadd.f32 %v9209_v3, %v7711_v29  ;;  %v1708_v32 = vadd.f32 %v9210_v54, %v7713_v35 }
 0x2d1   : > { %5246 = vst [vmem:[%s7735_s7 + $0x370] sm:$0xff] %v4989_v16  ;;  %v4990_v56 = vadd.f32 %v4516_v23, %v3344_v37  ;;  %v3345_v14 = vadd.f32 %v2874_v20, %v1699_v42  ;;  %3122 = vmatprep.mubr.bf16.mxu1 %v9121_v17  ;;  %4768 = vmatprep.mubr.bf16.mxu0 %v9121_v17  ;;  %v9211_v37 = vld [vmem:[#allocation202_spill] sm:$0xff] }
 0x2d2   : > { %v2876_v31 = vpop.f32.mrf.mxu1  ;;  %v4522_v41 = vpop.f32.mrf.mxu0  ;;  %v1709_v20 = vadd.f32 %v9211_v37, %v7711_v29 }
 0x2d3   : > { %5247 = vst.msk [vmem:[%s7735_s7 + $0x378] sm:$0xff] %vm5136_vm1, %v4990_v56  ;;  %v4991_v9 = vadd.f32 %v4520_v5, %v3345_v14  ;;  %v3346_v47 = vadd.f32 %v2876_v31, %v1700_v34  ;;  %v6536_v14 = vld [vmem:[%s6769_s8 + $0x1d8] sm:$0xff]  }
 0x2d4   : > { %v2878_v11 = vpop.f32.mrf.mxu1  ;;  %v4524_v51 = vpop.f32.mrf.mxu0  ;;  %v6537_v31 = vld [vmem:[%s6769_s8 + $0x1f8] sm:$0xff]  }
 0x2d5   : > { %5248 = vst [vmem:[%s7735_s7 + $0x380] sm:$0xff] %v4991_v9  ;;  %v4992_v24 = vadd.f32 %v4522_v41, %v3346_v47  ;;  %v3347_v46 = vadd.f32 %v2878_v11, %v1701_v43  ;;  %v9212_v41 = vld [vmem:[#allocation204_spill] sm:$0xff] }
 0x2d6   : > { %v2880_v39 = vpop.f32.mrf.mxu1  ;;  %v4526_v58 = vpop.f32.mrf.mxu0  ;;  %v1710_v53 = vadd.f32 %v9212_v41, %v7713_v35 }
 0x2d7   : > { %5249 = vst.msk [vmem:[%s7735_s7 + $0x388] sm:$0xff] %vm5136_vm1, %v4992_v24  ;;  %v4993_v8 = vadd.f32 %v4524_v51, %v3347_v46  ;;  %v3348_v36 = vadd.f32 %v2880_v39, %v1702_v1  ;;  %v9213_v51 = vld [vmem:[#allocation206_spill] sm:$0xff]  ;;  %v9214_v46 = vld [vmem:[#allocation208_spill] sm:$0xff] }
 0x2d8   : > { %v2884_v49 = vpop.f32.mrf.mxu1  ;;  %5916 = vmatmul.mubr.msk.bf16.gmra.mxu1 %vm721_vm0, %v6532_v6  ;;  %v4530_v26 = vpop.f32.mrf.mxu0  ;;  %6198 = vmatmul.mubr.msk.bf16.gmra.mxu0 %vm721_vm0, %v6533_v7  ;;  %v1711_v6 = vadd.f32 %v9213_v51, %v7711_v29  ;;  %v1712_v39 = vadd.f32 %v9214_v46, %v7713_v35 }
 0x2d9   : > { %5250 = vst [vmem:[%s7735_s7 + $0x390] sm:$0xff] %v4993_v8  ;;  %v4994_v22 = vadd.f32 %v4526_v58, %v3348_v36  ;;  %v3349_v62 = vadd.f32 %v2884_v49, %v1703_v10  ;;  %3132 = vmatprep.mubr.bf16.mxu1 %v9121_v17  ;;  %4778 = vmatprep.mubr.bf16.mxu0 %v9121_v17  ;;  %v9215_v36 = vld [vmem:[#allocation210_spill] sm:$0xff] }
 0x2da   : > { %v2886_v59 = vpop.f32.mrf.mxu1  ;;  %v4532_v0 = vpop.f32.mrf.mxu0  ;;  %v1713_v49 = vadd.f32 %v9215_v36, %v7711_v29 }
 0x2db   : > { %5251 = vst.msk [vmem:[%s7735_s7 + $0x398] sm:$0xff] %vm5136_vm1, %v4994_v22  ;;  %v4995_v28 = vadd.f32 %v4530_v26, %v3349_v62  ;;  %v3350_v40 = vadd.f32 %v2886_v59, %v1704_v55  ;;  %v6538_v62 = vld [vmem:[%s6769_s8 + $0x1e0] sm:$0xff]  }
 0x2dc   : > { %v2888_v48 = vpop.f32.mrf.mxu1  ;;  %v4534_v25 = vpop.f32.mrf.mxu0  ;;  %v6539_v59 = vld [vmem:[%s6769_s8 + $0x200] sm:$0xff]  }
 0x2dd   : > { %5252 = vst [vmem:[%s7735_s7 + $0x3a0] sm:$0xff] %v4995_v28  ;;  %v4996_v38 = vadd.f32 %v4532_v0, %v3350_v40  ;;  %v3351_v63 = vadd.f32 %v2888_v48, %v1705_v15  ;;  %v9216_v0 = vld [vmem:[#allocation212_spill] sm:$0xff] }
 0x2de   : > { %v2890_v21 = vpop.f32.mrf.mxu1  ;;  %v4536_v45 = vpop.f32.mrf.mxu0  ;;  %v1714_v18 = vadd.f32 %v9216_v0, %v7713_v35 }
 0x2df   : > { %5253 = vst.msk [vmem:[%s7735_s7 + $0x3a8] sm:$0xff] %vm5136_vm1, %v4996_v38  ;;  %v4997_v57 = vadd.f32 %v4534_v25, %v3351_v63  ;;  %v3352_v60 = vadd.f32 %v2890_v21, %v1706_v19  ;;  %v9217_v25 = vld [vmem:[#allocation5_spill] sm:$0xff]  ;;  %v9218_v63 = vld [vmem:[#allocation6_spill] sm:$0xff] }
 0x2e0   : > { %v2894_v12 = vpop.f32.mrf.mxu1  ;;  %5917 = vmatmul.mubr.msk.bf16.gmra.mxu1 %vm721_vm0, %v6534_v30  ;;  %v4540_v2 = vpop.f32.mrf.mxu0  ;;  %6199 = vmatmul.mubr.msk.bf16.gmra.mxu0 %vm721_vm0, %v6535_v33  ;;  %v1715_v30 = vadd.f32 %v9217_v25, %v7711_v29  ;;  %v1716_v21 = vadd.f32 %v9218_v63, %v7713_v35 }
 0x2e1   : > { %5254 = vst [vmem:[%s7735_s7 + $0x3b0] sm:$0xff] %v4997_v57  ;;  %v4998_v23 = vadd.f32 %v4536_v45, %v3352_v60  ;;  %v3353_v27 = vadd.f32 %v2894_v12, %v1707_v52  ;;  %3142 = vmatprep.mubr.bf16.mxu1 %v9121_v17  ;;  %4788 = vmatprep.mubr.bf16.mxu0 %v9121_v17  ;;  %v9219_v60 = vld [vmem:[#allocation7_spill] sm:$0xff] }
 0x2e2   : > { %v2896_v42 = vpop.f32.mrf.mxu1  ;;  %v4542_v16 = vpop.f32.mrf.mxu0  ;;  %v1717_v12 = vadd.f32 %v9219_v60, %v7711_v29 }
 0x2e3   : > { %5255 = vst.msk [vmem:[%s7735_s7 + $0x3b8] sm:$0xff] %vm5136_vm1, %v4998_v23  ;;  %v4999_v5 = vadd.f32 %v4540_v2, %v3353_v27  ;;  %v3354_v44 = vadd.f32 %v2896_v42, %v1708_v32  ;;  %v6540_v27 = vld [vmem:[%s6769_s8 + $0x1e8] sm:$0xff]  }
 0x2e4   : > { %v2898_v34 = vpop.f32.mrf.mxu1  ;;  %v4544_v56 = vpop.f32.mrf.mxu0  ;;  %v6541_v42 = vld [vmem:[%s6769_s8 + $0x208] sm:$0xff]  }
 0x2e5   : > { %5256 = vst [vmem:[%s7735_s7 + $0x3c0] sm:$0xff] %v4999_v5  ;;  %v5000_v43 = vadd.f32 %v4542_v16, %v3354_v44  ;;  %v3355_v9 = vadd.f32 %v2898_v34, %v1709_v20  ;;  %v9220_v16 = vld [vmem:[#allocation8_spill] sm:$0xff] }
 0x2e6   : > { %v2900_v47 = vpop.f32.mrf.mxu1  ;;  %v4546_v11 = vpop.f32.mrf.mxu0  ;;  %v1718_v37 = vadd.f32 %v9220_v16, %v7713_v35 }
 0x2e7   : > { %5257 = vst.msk [vmem:[%s7735_s7 + $0x3c8] sm:$0xff] %vm5136_vm1, %v5000_v43  ;;  %v5001_v7 = vadd.f32 %v4544_v56, %v3355_v9  ;;  %v3356_v61 = vadd.f32 %v2900_v47, %v1710_v53  ;;  %v9221_v56 = vld [vmem:[#allocation9_spill] sm:$0xff]  ;;  %v9222_v9 = vld [vmem:[#allocation10_spill] sm:$0xff] }
 0x2e8   : > { %v2904_v1 = vpop.f32.mrf.mxu1  ;;  %5918 = vmatmul.mubr.msk.bf16.gmra.mxu1 %vm721_vm0, %v6536_v14  ;;  %v4550_v24 = vpop.f32.mrf.mxu0  ;;  %6200 = vmatmul.mubr.msk.bf16.gmra.mxu0 %vm721_vm0, %v6537_v31  ;;  %v1719_v14 = vadd.f32 %v9221_v56, %v7711_v29  ;;  %v1720_v47 = vadd.f32 %v9222_v9, %v7713_v35 }
 0x2e9   : > { %5258 = vst [vmem:[%s7735_s7 + $0x3d0] sm:$0xff] %v5001_v7  ;;  %v5002_v58 = vadd.f32 %v4546_v11, %v3356_v61  ;;  %v3357_v13 = vadd.f32 %v2904_v1, %v1711_v6  ;;  %3152 = vmatprep.mubr.bf16.mxu1 %v9121_v17  ;;  %4798 = vmatprep.mubr.bf16.mxu0 %v9121_v17  ;;  %v9223_v61 = vld [vmem:[#allocation11_spill] sm:$0xff] }
 0x2ea   : > { %v2906_v10 = vpop.f32.mrf.mxu1  ;;  %v4552_v8 = vpop.f32.mrf.mxu0  ;;  %v1721_v1 = vadd.f32 %v9223_v61, %v7711_v29 }
 0x2eb   : > { %5259 = vst.msk [vmem:[%s7735_s7 + $0x3d8] sm:$0xff] %vm5136_vm1, %v5002_v58  ;;  %v5003_v26 = vadd.f32 %v4550_v24, %v3357_v13  ;;  %v3358_v4 = vadd.f32 %v2906_v10, %v1712_v39  ;;  %v6542_v13 = vld [vmem:[%s6769_s8 + $0x1f0] sm:$0xff]  }
 0x2ec   : > { %v2908_v55 = vpop.f32.mrf.mxu1  ;;  %v4554_v22 = vpop.f32.mrf.mxu0  ;;  %v6543_v10 = vld [vmem:[%s6769_s8 + $0x210] sm:$0xff]  }
 0x2ed   : > { %5260 = vst [vmem:[%s7735_s7 + $0x3e0] sm:$0xff] %v5003_v26  ;;  %v5004_v15 = vadd.f32 %v4552_v8, %v3358_v4  ;;  %v3359_v28 = vadd.f32 %v2908_v55, %v1713_v49  ;;  %v9224_v8 = vld [vmem:[#allocation12_spill] sm:$0xff] }
 0x2ee   : > { %v2910_v40 = vpop.f32.mrf.mxu1  ;;  %v4556_v48 = vpop.f32.mrf.mxu0  ;;  %v1722_v36 = vadd.f32 %v9224_v8, %v7713_v35 }
 0x2ef   : > { %5261 = vst.msk [vmem:[%s7735_s7 + $0x3e8] sm:$0xff] %vm5136_vm1, %v5004_v15  ;;  %v5005_v33 = vadd.f32 %v4554_v22, %v3359_v28  ;;  %v3360_v50 = vadd.f32 %v2910_v40, %v1714_v18  ;;  %v9225_v22 = vld [vmem:[#allocation13_spill] sm:$0xff]  ;;  %v9226_v28 = vld [vmem:[#allocation14_spill] sm:$0xff] }
 0x2f0   : > { %v2914_v19 = vpop.f32.mrf.mxu1  ;;  %5919 = vmatmul.mubr.msk.bf16.gmra.mxu1 %vm721_vm0, %v6538_v62  ;;  %v4560_v38 = vpop.f32.mrf.mxu0  ;;  %6201 = vmatmul.mubr.msk.bf16.gmra.mxu0 %vm721_vm0, %v6539_v59  ;;  %v1723_v62 = vadd.f32 %v9225_v22, %v7711_v29  ;;  %v1724_v40 = vadd.f32 %v9226_v28, %v7713_v35 }
 0x2f1   : > { %5262 = vst [vmem:[%s7735_s7 + $0x3f0] sm:$0xff] %v5005_v33  ;;  %v5006_v45 = vadd.f32 %v4556_v48, %v3360_v50  ;;  %v3361_v3 = vadd.f32 %v2914_v19, %v1715_v30  ;;  %3162 = vmatprep.mubr.bf16.mxu1 %v9121_v17  ;;  %4808 = vmatprep.mubr.bf16.mxu0 %v9121_v17  ;;  %v9227_v50 = vld [vmem:[#allocation15_spill] sm:$0xff] }
 0x2f2   : > { %v2916_v52 = vpop.f32.mrf.mxu1  ;;  %v4562_v57 = vpop.f32.mrf.mxu0  ;;  %v1725_v19 = vadd.f32 %v9227_v50, %v7711_v29 }
 0x2f3   : > { %5263 = vst.msk [vmem:[%s7735_s7 + $0x3f8] sm:$0xff] %vm5136_vm1, %v5006_v45  ;;  %v5007_v2 = vadd.f32 %v4560_v38, %v3361_v3  ;;  %v3362_v54 = vadd.f32 %v2916_v52, %v1716_v21  ;;  %v6544_v3 = vld [vmem:[%s6769_s8 + $0x1f8] sm:$0xff]  }
 0x2f4   : > { %v2918_v32 = vpop.f32.mrf.mxu1  ;;  %v4564_v23 = vpop.f32.mrf.mxu0  ;;  %v6545_v52 = vld [vmem:[%s6769_s8 + $0x218] sm:$0xff]  }
 0x2f5   : > { %5264 = vst [vmem:[%s7735_s7 + $0x400] sm:$0xff] %v5007_v2  ;;  %v5008_v20 = vadd.f32 %v4562_v57, %v3362_v54  ;;  %v3363_v5 = vadd.f32 %v2918_v32, %v1717_v12  ;;  %v9228_v57 = vld [vmem:[#allocation16_spill] sm:$0xff] }
 0x2f6   : > { %v2920_v44 = vpop.f32.mrf.mxu1  ;;  %v4566_v34 = vpop.f32.mrf.mxu0  ;;  %v1726_v60 = vadd.f32 %v9228_v57, %v7713_v35 }
 0x2f7   : > { %5265 = vst.msk [vmem:[%s7735_s7 + $0x408] sm:$0xff] %vm5136_vm1, %v5008_v20  ;;  %v5009_v31 = vadd.f32 %v4564_v23, %v3363_v5  ;;  %v3364_v41 = vadd.f32 %v2920_v44, %v1718_v37  ;;  %v9229_v23 = vld [vmem:[#allocation17_spill] sm:$0xff]  ;;  %v9230_v5 = vld [vmem:[#allocation18_spill] sm:$0xff] }
 0x2f8   : > { %v2924_v53 = vpop.f32.mrf.mxu1  ;;  %5920 = vmatmul.mubr.msk.bf16.gmra.mxu1 %vm721_vm0, %v6540_v27  ;;  %v4570_v43 = vpop.f32.mrf.mxu0  ;;  %6202 = vmatmul.mubr.msk.bf16.gmra.mxu0 %vm721_vm0, %v6541_v42  ;;  %v1727_v27 = vadd.f32 %v9229_v23, %v7711_v29  ;;  %v1728_v44 = vadd.f32 %v9230_v5, %v7713_v35 }
 0x2f9   : > { %5266 = vst [vmem:[%s7735_s7 + $0x410] sm:$0xff] %v5009_v31  ;;  %v5010_v11 = vadd.f32 %v4566_v34, %v3364_v41  ;;  %v3365_v51 = vadd.f32 %v2924_v53, %v1719_v14  ;;  %3172 = vmatprep.mubr.bf16.mxu1 %v9121_v17  ;;  %4818 = vmatprep.mubr.bf16.mxu0 %v9121_v17  ;;  %v9231_v41 = vld [vmem:[#allocation19_spill] sm:$0xff] }
 0x2fa   : > { %v2926_v6 = vpop.f32.mrf.mxu1  ;;  %v4572_v7 = vpop.f32.mrf.mxu0  ;;  %v1729_v53 = vadd.f32 %v9231_v41, %v7711_v29 }
 0x2fb   : > { %5267 = vst.msk [vmem:[%s7735_s7 + $0x418] sm:$0xff] %vm5136_vm1, %v5010_v11  ;;  %v5011_v24 = vadd.f32 %v4570_v43, %v3365_v51  ;;  %v3366_v46 = vadd.f32 %v2926_v6, %v1720_v47  ;;  %v6546_v51 = vld [vmem:[%s6769_s8 + $0x200] sm:$0xff]  }
 0x2fc   : > { %v2928_v39 = vpop.f32.mrf.mxu1  ;;  %v4574_v58 = vpop.f32.mrf.mxu0  ;;  %v6547_v6 = vld [vmem:[%s6769_s8 + $0x220] sm:$0xff]  }
 0x2fd   : > { %5268 = vst [vmem:[%s7735_s7 + $0x420] sm:$0xff] %v5011_v24  ;;  %v5012_v49 = vadd.f32 %v4572_v7, %v3366_v46  ;;  %v3367_v26 = vadd.f32 %v2928_v39, %v1721_v1  ;;  %v9232_v7 = vld [vmem:[#allocation20_spill] sm:$0xff] }
 0x2fe   : > { %v2930_v4 = vpop.f32.mrf.mxu1  ;;  %v4576_v55 = vpop.f32.mrf.mxu0  ;;  %v1730_v61 = vadd.f32 %v9232_v7, %v7713_v35 }
 0x2ff   : > { %5269 = vst.msk [vmem:[%s7735_s7 + $0x428] sm:$0xff] %vm5136_vm1, %v5012_v49  ;;  %v5013_v59 = vadd.f32 %v4574_v58, %v3367_v26  ;;  %v3368_v0 = vadd.f32 %v2930_v4, %v1722_v36  ;;  %v9233_v58 = vld [vmem:[#allocation21_spill] sm:$0xff]  ;;  %v9234_v26 = vld [vmem:[#allocation22_spill] sm:$0xff] }
 0x300   : > { %v2934_v18 = vpop.f32.mrf.mxu1  ;;  %5921 = vmatmul.mubr.msk.bf16.gmra.mxu1 %vm721_vm0, %v6542_v13  ;;  %v4580_v15 = vpop.f32.mrf.mxu0  ;;  %6203 = vmatmul.mubr.msk.bf16.gmra.mxu0 %vm721_vm0, %v6543_v10  ;;  %v1731_v13 = vadd.f32 %v9233_v58, %v7711_v29  ;;  %v1732_v4 = vadd.f32 %v9234_v26, %v7713_v35 }
 0x301   : > { %5270 = vst [vmem:[%s7735_s7 + $0x430] sm:$0xff] %v5013_v59  ;;  %v5014_v48 = vadd.f32 %v4576_v55, %v3368_v0  ;;  %v3369_v25 = vadd.f32 %v2934_v18, %v1723_v62  ;;  %3182 = vmatprep.mubr.bf16.mxu1 %v9121_v17  ;;  %4828 = vmatprep.mubr.bf16.mxu0 %v9121_v17  ;;  %v9235_v0 = vld [vmem:[#allocation23_spill] sm:$0xff] }
 0x302   : > { %v2936_v30 = vpop.f32.mrf.mxu1  ;;  %v4582_v33 = vpop.f32.mrf.mxu0  ;;  %v1733_v18 = vadd.f32 %v9235_v0, %v7711_v29 }
 0x303   : > { %5271 = vst.msk [vmem:[%s7735_s7 + $0x438] sm:$0xff] %vm5136_vm1, %v5014_v48  ;;  %v5015_v38 = vadd.f32 %v4580_v15, %v3369_v25  ;;  %v3370_v63 = vadd.f32 %v2936_v30, %v1724_v40  ;;  %v6548_v25 = vld [vmem:[%s6769_s8 + $0x208] sm:$0xff]  }
 0x304   : > { %v2938_v21 = vpop.f32.mrf.mxu1  ;;  %v4584_v45 = vpop.f32.mrf.mxu0  ;;  %v6549_v30 = vld [vmem:[%s6769_s8 + $0x228] sm:$0xff]  }
 0x305   : > { %5272 = vst [vmem:[%s7735_s7 + $0x440] sm:$0xff] %v5015_v38  ;;  %v5016_v12 = vadd.f32 %v4582_v33, %v3370_v63  ;;  %v3371_v2 = vadd.f32 %v2938_v21, %v1725_v19  ;;  %v9236_v33 = vld [vmem:[#allocation24_spill] sm:$0xff] }
 0x306   : > { %v2940_v54 = vpop.f32.mrf.mxu1  ;;  %v4586_v32 = vpop.f32.mrf.mxu0  ;;  %v1734_v50 = vadd.f32 %v9236_v33, %v7713_v35 }
 0x307   : > { %5273 = vst.msk [vmem:[%s7735_s7 + $0x448] sm:$0xff] %vm5136_vm1, %v5016_v12  ;;  %v5017_v42 = vadd.f32 %v4584_v45, %v3371_v2  ;;  %v3372_v16 = vadd.f32 %v2940_v54, %v1726_v60  ;;  %v9237_v45 = vld [vmem:[#allocation25_spill] sm:$0xff]  ;;  %v9238_v2 = vld [vmem:[#allocation26_spill] sm:$0xff] }
 0x308   : > { %v2944_v37 = vpop.f32.mrf.mxu1  ;;  %5922 = vmatmul.mubr.msk.bf16.gmra.mxu1 %vm721_vm0, %v6544_v3  ;;  %v4590_v20 = vpop.f32.mrf.mxu0  ;;  %6204 = vmatmul.mubr.msk.bf16.gmra.mxu0 %vm721_vm0, %v6545_v52  ;;  %v1735_v3 = vadd.f32 %v9237_v45, %v7711_v29  ;;  %v1736_v54 = vadd.f32 %v9238_v2, %v7713_v35 }
 0x309   : > { %5274 = vst [vmem:[%s7735_s7 + $0x450] sm:$0xff] %v5017_v42  ;;  %v5018_v34 = vadd.f32 %v4586_v32, %v3372_v16  ;;  %v3373_v56 = vadd.f32 %v2944_v37, %v1727_v27  ;;  %3192 = vmatprep.mubr.bf16.mxu1 %v9121_v17  ;;  %4838 = vmatprep.mubr.bf16.mxu0 %v9121_v17  ;;  %v9239_v16 = vld [vmem:[#allocation27_spill] sm:$0xff] }
 0x30a   : > { %v2946_v14 = vpop.f32.mrf.mxu1  ;;  %v4592_v31 = vpop.f32.mrf.mxu0  ;;  %v1737_v37 = vadd.f32 %v9239_v16, %v7711_v29 }
 0x30b   : > { %5275 = vst.msk [vmem:[%s7735_s7 + $0x458] sm:$0xff] %vm5136_vm1, %v5018_v34  ;;  %v5019_v43 = vadd.f32 %v4590_v20, %v3373_v56  ;;  %v3374_v9 = vadd.f32 %v2946_v14, %v1728_v44  ;;  %v6550_v56 = vld [vmem:[%s6769_s8 + $0x210] sm:$0xff]  }
 0x30c   : > { %v2948_v47 = vpop.f32.mrf.mxu1  ;;  %v4594_v11 = vpop.f32.mrf.mxu0  ;;  %v6551_v14 = vld [vmem:[%s6769_s8 + $0x230] sm:$0xff]  }
 0x30d   : > { %5276 = vst [vmem:[%s7735_s7 + $0x460] sm:$0xff] %v5019_v43  ;;  %v5020_v1 = vadd.f32 %v4592_v31, %v3374_v9  ;;  %v3375_v24 = vadd.f32 %v2948_v47, %v1729_v53  ;;  %v9240_v31 = vld [vmem:[#allocation28_spill] sm:$0xff] }
 0x30e   : > { %v2950_v46 = vpop.f32.mrf.mxu1  ;;  %v4596_v39 = vpop.f32.mrf.mxu0  ;;  %v1738_v41 = vadd.f32 %v9240_v31, %v7713_v35  ;;  %v9250_v31 = vld [vmem:[#allocation38_spill] sm:$0xff] }
 0x30f   : > { %5277 = vst.msk [vmem:[%s7735_s7 + $0x468] sm:$0xff] %vm5136_vm1, %v5020_v1  ;;  %v5021_v10 = vadd.f32 %v4594_v11, %v3375_v24  ;;  %v3376_v8 = vadd.f32 %v2950_v46, %v1730_v61  ;;  %v9241_v11 = vld [vmem:[#allocation29_spill] sm:$0xff]  ;;  %v9242_v24 = vld [vmem:[#allocation30_spill] sm:$0xff] }
 0x310   : > { %v2954_v36 = vpop.f32.mrf.mxu1  ;;  %5923 = vmatmul.mubr.msk.bf16.gmra.mxu1 %vm721_vm0, %v6546_v51  ;;  %v4600_v49 = vpop.f32.mrf.mxu0  ;;  %6205 = vmatmul.mubr.msk.bf16.gmra.mxu0 %vm721_vm0, %v6547_v6  ;;  %v1739_v51 = vadd.f32 %v9241_v11, %v7711_v29  ;;  %v1740_v46 = vadd.f32 %v9242_v24, %v7713_v35  ;;  %v9251_v11 = vld [vmem:[#allocation39_spill] sm:$0xff]  ;;  %v9252_v24 = vld [vmem:[#allocation40_spill] sm:$0xff] }
 0x311   : > { %5278 = vst [vmem:[%s7735_s7 + $0x470] sm:$0xff] %v5021_v10  ;;  %v5022_v55 = vadd.f32 %v4596_v39, %v3376_v8  ;;  %v3377_v22 = vadd.f32 %v2954_v36, %v1731_v13  ;;  %3202 = vmatprep.mubr.bf16.mxu1 %v9121_v17  ;;  %4848 = vmatprep.mubr.bf16.mxu0 %v9121_v17  ;;  %v9243_v8 = vld [vmem:[#allocation31_spill] sm:$0xff] }
 0x312   : > { %v2956_v62 = vpop.f32.mrf.mxu1  ;;  %v4602_v59 = vpop.f32.mrf.mxu0  ;;  %v1741_v36 = vadd.f32 %v9243_v8, %v7711_v29  ;;  %v9253_v8 = vld [vmem:[#allocation41_spill] sm:$0xff] }
 0x313   : > { %5279 = vst.msk [vmem:[%s7735_s7 + $0x478] sm:$0xff] %vm5136_vm1, %v5022_v55  ;;  %v5023_v15 = vadd.f32 %v4600_v49, %v3377_v22  ;;  %v3378_v28 = vadd.f32 %v2956_v62, %v1732_v4  ;;  %v6552_v22 = vld [vmem:[%s6769_s8 + $0x218] sm:$0xff]  }
 0x314   : > { %v2958_v40 = vpop.f32.mrf.mxu1  ;;  %v4604_v48 = vpop.f32.mrf.mxu0  ;;  %v6553_v62 = vld [vmem:[%s6769_s8 + $0x238] sm:$0xff]   ;;  %s6220_s8 = sshll.u32 %s6630_s15, 8 }
 0x315   : > { %5280 = vst [vmem:[%s7735_s7 + $0x480] sm:$0xff] %v5023_v15  ;;  %v5024_v19 = vadd.f32 %v4602_v59, %v3378_v28  ;;  %v3379_v38 = vadd.f32 %v2958_v40, %v1733_v18  ;;  %v9244_v59 = vld [vmem:[#allocation32_spill] sm:$0xff]  ;;  %v9245_v40 = vld [vmem:[#allocation33_spill] sm:$0xff]  ;;  %s5406_s11 = sadd.s32 %s6220_s8, %s6212_s9 }
 0x316   : > { %v2960_v63 = vpop.f32.mrf.mxu1  ;;  %v4606_v21 = vpop.f32.mrf.mxu0  ;;  %v1742_v0 = vadd.f32 %v9244_v59, %v7713_v35  ;;  %s6213_s15 = sshll.u32 %s5406_s11, 7 }
 0x317   : > { %5281 = vst.msk [vmem:[%s7735_s7 + $0x488] sm:$0xff] %vm5136_vm1, %v5024_v19  ;;  %v5025_v52 = vadd.f32 %v4604_v48, %v3379_v38  ;;  %v3380_v57 = vadd.f32 %v2960_v63, %v1734_v50  ;;  %v1743_v48 = vadd.f32 %v9245_v40, %v7711_v29  ;;  %v9246_v19 = vld [vmem:[#allocation34_spill] sm:$0xff]  ;;  %s8858_s21 = scalar_lea.hbm %s8921_s3, %s6213_s15 }
 0x318   : > { %v2964_v60 = vpop.f32.mrf.mxu1  ;;  %5924 = vmatmul.mubr.msk.bf16.gmra.mxu1 %vm721_vm0, %v6548_v25  ;;  %v4610_v12 = vpop.f32.mrf.mxu0  ;;  %6206 = vmatmul.mubr.msk.bf16.gmra.mxu0 %vm721_vm0, %v6549_v30  ;;  %v1744_v38 = vadd.f32 %v9246_v19, %v7713_v35 }
 0x319   : > { %5282 = vst [vmem:[%s7735_s7 + $0x490] sm:$0xff] %v5025_v52  ;;  %v5026_v32 = vadd.f32 %v4606_v21, %v3380_v57  ;;  %v3381_v23 = vadd.f32 %v2964_v60, %v1735_v3  ;;  %3212 = vmatprep.mubr.bf16.mxu1 %v9121_v17  ;;  %4858 = vmatprep.mubr.bf16.mxu0 %v9121_v17  ;;  %v9247_v52 = vld [vmem:[#allocation35_spill] sm:$0xff] }
 0x31a   : > { %v2966_v27 = vpop.f32.mrf.mxu1  ;;  %v4612_v42 = vpop.f32.mrf.mxu0  ;;  %v1745_v57 = vadd.f32 %v9247_v52, %v7711_v29 }
 0x31b   : > { %5283 = vst.msk [vmem:[%s7735_s7 + $0x498] sm:$0xff] %vm5136_vm1, %v5026_v32  ;;  %v5027_v20 = vadd.f32 %v4610_v12, %v3381_v23  ;;  %v3382_v5 = vadd.f32 %v2966_v27, %v1736_v54  ;;  %v9248_v32 = vld [vmem:[#allocation36_spill] sm:$0xff] }
 0x31c   : > { %v2968_v44 = vpop.f32.mrf.mxu1  ;;  %v4614_v34 = vpop.f32.mrf.mxu0  ;;  %v1746_v23 = vadd.f32 %v9248_v32, %v7713_v35 }
 0x31d   : > { %5284 = vst [vmem:[%s7735_s7 + $0x4a0] sm:$0xff] %v5027_v20  ;;  %v5028_v53 = vadd.f32 %v4612_v42, %v3382_v5  ;;  %v3383_v43 = vadd.f32 %v2968_v44, %v1737_v37  ;;  %v9249_v20 = vld [vmem:[#allocation37_spill] sm:$0xff] }
 0x31e   : > { %v2970_v9 = vpop.f32.mrf.mxu1  ;;  %v4616_v47 = vpop.f32.mrf.mxu0  ;;  %v1747_v5 = vadd.f32 %v9249_v20, %v7711_v29 }
 0x31f   : > { %5285 = vst.msk [vmem:[%s7735_s7 + $0x4a8] sm:$0xff] %vm5136_vm1, %v5028_v53  ;;  %v5029_v6 = vadd.f32 %v4614_v34, %v3383_v43  ;;  %v3384_v7 = vadd.f32 %v2970_v9, %v1738_v41  ;;  %v1748_v41 = vadd.f32 %v9250_v31, %v7713_v35 }
 0x320   : > { %v2974_v61 = vpop.f32.mrf.mxu1  ;;  %5925 = vmatmul.mubr.msk.bf16.gmra.mxu1 %vm721_vm0, %v6550_v56  ;;  %v4620_v1 = vpop.f32.mrf.mxu0  ;;  %6207 = vmatmul.mubr.msk.bf16.gmra.mxu0 %vm721_vm0, %v6551_v14 }
 0x321   : > { %5286 = vst [vmem:[%s7735_s7 + $0x4b0] sm:$0xff] %v5029_v6  ;;  %v5030_v39 = vadd.f32 %v4616_v47, %v3384_v7  ;;  %v3385_v58 = vadd.f32 %v2974_v61, %v1739_v51  ;;  %3222 = vmatprep.mubr.bf16.mxu1 %v9121_v17  ;;  %4868 = vmatprep.mubr.bf16.mxu0 %v9121_v17 }
 0x322   : > { %v2976_v13 = vpop.f32.mrf.mxu1  ;;  %v4622_v10 = vpop.f32.mrf.mxu0  ;;  %v1749_v51 = vadd.f32 %v9251_v11, %v7711_v29 }
 0x323   : > { %5287 = vst.msk [vmem:[%s7735_s7 + $0x4b8] sm:$0xff] %vm5136_vm1, %v5030_v39  ;;  %v5031_v49 = vadd.f32 %v4620_v1, %v3385_v58  ;;  %v3386_v26 = vadd.f32 %v2976_v13, %v1740_v46  ;;  %v1750_v46 = vadd.f32 %v9252_v24, %v7713_v35 }
 0x324   : > { %v2978_v4 = vpop.f32.mrf.mxu1  ;;  %v4624_v55 = vpop.f32.mrf.mxu0 }
 0x325   : > { %5288 = vst [vmem:[%s7735_s7 + $0x4c0] sm:$0xff] %v5031_v49  ;;  %v5032_v17 = vadd.f32 %v4622_v10, %v3386_v26  ;;  %v3387_v18 = vadd.f32 %v2978_v4, %v1741_v36  ;;  %v1751_v36 = vadd.f32 %v9253_v8, %v7711_v29 }
 0x326   : > { %v2980_v15 = vpop.f32.mrf.mxu1  ;;  %v4626_v28 = vpop.f32.mrf.mxu0 }
 0x327   : > { %5289 = vst.msk [vmem:[%s7735_s7 + $0x4c8] sm:$0xff] %vm5136_vm1, %v5032_v17  ;;  %v5033_v25 = vadd.f32 %v4624_v55, %v3387_v18  ;;  %v3388_v30 = vadd.f32 %v2980_v15, %v1742_v0  ;;  %v9255_v15 = vld [vmem:[#allocation43_spill] sm:$0xff] }
 0x328   : > { %v2984_v33 = vpop.f32.mrf.mxu1  ;;  %5926 = vmatmul.mubr.msk.bf16.gmra.mxu1 %vm721_vm0, %v6552_v22  ;;  %v4630_v50 = vpop.f32.mrf.mxu0  ;;  %6208 = vmatmul.mubr.msk.bf16.gmra.mxu0 %vm721_vm0, %v6553_v62  ;;  %v9254_v22 = vld [vmem:[#allocation42_spill] sm:$0xff] }
 0x329   : > { %5290 = vst [vmem:[%s7735_s7 + $0x4d0] sm:$0xff] %v5033_v25  ;;  %v5034_v63 = vadd.f32 %v4626_v28, %v3388_v30  ;;  %v3389_v21 = vadd.f32 %v2984_v33, %v1743_v48  ;;  %v1752_v62 = vadd.f32 %v9254_v22, %v7713_v35  ;;  %v1753_v28 = vadd.f32 %v9255_v15, %v7711_v29  ;;  %v9256_v33 = vld [vmem:[#allocation44_spill] sm:$0xff] }
 0x32a   : > { %v2986_v45 = vpop.f32.mrf.mxu1  ;;  %v4632_v3 = vpop.f32.mrf.mxu0 }
 0x32b   : > { %5291 = vst.msk [vmem:[%s7735_s7 + $0x4d8] sm:$0xff] %vm5136_vm1, %v5034_v63  ;;  %v5035_v60 = vadd.f32 %v4630_v50, %v3389_v21  ;;  %v3390_v12 = vadd.f32 %v2986_v45, %v1744_v38  ;;  %v1754_v50 = vadd.f32 %v9256_v33, %v7713_v35  ;;  %v9257_v45 = vld [vmem:[#allocation45_spill] sm:$0xff] }
 0x32c   : > { %v2988_v2 = vpop.f32.mrf.mxu1  ;;  %v4634_v54 = vpop.f32.mrf.mxu0 }
 0x32d   : > { %5292 = vst [vmem:[%s7735_s7 + $0x4e0] sm:$0xff] %v5035_v60  ;;  %v5036_v27 = vadd.f32 %v4632_v3, %v3390_v12  ;;  %v3391_v42 = vadd.f32 %v2988_v2, %v1745_v57  ;;  %v1755_v3 = vadd.f32 %v9257_v45, %v7711_v29  ;;  %v9258_v2 = vld [vmem:[#allocation46_spill] sm:$0xff] }
 0x32e   : > { %v2990_v16 = vpop.f32.mrf.mxu1  ;;  %v4636_v37 = vpop.f32.mrf.mxu0 }
 0x32f   : > { %5293 = vst.msk [vmem:[%s7735_s7 + $0x4e8] sm:$0xff] %vm5136_vm1, %v5036_v27  ;;  %v5037_v44 = vadd.f32 %v4634_v54, %v3391_v42  ;;  %v3392_v34 = vadd.f32 %v2990_v16, %v1746_v23  ;;  %v1756_v54 = vadd.f32 %v9258_v2, %v7713_v35  ;;  %v9259_v16 = vld [vmem:[#allocation47_spill] sm:$0xff] }
 0x330   : > { %v2994_v56 = vpop.f32.mrf.mxu1  ;;  %v4640_v14 = vpop.f32.mrf.mxu0 }
 0x331   : > { %5294 = vst [vmem:[%s7735_s7 + $0x4f0] sm:$0xff] %v5037_v44  ;;  %v5038_v53 = vadd.f32 %v4636_v37, %v3392_v34  ;;  %v3393_v43 = vadd.f32 %v2994_v56, %v1747_v5  ;;  %v1757_v37 = vadd.f32 %v9259_v16, %v7711_v29  ;;  %v9260_v56 = vld [vmem:[#allocation48_spill] sm:$0xff] }
 0x332   : > { %v2996_v9 = vpop.f32.mrf.mxu1  ;;  %v4642_v47 = vpop.f32.mrf.mxu0 }
 0x333   : > { %5295 = vst.msk [vmem:[%s7735_s7 + $0x4f8] sm:$0xff] %vm5136_vm1, %v5038_v53  ;;  %v5039_v6 = vadd.f32 %v4640_v14, %v3393_v43  ;;  %v3394_v7 = vadd.f32 %v2996_v9, %v1748_v41  ;;  %v1758_v14 = vadd.f32 %v9260_v56, %v7713_v35  ;;  %v9261_v9 = vld [vmem:[#allocation49_spill] sm:$0xff] }
 0x334   : > { %v2998_v61 = vpop.f32.mrf.mxu1  ;;  %v4644_v1 = vpop.f32.mrf.mxu0 }
 0x335   : > { %5296 = vst [vmem:[%s7735_s7 + $0x500] sm:$0xff] %v5039_v6  ;;  %v5040_v39 = vadd.f32 %v4642_v47, %v3394_v7  ;;  %v3395_v58 = vadd.f32 %v2998_v61, %v1749_v51  ;;  %v1759_v47 = vadd.f32 %v9261_v9, %v7711_v29  ;;  %v9262_v61 = vld [vmem:[#allocation50_spill] sm:$0xff] }
 0x336   : > { %v3000_v13 = vpop.f32.mrf.mxu1  ;;  %v4646_v10 = vpop.f32.mrf.mxu0 }
 0x337   : > { %5297 = vst.msk [vmem:[%s7735_s7 + $0x508] sm:$0xff] %vm5136_vm1, %v5040_v39  ;;  %v5041_v49 = vadd.f32 %v4644_v1, %v3395_v58  ;;  %v3396_v26 = vadd.f32 %v3000_v13, %v1750_v46  ;;  %v1760_v1 = vadd.f32 %v9262_v61, %v7713_v35  ;;  %v9263_v13 = vld [vmem:[#allocation51_spill] sm:$0xff] }
 0x338   : > { %v3004_v4 = vpop.f32.mrf.mxu1  ;;  %v4650_v55 = vpop.f32.mrf.mxu0 }
 0x339   : > { %5298 = vst [vmem:[%s7735_s7 + $0x510] sm:$0xff] %v5041_v49  ;;  %v5042_v59 = vadd.f32 %v4646_v10, %v3396_v26  ;;  %v3397_v0 = vadd.f32 %v3004_v4, %v1751_v36  ;;  %v1761_v10 = vadd.f32 %v9263_v13, %v7711_v29  ;;  %v9264_v4 = vld [vmem:[#allocation53_spill] sm:$0xff] }
 0x33a   : > { %v3006_v17 = vpop.f32.mrf.mxu1  ;;  %v4652_v18 = vpop.f32.mrf.mxu0 }
 0x33b   : > { %5299 = vst.msk [vmem:[%s7735_s7 + $0x518] sm:$0xff] %vm5136_vm1, %v5042_v59  ;;  %v5043_v40 = vadd.f32 %v4650_v55, %v3397_v0  ;;  %v3398_v48 = vadd.f32 %v3006_v17, %v1752_v62  ;;  %v1762_v55 = vadd.f32 %v9264_v4, %v7713_v35  ;;  %v9265_v17 = vld [vmem:[#allocation55_spill] sm:$0xff] }
 0x33c   : > { %v3008_v25 = vpop.f32.mrf.mxu1  ;;  %v4654_v30 = vpop.f32.mrf.mxu0 }
 0x33d   : > { %5300 = vst [vmem:[%s7735_s7 + $0x520] sm:$0xff] %v5043_v40  ;;  %v5044_v19 = vadd.f32 %v4652_v18, %v3398_v48  ;;  %v3399_v38 = vadd.f32 %v3008_v25, %v1753_v28  ;;  %v1763_v18 = vadd.f32 %v9265_v17, %v7711_v29  ;;  %v9266_v25 = vld [vmem:[#allocation57_spill] sm:$0xff] }
 0x33e   : > { %v3010_v63 = vpop.f32.mrf.mxu1  ;;  %v4656_v21 = vpop.f32.mrf.mxu0 }
 0x33f   : > { %5301 = vst.msk [vmem:[%s7735_s7 + $0x528] sm:$0xff] %vm5136_vm1, %v5044_v19  ;;  %v5045_v52 = vadd.f32 %v4654_v30, %v3399_v38  ;;  %v3400_v57 = vadd.f32 %v3010_v63, %v1754_v50  ;;  %v1764_v30 = vadd.f32 %v9266_v25, %v7713_v35  ;;  %v9267_v63 = vld [vmem:[#allocation59_spill] sm:$0xff] }
 0x340   : > { %v3014_v60 = vpop.f32.mrf.mxu1  ;;  %v4660_v12 = vpop.f32.mrf.mxu0 }
 0x341   : > { %5302 = vst [vmem:[%s7735_s7 + $0x530] sm:$0xff] %v5045_v52  ;;  %v5046_v32 = vadd.f32 %v4656_v21, %v3400_v57  ;;  %v3401_v23 = vadd.f32 %v3014_v60, %v1755_v3  ;;  %v1765_v21 = vadd.f32 %v9267_v63, %v7711_v29  ;;  %v9268_v60 = vld [vmem:[#allocation61_spill] sm:$0xff] }
 0x342   : > { %v3016_v27 = vpop.f32.mrf.mxu1  ;;  %v4662_v42 = vpop.f32.mrf.mxu0 }
 0x343   : > { %5303 = vst.msk [vmem:[%s7735_s7 + $0x538] sm:$0xff] %vm5136_vm1, %v5046_v32  ;;  %v5047_v20 = vadd.f32 %v4660_v12, %v3401_v23  ;;  %v3402_v5 = vadd.f32 %v3016_v27, %v1756_v54  ;;  %v1766_v12 = vadd.f32 %v9268_v60, %v7713_v35  ;;  %v9269_v27 = vld [vmem:[#allocation63_spill] sm:$0xff] }
 0x344   : > { %v3018_v44 = vpop.f32.mrf.mxu1  ;;  %v4664_v34 = vpop.f32.mrf.mxu0 }
 0x345   : > { %5304 = vst [vmem:[%s7735_s7 + $0x540] sm:$0xff] %v5047_v20  ;;  %v5048_v31 = vadd.f32 %v4662_v42, %v3402_v5  ;;  %v3403_v41 = vadd.f32 %v3018_v44, %v1757_v37  ;;  %v1767_v42 = vadd.f32 %v9269_v27, %v7711_v29  ;;  %v9270_v44 = vld [vmem:[#allocation65_spill] sm:$0xff] }
 0x346   : > { %v3020_v53 = vpop.f32.mrf.mxu1  ;;  %v4666_v43 = vpop.f32.mrf.mxu0 }
 0x347   : > { %5305 = vst.msk [vmem:[%s7735_s7 + $0x548] sm:$0xff] %vm5136_vm1, %v5048_v31  ;;  %v5049_v11 = vadd.f32 %v4664_v34, %v3403_v41  ;;  %v3404_v51 = vadd.f32 %v3020_v53, %v1758_v14  ;;  %v1768_v34 = vadd.f32 %v9270_v44, %v7713_v35  ;;  %v9271_v53 = vld [vmem:[#allocation67_spill] sm:$0xff] }
 0x348   : > { %v3024_v6 = vpop.f32.mrf.mxu1  ;;  %v4670_v7 = vpop.f32.mrf.mxu0 }
 0x349   : > { %5306 = vst [vmem:[%s7735_s7 + $0x550] sm:$0xff] %v5049_v11  ;;  %v5050_v24 = vadd.f32 %v4666_v43, %v3404_v51  ;;  %v3405_v46 = vadd.f32 %v3024_v6, %v1759_v47  ;;  %v1769_v43 = vadd.f32 %v9271_v53, %v7711_v29  ;;  %v9272_v6 = vld [vmem:[#allocation69_spill] sm:$0xff] }
 0x34a   : > { %v3026_v39 = vpop.f32.mrf.mxu1  ;;  %v4672_v58 = vpop.f32.mrf.mxu0 }
 0x34b   : > { %5307 = vst.msk [vmem:[%s7735_s7 + $0x558] sm:$0xff] %vm5136_vm1, %v5050_v24  ;;  %v5051_v8 = vadd.f32 %v4670_v7, %v3405_v46  ;;  %v3406_v36 = vadd.f32 %v3026_v39, %v1760_v1  ;;  %v1770_v7 = vadd.f32 %v9272_v6, %v7713_v35  ;;  %v9273_v39 = vld [vmem:[#allocation71_spill] sm:$0xff] }
 0x34c   : > { %v3028_v49 = vpop.f32.mrf.mxu1  ;;  %v4674_v26 = vpop.f32.mrf.mxu0 }
 0x34d   : > { %5308 = vst [vmem:[%s7735_s7 + $0x560] sm:$0xff] %v5051_v8  ;;  %v5052_v22 = vadd.f32 %v4672_v58, %v3406_v36  ;;  %v3407_v62 = vadd.f32 %v3028_v49, %v1761_v10  ;;  %v1771_v58 = vadd.f32 %v9273_v39, %v7711_v29  ;;  %v9274_v49 = vld [vmem:[#allocation73_spill] sm:$0xff] }
 0x34e   : > { %v3030_v59 = vpop.f32.mrf.mxu1  ;;  %v4676_v0 = vpop.f32.mrf.mxu0 }
 0x34f   : > { %5309 = vst.msk [vmem:[%s7735_s7 + $0x568] sm:$0xff] %vm5136_vm1, %v5052_v22  ;;  %v5053_v15 = vadd.f32 %v4674_v26, %v3407_v62  ;;  %v3408_v28 = vadd.f32 %v3030_v59, %v1762_v55  ;;  %v1772_v26 = vadd.f32 %v9274_v49, %v7713_v35  ;;  %v9275_v59 = vld [vmem:[#allocation75_spill] sm:$0xff] }
 0x350   : > { %v3034_v40 = vpop.f32.mrf.mxu1  ;;  %v4680_v48 = vpop.f32.mrf.mxu0 }
 0x351   : > { %5310 = vst [vmem:[%s7735_s7 + $0x570] sm:$0xff] %v5053_v15  ;;  %v5054_v33 = vadd.f32 %v4676_v0, %v3408_v28  ;;  %v3409_v50 = vadd.f32 %v3034_v40, %v1763_v18  ;;  %v1773_v0 = vadd.f32 %v9275_v59, %v7711_v29  ;;  %v9276_v40 = vld [vmem:[#allocation77_spill] sm:$0xff] }
 0x352   : > { %v3036_v19 = vpop.f32.mrf.mxu1  ;;  %v4682_v38 = vpop.f32.mrf.mxu0 }
 0x353   : > { %5311 = vst.msk [vmem:[%s7735_s7 + $0x578] sm:$0xff] %vm5136_vm1, %v5054_v33  ;;  %v5055_v45 = vadd.f32 %v4680_v48, %v3409_v50  ;;  %v3410_v3 = vadd.f32 %v3036_v19, %v1764_v30  ;;  %v1774_v48 = vadd.f32 %v9276_v40, %v7713_v35  ;;  %v9277_v19 = vld [vmem:[#allocation79_spill] sm:$0xff] }
 0x354   : > { %v3038_v52 = vpop.f32.mrf.mxu1  ;;  %v4684_v57 = vpop.f32.mrf.mxu0 }
 0x355   : > { %5312 = vst [vmem:[%s7735_s7 + $0x580] sm:$0xff] %v5055_v45  ;;  %v5056_v2 = vadd.f32 %v4682_v38, %v3410_v3  ;;  %v3411_v54 = vadd.f32 %v3038_v52, %v1765_v21  ;;  %v1775_v38 = vadd.f32 %v9277_v19, %v7711_v29  ;;  %v9278_v52 = vld [vmem:[#allocation81_spill] sm:$0xff] }
 0x356   : > { %v3040_v32 = vpop.f32.mrf.mxu1  ;;  %v4686_v23 = vpop.f32.mrf.mxu0 }
 0x357   : > { %5313 = vst.msk [vmem:[%s7735_s7 + $0x588] sm:$0xff] %vm5136_vm1, %v5056_v2  ;;  %v5057_v16 = vadd.f32 %v4684_v57, %v3411_v54  ;;  %v3412_v37 = vadd.f32 %v3040_v32, %v1766_v12  ;;  %v1776_v57 = vadd.f32 %v9278_v52, %v7713_v35  ;;  %v9279_v32 = vld [vmem:[#allocation83_spill] sm:$0xff] }
 0x358   : > { %v3044_v20 = vpop.f32.mrf.mxu1  ;;  %v4690_v5 = vpop.f32.mrf.mxu0 }
 0x359   : > { %5314 = vst [vmem:[%s7735_s7 + $0x590] sm:$0xff] %v5057_v16  ;;  %v5058_v56 = vadd.f32 %v4686_v23, %v3412_v37  ;;  %v3413_v14 = vadd.f32 %v3044_v20, %v1767_v42  ;;  %v1777_v23 = vadd.f32 %v9279_v32, %v7711_v29  ;;  %v9280_v20 = vld [vmem:[#allocation85_spill] sm:$0xff] }
 0x35a   : > { %v3046_v31 = vpop.f32.mrf.mxu1  ;;  %v4692_v41 = vpop.f32.mrf.mxu0 }
 0x35b   : > { %5315 = vst.msk [vmem:[%s7735_s7 + $0x598] sm:$0xff] %vm5136_vm1, %v5058_v56  ;;  %v5059_v9 = vadd.f32 %v4690_v5, %v3413_v14  ;;  %v3414_v47 = vadd.f32 %v3046_v31, %v1768_v34  ;;  %v1778_v5 = vadd.f32 %v9280_v20, %v7713_v35  ;;  %v9281_v31 = vld [vmem:[#allocation87_spill] sm:$0xff] }
 0x35c   : > { %v3048_v11 = vpop.f32.mrf.mxu1  ;;  %v4694_v51 = vpop.f32.mrf.mxu0 }
 0x35d   : > { %5316 = vst [vmem:[%s7735_s7 + $0x5a0] sm:$0xff] %v5059_v9  ;;  %v5060_v61 = vadd.f32 %v4692_v41, %v3414_v47  ;;  %v3415_v1 = vadd.f32 %v3048_v11, %v1769_v43  ;;  %v1779_v41 = vadd.f32 %v9281_v31, %v7711_v29  ;;  %v9282_v11 = vld [vmem:[#allocation89_spill] sm:$0xff] }
 0x35e   : > { %v3050_v24 = vpop.f32.mrf.mxu1  ;;  %v4696_v46 = vpop.f32.mrf.mxu0 }
 0x35f   : > { %5317 = vst.msk [vmem:[%s7735_s7 + $0x5a8] sm:$0xff] %vm5136_vm1, %v5060_v61  ;;  %v5061_v13 = vadd.f32 %v4694_v51, %v3415_v1  ;;  %v3416_v10 = vadd.f32 %v3050_v24, %v1770_v7  ;;  %v1780_v51 = vadd.f32 %v9282_v11, %v7713_v35  ;;  %v9283_v24 = vld [vmem:[#allocation91_spill] sm:$0xff] }
 0x360   : > { %v3054_v8 = vpop.f32.mrf.mxu1  ;;  %v4700_v36 = vpop.f32.mrf.mxu0 }
 0x361   : > { %5318 = vst [vmem:[%s7735_s7 + $0x5b0] sm:$0xff] %v5061_v13  ;;  %v5062_v4 = vadd.f32 %v4696_v46, %v3416_v10  ;;  %v3417_v55 = vadd.f32 %v3054_v8, %v1771_v58  ;;  %v1781_v46 = vadd.f32 %v9283_v24, %v7711_v29  ;;  %v9284_v8 = vld [vmem:[#allocation93_spill] sm:$0xff] }
 0x362   : > { %v3056_v22 = vpop.f32.mrf.mxu1  ;;  %v4702_v62 = vpop.f32.mrf.mxu0 }
 0x363   : > { %5319 = vst.msk [vmem:[%s7735_s7 + $0x5b8] sm:$0xff] %vm5136_vm1, %v5062_v4  ;;  %v5063_v17 = vadd.f32 %v4700_v36, %v3417_v55  ;;  %v3418_v18 = vadd.f32 %v3056_v22, %v1772_v26  ;;  %v1782_v36 = vadd.f32 %v9284_v8, %v7713_v35  ;;  %v9285_v22 = vld [vmem:[#allocation95_spill] sm:$0xff] }
 0x364   : > { %v3058_v15 = vpop.f32.mrf.mxu1  ;;  %v4704_v28 = vpop.f32.mrf.mxu0 }
 0x365   : > { %5320 = vst [vmem:[%s7735_s7 + $0x5c0] sm:$0xff] %v5063_v17  ;;  %v5064_v25 = vadd.f32 %v4702_v62, %v3418_v18  ;;  %v3419_v30 = vadd.f32 %v3058_v15, %v1773_v0  ;;  %v1783_v62 = vadd.f32 %v9285_v22, %v7711_v29  ;;  %v9286_v15 = vld [vmem:[#allocation97_spill] sm:$0xff] }
 0x366   : > { %v3060_v33 = vpop.f32.mrf.mxu1  ;;  %v4706_v50 = vpop.f32.mrf.mxu0 }
 0x367   : > { %5321 = vst.msk [vmem:[%s7735_s7 + $0x5c8] sm:$0xff] %vm5136_vm1, %v5064_v25  ;;  %v5065_v63 = vadd.f32 %v4704_v28, %v3419_v30  ;;  %v3420_v21 = vadd.f32 %v3060_v33, %v1774_v48  ;;  %v1784_v28 = vadd.f32 %v9286_v15, %v7713_v35  ;;  %v9287_v33 = vld [vmem:[#allocation99_spill] sm:$0xff] }
 0x368   : > { %v3064_v45 = vpop.f32.mrf.mxu1  ;;  %v4710_v3 = vpop.f32.mrf.mxu0 }
 0x369   : > { %5322 = vst [vmem:[%s7735_s7 + $0x5d0] sm:$0xff] %v5065_v63  ;;  %v5066_v60 = vadd.f32 %v4706_v50, %v3420_v21  ;;  %v3421_v12 = vadd.f32 %v3064_v45, %v1775_v38  ;;  %v1785_v50 = vadd.f32 %v9287_v33, %v7711_v29  ;;  %v9288_v45 = vld [vmem:[#allocation101_spill] sm:$0xff] }
 0x36a   : > { %v3066_v2 = vpop.f32.mrf.mxu1  ;;  %v4712_v54 = vpop.f32.mrf.mxu0 }
 0x36b   : > { %5323 = vst.msk [vmem:[%s7735_s7 + $0x5d8] sm:$0xff] %vm5136_vm1, %v5066_v60  ;;  %v5067_v27 = vadd.f32 %v4710_v3, %v3421_v12  ;;  %v3422_v42 = vadd.f32 %v3066_v2, %v1776_v57  ;;  %v1786_v3 = vadd.f32 %v9288_v45, %v7713_v35  ;;  %v9289_v2 = vld [vmem:[#allocation103_spill] sm:$0xff] }
 0x36c   : > { %v3068_v16 = vpop.f32.mrf.mxu1  ;;  %v4714_v37 = vpop.f32.mrf.mxu0 }
 0x36d   : > { %5324 = vst [vmem:[%s7735_s7 + $0x5e0] sm:$0xff] %v5067_v27  ;;  %v5068_v44 = vadd.f32 %v4712_v54, %v3422_v42  ;;  %v3423_v34 = vadd.f32 %v3068_v16, %v1777_v23  ;;  %v1787_v54 = vadd.f32 %v9289_v2, %v7711_v29  ;;  %v9290_v16 = vld [vmem:[#allocation105_spill] sm:$0xff] }
 0x36e   : > { %v3070_v56 = vpop.f32.mrf.mxu1  ;;  %v4716_v14 = vpop.f32.mrf.mxu0 }
 0x36f   : > { %5325 = vst.msk [vmem:[%s7735_s7 + $0x5e8] sm:$0xff] %vm5136_vm1, %v5068_v44  ;;  %v5069_v53 = vadd.f32 %v4714_v37, %v3423_v34  ;;  %v3424_v43 = vadd.f32 %v3070_v56, %v1778_v5  ;;  %v1788_v37 = vadd.f32 %v9290_v16, %v7713_v35  ;;  %v9291_v56 = vld [vmem:[#allocation107_spill] sm:$0xff] }
 0x370   : > { %v3074_v9 = vpop.f32.mrf.mxu1  ;;  %v4720_v47 = vpop.f32.mrf.mxu0 }
 0x371   : > { %5326 = vst [vmem:[%s7735_s7 + $0x5f0] sm:$0xff] %v5069_v53  ;;  %v5070_v6 = vadd.f32 %v4716_v14, %v3424_v43  ;;  %v3425_v7 = vadd.f32 %v3074_v9, %v1779_v41  ;;  %v1789_v14 = vadd.f32 %v9291_v56, %v7711_v29  ;;  %v9292_v9 = vld [vmem:[#allocation109_spill] sm:$0xff] }
 0x372   : > { %v3076_v61 = vpop.f32.mrf.mxu1  ;;  %v4722_v1 = vpop.f32.mrf.mxu0 }
 0x373   : > { %5327 = vst.msk [vmem:[%s7735_s7 + $0x5f8] sm:$0xff] %vm5136_vm1, %v5070_v6  ;;  %v5071_v39 = vadd.f32 %v4720_v47, %v3425_v7  ;;  %v3426_v58 = vadd.f32 %v3076_v61, %v1780_v51  ;;  %v1790_v47 = vadd.f32 %v9292_v9, %v7713_v35  ;;  %v9293_v61 = vld [vmem:[#allocation111_spill] sm:$0xff] }
 0x374   : > { %v3078_v13 = vpop.f32.mrf.mxu1  ;;  %v4724_v10 = vpop.f32.mrf.mxu0 }
 0x375   : > { %5328 = vst [vmem:[%s7735_s7 + $0x600] sm:$0xff] %v5071_v39  ;;  %v5072_v49 = vadd.f32 %v4722_v1, %v3426_v58  ;;  %v3427_v26 = vadd.f32 %v3078_v13, %v1781_v46  ;;  %v1791_v1 = vadd.f32 %v9293_v61, %v7711_v29  ;;  %v9294_v13 = vld [vmem:[#allocation113_spill] sm:$0xff] }
 0x376   : > { %v3080_v4 = vpop.f32.mrf.mxu1  ;;  %v4726_v55 = vpop.f32.mrf.mxu0 }
 0x377   : > { %5329 = vst.msk [vmem:[%s7735_s7 + $0x608] sm:$0xff] %vm5136_vm1, %v5072_v49  ;;  %v5073_v59 = vadd.f32 %v4724_v10, %v3427_v26  ;;  %v3428_v0 = vadd.f32 %v3080_v4, %v1782_v36  ;;  %v1792_v10 = vadd.f32 %v9294_v13, %v7713_v35  ;;  %v9295_v4 = vld [vmem:[#allocation115_spill] sm:$0xff] }
 0x378   : > { %v3084_v17 = vpop.f32.mrf.mxu1  ;;  %v4730_v18 = vpop.f32.mrf.mxu0 }
 0x379   : > { %5330 = vst [vmem:[%s7735_s7 + $0x610] sm:$0xff] %v5073_v59  ;;  %v5074_v40 = vadd.f32 %v4726_v55, %v3428_v0  ;;  %v3429_v48 = vadd.f32 %v3084_v17, %v1783_v62  ;;  %v1793_v55 = vadd.f32 %v9295_v4, %v7711_v29  ;;  %v9296_v17 = vld [vmem:[#allocation117_spill] sm:$0xff] }
 0x37a   : > { %v3086_v25 = vpop.f32.mrf.mxu1  ;;  %v4732_v30 = vpop.f32.mrf.mxu0 }
 0x37b   : > { %5331 = vst.msk [vmem:[%s7735_s7 + $0x618] sm:$0xff] %vm5136_vm1, %v5074_v40  ;;  %v5075_v19 = vadd.f32 %v4730_v18, %v3429_v48  ;;  %v3430_v38 = vadd.f32 %v3086_v25, %v1784_v28  ;;  %v1794_v18 = vadd.f32 %v9296_v17, %v7713_v35  ;;  %v9297_v25 = vld [vmem:[#allocation119_spill] sm:$0xff] }
 0x37c   : > { %v3088_v63 = vpop.f32.mrf.mxu1  ;;  %v4734_v21 = vpop.f32.mrf.mxu0 }
 0x37d   : > { %5332 = vst [vmem:[%s7735_s7 + $0x620] sm:$0xff] %v5075_v19  ;;  %v5076_v52 = vadd.f32 %v4732_v30, %v3430_v38  ;;  %v3431_v57 = vadd.f32 %v3088_v63, %v1785_v50  ;;  %v1795_v30 = vadd.f32 %v9297_v25, %v7711_v29  ;;  %v9298_v63 = vld [vmem:[#allocation121_spill] sm:$0xff] }
 0x37e   : > { %v3090_v60 = vpop.f32.mrf.mxu1  ;;  %v4736_v12 = vpop.f32.mrf.mxu0 }
 0x37f   : > { %5333 = vst.msk [vmem:[%s7735_s7 + $0x628] sm:$0xff] %vm5136_vm1, %v5076_v52  ;;  %v5077_v32 = vadd.f32 %v4734_v21, %v3431_v57  ;;  %v3432_v23 = vadd.f32 %v3090_v60, %v1786_v3  ;;  %v1796_v21 = vadd.f32 %v9298_v63, %v7713_v35  ;;  %v9299_v60 = vld [vmem:[#allocation123_spill] sm:$0xff] }
 0x380   : > { %v3094_v27 = vpop.f32.mrf.mxu1  ;;  %v4740_v42 = vpop.f32.mrf.mxu0 }
 0x381   : > { %5334 = vst [vmem:[%s7735_s7 + $0x630] sm:$0xff] %v5077_v32  ;;  %v5078_v20 = vadd.f32 %v4736_v12, %v3432_v23  ;;  %v3433_v5 = vadd.f32 %v3094_v27, %v1787_v54  ;;  %v1797_v12 = vadd.f32 %v9299_v60, %v7711_v29  ;;  %v9300_v27 = vld [vmem:[#allocation125_spill] sm:$0xff] }
 0x382   : > { %v3096_v44 = vpop.f32.mrf.mxu1  ;;  %v4742_v34 = vpop.f32.mrf.mxu0 }
 0x383   : > { %5335 = vst.msk [vmem:[%s7735_s7 + $0x638] sm:$0xff] %vm5136_vm1, %v5078_v20  ;;  %v5079_v31 = vadd.f32 %v4740_v42, %v3433_v5  ;;  %v3434_v41 = vadd.f32 %v3096_v44, %v1788_v37  ;;  %v1798_v42 = vadd.f32 %v9300_v27, %v7713_v35  ;;  %v9301_v44 = vld [vmem:[#allocation127_spill] sm:$0xff] }
 0x384   : > { %v3098_v53 = vpop.f32.mrf.mxu1  ;;  %v4744_v43 = vpop.f32.mrf.mxu0 }
 0x385   : > { %5336 = vst [vmem:[%s7735_s7 + $0x640] sm:$0xff] %v5079_v31  ;;  %v5080_v11 = vadd.f32 %v4742_v34, %v3434_v41  ;;  %v3435_v51 = vadd.f32 %v3098_v53, %v1789_v14  ;;  %v1799_v34 = vadd.f32 %v9301_v44, %v7711_v29  ;;  %v9302_v53 = vld [vmem:[#allocation129_spill] sm:$0xff] }
 0x386   : > { %v3100_v6 = vpop.f32.mrf.mxu1  ;;  %v4746_v7 = vpop.f32.mrf.mxu0 }
 0x387   : > { %5337 = vst.msk [vmem:[%s7735_s7 + $0x648] sm:$0xff] %vm5136_vm1, %v5080_v11  ;;  %v5081_v24 = vadd.f32 %v4744_v43, %v3435_v51  ;;  %v3436_v46 = vadd.f32 %v3100_v6, %v1790_v47  ;;  %v1800_v43 = vadd.f32 %v9302_v53, %v7713_v35  ;;  %v9303_v6 = vld [vmem:[#allocation131_spill] sm:$0xff] }
 0x388   : > { %v3104_v39 = vpop.f32.mrf.mxu1  ;;  %v4750_v58 = vpop.f32.mrf.mxu0 }
 0x389   : > { %5338 = vst [vmem:[%s7735_s7 + $0x650] sm:$0xff] %v5081_v24  ;;  %v5082_v8 = vadd.f32 %v4746_v7, %v3436_v46  ;;  %v3437_v36 = vadd.f32 %v3104_v39, %v1791_v1  ;;  %v1801_v7 = vadd.f32 %v9303_v6, %v7711_v29  ;;  %v9304_v39 = vld [vmem:[#allocation133_spill] sm:$0xff] }
 0x38a   : > { %v3106_v49 = vpop.f32.mrf.mxu1  ;;  %v4752_v26 = vpop.f32.mrf.mxu0 }
 0x38b   : > { %5339 = vst.msk [vmem:[%s7735_s7 + $0x658] sm:$0xff] %vm5136_vm1, %v5082_v8  ;;  %v5083_v22 = vadd.f32 %v4750_v58, %v3437_v36  ;;  %v3438_v62 = vadd.f32 %v3106_v49, %v1792_v10  ;;  %v1802_v58 = vadd.f32 %v9304_v39, %v7713_v35  ;;  %v9305_v49 = vld [vmem:[#allocation135_spill] sm:$0xff] }
 0x38c   : > { %v3108_v59 = vpop.f32.mrf.mxu1  ;;  %v4754_v0 = vpop.f32.mrf.mxu0 }
 0x38d   : > { %5340 = vst [vmem:[%s7735_s7 + $0x660] sm:$0xff] %v5083_v22  ;;  %v5084_v15 = vadd.f32 %v4752_v26, %v3438_v62  ;;  %v3439_v28 = vadd.f32 %v3108_v59, %v1793_v55  ;;  %v1803_v26 = vadd.f32 %v9305_v49, %v7711_v29  ;;  %v9306_v59 = vld [vmem:[#allocation137_spill] sm:$0xff] }
 0x38e   : > { %v3110_v40 = vpop.f32.mrf.mxu1  ;;  %v4756_v48 = vpop.f32.mrf.mxu0 }
 0x38f   : > { %5341 = vst.msk [vmem:[%s7735_s7 + $0x668] sm:$0xff] %vm5136_vm1, %v5084_v15  ;;  %v5085_v33 = vadd.f32 %v4754_v0, %v3439_v28  ;;  %v3440_v50 = vadd.f32 %v3110_v40, %v1794_v18  ;;  %v1804_v0 = vadd.f32 %v9306_v59, %v7713_v35  ;;  %v9307_v40 = vld [vmem:[#allocation139_spill] sm:$0xff] }
 0x390   : > { %v3114_v19 = vpop.f32.mrf.mxu1  ;;  %v4760_v38 = vpop.f32.mrf.mxu0 }
 0x391   : > { %5342 = vst [vmem:[%s7735_s7 + $0x670] sm:$0xff] %v5085_v33  ;;  %v5086_v45 = vadd.f32 %v4756_v48, %v3440_v50  ;;  %v3441_v3 = vadd.f32 %v3114_v19, %v1795_v30  ;;  %v1805_v48 = vadd.f32 %v9307_v40, %v7711_v29  ;;  %v9308_v19 = vld [vmem:[#allocation141_spill] sm:$0xff] }
 0x392   : > { %v3116_v52 = vpop.f32.mrf.mxu1  ;;  %v4762_v57 = vpop.f32.mrf.mxu0 }
 0x393   : > { %5343 = vst.msk [vmem:[%s7735_s7 + $0x678] sm:$0xff] %vm5136_vm1, %v5086_v45  ;;  %v5087_v2 = vadd.f32 %v4760_v38, %v3441_v3  ;;  %v3442_v54 = vadd.f32 %v3116_v52, %v1796_v21  ;;  %v1806_v38 = vadd.f32 %v9308_v19, %v7713_v35  ;;  %v9309_v52 = vld [vmem:[#allocation143_spill] sm:$0xff] }
 0x394   : > { %v3118_v32 = vpop.f32.mrf.mxu1  ;;  %v4764_v23 = vpop.f32.mrf.mxu0 }
 0x395   : > { %5344 = vst [vmem:[%s7735_s7 + $0x680] sm:$0xff] %v5087_v2  ;;  %v5088_v16 = vadd.f32 %v4762_v57, %v3442_v54  ;;  %v3443_v37 = vadd.f32 %v3118_v32, %v1797_v12  ;;  %v1807_v57 = vadd.f32 %v9309_v52, %v7711_v29  ;;  %v9310_v32 = vld [vmem:[#allocation145_spill] sm:$0xff] }
 0x396   : > { %v3120_v20 = vpop.f32.mrf.mxu1  ;;  %v4766_v5 = vpop.f32.mrf.mxu0 }
 0x397   : > { %5345 = vst.msk [vmem:[%s7735_s7 + $0x688] sm:$0xff] %vm5136_vm1, %v5088_v16  ;;  %v5089_v56 = vadd.f32 %v4764_v23, %v3443_v37  ;;  %v3444_v14 = vadd.f32 %v3120_v20, %v1798_v42  ;;  %v1808_v23 = vadd.f32 %v9310_v32, %v7713_v35  ;;  %v9311_v20 = vld [vmem:[#allocation147_spill] sm:$0xff] }
 0x398   : > { %v3124_v31 = vpop.f32.mrf.mxu1  ;;  %v4770_v41 = vpop.f32.mrf.mxu0 }
 0x399   : > { %5346 = vst [vmem:[%s7735_s7 + $0x690] sm:$0xff] %v5089_v56  ;;  %v5090_v9 = vadd.f32 %v4766_v5, %v3444_v14  ;;  %v3445_v47 = vadd.f32 %v3124_v31, %v1799_v34  ;;  %v1809_v5 = vadd.f32 %v9311_v20, %v7711_v29  ;;  %v9312_v31 = vld [vmem:[#allocation149_spill] sm:$0xff] }
 0x39a   : > { %v3126_v11 = vpop.f32.mrf.mxu1  ;;  %v4772_v51 = vpop.f32.mrf.mxu0 }
 0x39b   : > { %5347 = vst.msk [vmem:[%s7735_s7 + $0x698] sm:$0xff] %vm5136_vm1, %v5090_v9  ;;  %v5091_v61 = vadd.f32 %v4770_v41, %v3445_v47  ;;  %v3446_v1 = vadd.f32 %v3126_v11, %v1800_v43  ;;  %v1810_v41 = vadd.f32 %v9312_v31, %v7713_v35  ;;  %v9313_v11 = vld [vmem:[#allocation151_spill] sm:$0xff] }
 0x39c   : > { %v3128_v24 = vpop.f32.mrf.mxu1  ;;  %v4774_v46 = vpop.f32.mrf.mxu0 }
 0x39d   : > { %5348 = vst [vmem:[%s7735_s7 + $0x6a0] sm:$0xff] %v5091_v61  ;;  %v5092_v13 = vadd.f32 %v4772_v51, %v3446_v1  ;;  %v3447_v10 = vadd.f32 %v3128_v24, %v1801_v7  ;;  %v1811_v51 = vadd.f32 %v9313_v11, %v7711_v29  ;;  %v9314_v24 = vld [vmem:[#allocation153_spill] sm:$0xff] }
 0x39e   : > { %v3130_v8 = vpop.f32.mrf.mxu1  ;;  %v4776_v36 = vpop.f32.mrf.mxu0 }
 0x39f   : > { %5349 = vst.msk [vmem:[%s7735_s7 + $0x6a8] sm:$0xff] %vm5136_vm1, %v5092_v13  ;;  %v5093_v4 = vadd.f32 %v4774_v46, %v3447_v10  ;;  %v3448_v55 = vadd.f32 %v3130_v8, %v1802_v58  ;;  %v1812_v46 = vadd.f32 %v9314_v24, %v7713_v35  ;;  %v9315_v8 = vld [vmem:[#allocation155_spill] sm:$0xff] }
 0x3a0   : > { %v3134_v22 = vpop.f32.mrf.mxu1  ;;  %v4780_v62 = vpop.f32.mrf.mxu0 }
 0x3a1   : > { %5350 = vst [vmem:[%s7735_s7 + $0x6b0] sm:$0xff] %v5093_v4  ;;  %v5094_v17 = vadd.f32 %v4776_v36, %v3448_v55  ;;  %v3449_v18 = vadd.f32 %v3134_v22, %v1803_v26  ;;  %v1813_v36 = vadd.f32 %v9315_v8, %v7711_v29  ;;  %v9316_v22 = vld [vmem:[#allocation157_spill] sm:$0xff] }
 0x3a2   : > { %v3136_v15 = vpop.f32.mrf.mxu1  ;;  %v4782_v28 = vpop.f32.mrf.mxu0 }
 0x3a3   : > { %5351 = vst.msk [vmem:[%s7735_s7 + $0x6b8] sm:$0xff] %vm5136_vm1, %v5094_v17  ;;  %v5095_v25 = vadd.f32 %v4780_v62, %v3449_v18  ;;  %v3450_v30 = vadd.f32 %v3136_v15, %v1804_v0  ;;  %v1814_v62 = vadd.f32 %v9316_v22, %v7713_v35  ;;  %v9317_v15 = vld [vmem:[#allocation159_spill] sm:$0xff] }
 0x3a4   : > { %v3138_v33 = vpop.f32.mrf.mxu1  ;;  %v4784_v50 = vpop.f32.mrf.mxu0 }
 0x3a5   : > { %5352 = vst [vmem:[%s7735_s7 + $0x6c0] sm:$0xff] %v5095_v25  ;;  %v5096_v63 = vadd.f32 %v4782_v28, %v3450_v30  ;;  %v3451_v21 = vadd.f32 %v3138_v33, %v1805_v48  ;;  %v1815_v28 = vadd.f32 %v9317_v15, %v7711_v29  ;;  %v9318_v33 = vld [vmem:[#allocation161_spill] sm:$0xff] }
 0x3a6   : > { %v3140_v45 = vpop.f32.mrf.mxu1  ;;  %v4786_v3 = vpop.f32.mrf.mxu0 }
 0x3a7   : > { %5353 = vst.msk [vmem:[%s7735_s7 + $0x6c8] sm:$0xff] %vm5136_vm1, %v5096_v63  ;;  %v5097_v60 = vadd.f32 %v4784_v50, %v3451_v21  ;;  %v3452_v12 = vadd.f32 %v3140_v45, %v1806_v38  ;;  %v1816_v50 = vadd.f32 %v9318_v33, %v7713_v35  ;;  %v9319_v45 = vld [vmem:[#allocation163_spill] sm:$0xff] }
 0x3a8   : > { %v3144_v2 = vpop.f32.mrf.mxu1  ;;  %v4790_v54 = vpop.f32.mrf.mxu0 }
 0x3a9   : > { %5354 = vst [vmem:[%s7735_s7 + $0x6d0] sm:$0xff] %v5097_v60  ;;  %v5098_v27 = vadd.f32 %v4786_v3, %v3452_v12  ;;  %v3453_v42 = vadd.f32 %v3144_v2, %v1807_v57  ;;  %v1817_v3 = vadd.f32 %v9319_v45, %v7711_v29  ;;  %v9320_v2 = vld [vmem:[#allocation165_spill] sm:$0xff] }
 0x3aa   : > { %v3146_v16 = vpop.f32.mrf.mxu1  ;;  %v4792_v37 = vpop.f32.mrf.mxu0 }
 0x3ab   : > { %5355 = vst.msk [vmem:[%s7735_s7 + $0x6d8] sm:$0xff] %vm5136_vm1, %v5098_v27  ;;  %v5099_v44 = vadd.f32 %v4790_v54, %v3453_v42  ;;  %v3454_v34 = vadd.f32 %v3146_v16, %v1808_v23  ;;  %v1818_v54 = vadd.f32 %v9320_v2, %v7713_v35  ;;  %v9321_v16 = vld [vmem:[#allocation167_spill] sm:$0xff] }
 0x3ac   : > { %v3148_v56 = vpop.f32.mrf.mxu1  ;;  %v4794_v14 = vpop.f32.mrf.mxu0 }
 0x3ad   : > { %5356 = vst [vmem:[%s7735_s7 + $0x6e0] sm:$0xff] %v5099_v44  ;;  %v5100_v53 = vadd.f32 %v4792_v37, %v3454_v34  ;;  %v3455_v43 = vadd.f32 %v3148_v56, %v1809_v5  ;;  %v1819_v37 = vadd.f32 %v9321_v16, %v7711_v29  ;;  %v9322_v56 = vld [vmem:[#allocation169_spill] sm:$0xff] }
 0x3ae   : > { %v3150_v9 = vpop.f32.mrf.mxu1  ;;  %v4796_v47 = vpop.f32.mrf.mxu0 }
 0x3af   : > { %5357 = vst.msk [vmem:[%s7735_s7 + $0x6e8] sm:$0xff] %vm5136_vm1, %v5100_v53  ;;  %v5101_v6 = vadd.f32 %v4794_v14, %v3455_v43  ;;  %v3456_v7 = vadd.f32 %v3150_v9, %v1810_v41  ;;  %v1820_v14 = vadd.f32 %v9322_v56, %v7713_v35  ;;  %v9323_v9 = vld [vmem:[#allocation171_spill] sm:$0xff] }
 0x3b0   : > { %v3154_v61 = vpop.f32.mrf.mxu1  ;;  %v4800_v1 = vpop.f32.mrf.mxu0 }
 0x3b1   : > { %5358 = vst [vmem:[%s7735_s7 + $0x6f0] sm:$0xff] %v5101_v6  ;;  %v5102_v39 = vadd.f32 %v4796_v47, %v3456_v7  ;;  %v3457_v58 = vadd.f32 %v3154_v61, %v1811_v51  ;;  %v1821_v47 = vadd.f32 %v9323_v9, %v7711_v29  ;;  %v9324_v61 = vld [vmem:[#allocation173_spill] sm:$0xff] }
 0x3b2   : > { %v3156_v13 = vpop.f32.mrf.mxu1  ;;  %v4802_v10 = vpop.f32.mrf.mxu0 }
 0x3b3   : > { %5359 = vst.msk [vmem:[%s7735_s7 + $0x6f8] sm:$0xff] %vm5136_vm1, %v5102_v39  ;;  %v5103_v49 = vadd.f32 %v4800_v1, %v3457_v58  ;;  %v3458_v26 = vadd.f32 %v3156_v13, %v1812_v46  ;;  %v1822_v1 = vadd.f32 %v9324_v61, %v7713_v35  ;;  %v9325_v13 = vld [vmem:[#allocation175_spill] sm:$0xff] }
 0x3b4   : > { %v3158_v4 = vpop.f32.mrf.mxu1  ;;  %v4804_v55 = vpop.f32.mrf.mxu0 }
 0x3b5   : > { %5360 = vst [vmem:[%s7735_s7 + $0x700] sm:$0xff] %v5103_v49  ;;  %v5104_v59 = vadd.f32 %v4802_v10, %v3458_v26  ;;  %v3459_v0 = vadd.f32 %v3158_v4, %v1813_v36  ;;  %v1823_v10 = vadd.f32 %v9325_v13, %v7711_v29  ;;  %v9326_v4 = vld [vmem:[#allocation177_spill] sm:$0xff] }
 0x3b6   : > { %v3160_v17 = vpop.f32.mrf.mxu1  ;;  %v4806_v18 = vpop.f32.mrf.mxu0 }
 0x3b7   : > { %5361 = vst.msk [vmem:[%s7735_s7 + $0x708] sm:$0xff] %vm5136_vm1, %v5104_v59  ;;  %v5105_v40 = vadd.f32 %v4804_v55, %v3459_v0  ;;  %v3460_v48 = vadd.f32 %v3160_v17, %v1814_v62  ;;  %v1824_v55 = vadd.f32 %v9326_v4, %v7713_v35  ;;  %v9327_v17 = vld [vmem:[#allocation179_spill] sm:$0xff] }
 0x3b8   : > { %v3164_v25 = vpop.f32.mrf.mxu1  ;;  %v4810_v30 = vpop.f32.mrf.mxu0 }
 0x3b9   : > { %5362 = vst [vmem:[%s7735_s7 + $0x710] sm:$0xff] %v5105_v40  ;;  %v5106_v19 = vadd.f32 %v4806_v18, %v3460_v48  ;;  %v3461_v38 = vadd.f32 %v3164_v25, %v1815_v28  ;;  %v1825_v18 = vadd.f32 %v9327_v17, %v7711_v29  ;;  %v9328_v25 = vld [vmem:[#allocation181_spill] sm:$0xff] }
 0x3ba   : > { %v3166_v63 = vpop.f32.mrf.mxu1  ;;  %v4812_v21 = vpop.f32.mrf.mxu0 }
 0x3bb   : > { %5363 = vst.msk [vmem:[%s7735_s7 + $0x718] sm:$0xff] %vm5136_vm1, %v5106_v19  ;;  %v5107_v52 = vadd.f32 %v4810_v30, %v3461_v38  ;;  %v3462_v57 = vadd.f32 %v3166_v63, %v1816_v50  ;;  %v1826_v30 = vadd.f32 %v9328_v25, %v7713_v35  ;;  %v9329_v63 = vld [vmem:[#allocation183_spill] sm:$0xff] }
 0x3bc   : > { %v3168_v60 = vpop.f32.mrf.mxu1  ;;  %v4814_v12 = vpop.f32.mrf.mxu0 }
 0x3bd   : > { %5364 = vst [vmem:[%s7735_s7 + $0x720] sm:$0xff] %v5107_v52  ;;  %v5108_v32 = vadd.f32 %v4812_v21, %v3462_v57  ;;  %v3463_v23 = vadd.f32 %v3168_v60, %v1817_v3  ;;  %v1827_v21 = vadd.f32 %v9329_v63, %v7711_v29  ;;  %v9330_v60 = vld [vmem:[#allocation185_spill] sm:$0xff] }
 0x3be   : > { %v3170_v27 = vpop.f32.mrf.mxu1  ;;  %v4816_v42 = vpop.f32.mrf.mxu0 }
 0x3bf   : > { %5365 = vst.msk [vmem:[%s7735_s7 + $0x728] sm:$0xff] %vm5136_vm1, %v5108_v32  ;;  %v5109_v20 = vadd.f32 %v4814_v12, %v3463_v23  ;;  %v3464_v5 = vadd.f32 %v3170_v27, %v1818_v54  ;;  %v1828_v12 = vadd.f32 %v9330_v60, %v7713_v35  ;;  %v9331_v27 = vld [vmem:[#allocation187_spill] sm:$0xff] }
 0x3c0   : > { %v3174_v44 = vpop.f32.mrf.mxu1  ;;  %v4820_v34 = vpop.f32.mrf.mxu0 }
 0x3c1   : > { %5366 = vst [vmem:[%s7735_s7 + $0x730] sm:$0xff] %v5109_v20  ;;  %v5110_v31 = vadd.f32 %v4816_v42, %v3464_v5  ;;  %v3465_v41 = vadd.f32 %v3174_v44, %v1819_v37  ;;  %v1829_v42 = vadd.f32 %v9331_v27, %v7711_v29  ;;  %v9332_v44 = vld [vmem:[#allocation189_spill] sm:$0xff] }
 0x3c2   : > { %v3176_v53 = vpop.f32.mrf.mxu1  ;;  %v4822_v43 = vpop.f32.mrf.mxu0 }
 0x3c3   : > { %5367 = vst.msk [vmem:[%s7735_s7 + $0x738] sm:$0xff] %vm5136_vm1, %v5110_v31  ;;  %v5111_v11 = vadd.f32 %v4820_v34, %v3465_v41  ;;  %v3466_v51 = vadd.f32 %v3176_v53, %v1820_v14  ;;  %v1830_v34 = vadd.f32 %v9332_v44, %v7713_v35  ;;  %v9333_v53 = vld [vmem:[#allocation191_spill] sm:$0xff] }
 0x3c4   : > { %v3178_v6 = vpop.f32.mrf.mxu1  ;;  %v4824_v7 = vpop.f32.mrf.mxu0 }
 0x3c5   : > { %5368 = vst [vmem:[%s7735_s7 + $0x740] sm:$0xff] %v5111_v11  ;;  %v5112_v24 = vadd.f32 %v4822_v43, %v3466_v51  ;;  %v3467_v46 = vadd.f32 %v3178_v6, %v1821_v47  ;;  %v1831_v43 = vadd.f32 %v9333_v53, %v7711_v29  ;;  %v9334_v6 = vld [vmem:[#allocation193_spill] sm:$0xff] }
 0x3c6   : > { %v3180_v39 = vpop.f32.mrf.mxu1  ;;  %v4826_v58 = vpop.f32.mrf.mxu0 }
 0x3c7   : > { %5369 = vst.msk [vmem:[%s7735_s7 + $0x748] sm:$0xff] %vm5136_vm1, %v5112_v24  ;;  %v5113_v8 = vadd.f32 %v4824_v7, %v3467_v46  ;;  %v3468_v36 = vadd.f32 %v3180_v39, %v1822_v1  ;;  %v1832_v7 = vadd.f32 %v9334_v6, %v7713_v35  ;;  %v9335_v39 = vld [vmem:[#allocation195_spill] sm:$0xff] }
 0x3c8   : > { %v3184_v49 = vpop.f32.mrf.mxu1  ;;  %v4830_v26 = vpop.f32.mrf.mxu0 }
 0x3c9   : > { %5370 = vst [vmem:[%s7735_s7 + $0x750] sm:$0xff] %v5113_v8  ;;  %v5114_v22 = vadd.f32 %v4826_v58, %v3468_v36  ;;  %v3469_v62 = vadd.f32 %v3184_v49, %v1823_v10  ;;  %v1833_v58 = vadd.f32 %v9335_v39, %v7711_v29  ;;  %v9336_v49 = vld [vmem:[#allocation197_spill] sm:$0xff] }
 0x3ca   : > { %v3186_v59 = vpop.f32.mrf.mxu1  ;;  %v4832_v0 = vpop.f32.mrf.mxu0 }
 0x3cb   : > { %5371 = vst.msk [vmem:[%s7735_s7 + $0x758] sm:$0xff] %vm5136_vm1, %v5114_v22  ;;  %v5115_v15 = vadd.f32 %v4830_v26, %v3469_v62  ;;  %v3470_v28 = vadd.f32 %v3186_v59, %v1824_v55  ;;  %v1834_v26 = vadd.f32 %v9336_v49, %v7713_v35  ;;  %v9337_v59 = vld [vmem:[#allocation199_spill] sm:$0xff] }
 0x3cc   : > { %v3188_v40 = vpop.f32.mrf.mxu1  ;;  %v4834_v48 = vpop.f32.mrf.mxu0 }
 0x3cd   : > { %5372 = vst [vmem:[%s7735_s7 + $0x760] sm:$0xff] %v5115_v15  ;;  %v5116_v33 = vadd.f32 %v4832_v0, %v3470_v28  ;;  %v3471_v50 = vadd.f32 %v3188_v40, %v1825_v18  ;;  %v1835_v0 = vadd.f32 %v9337_v59, %v7711_v29  ;;  %v9338_v40 = vld [vmem:[#allocation201_spill] sm:$0xff] }
 0x3ce   : > { %v3190_v19 = vpop.f32.mrf.mxu1  ;;  %v4836_v38 = vpop.f32.mrf.mxu0 }
 0x3cf   : > { %5373 = vst.msk [vmem:[%s7735_s7 + $0x768] sm:$0xff] %vm5136_vm1, %v5116_v33  ;;  %v5117_v45 = vadd.f32 %v4834_v48, %v3471_v50  ;;  %v3472_v3 = vadd.f32 %v3190_v19, %v1826_v30  ;;  %v1836_v48 = vadd.f32 %v9338_v40, %v7713_v35  ;;  %v9339_v19 = vld [vmem:[#allocation203_spill] sm:$0xff] }
 0x3d0   : > { %v3194_v52 = vpop.f32.mrf.mxu1  ;;  %v4840_v57 = vpop.f32.mrf.mxu0 }
 0x3d1   : > { %5374 = vst [vmem:[%s7735_s7 + $0x770] sm:$0xff] %v5117_v45  ;;  %v5118_v2 = vadd.f32 %v4836_v38, %v3472_v3  ;;  %v3473_v54 = vadd.f32 %v3194_v52, %v1827_v21  ;;  %v1837_v38 = vadd.f32 %v9339_v19, %v7711_v29  ;;  %v9340_v52 = vld [vmem:[#allocation205_spill] sm:$0xff] }
 0x3d2   : > { %v3196_v32 = vpop.f32.mrf.mxu1  ;;  %v4842_v23 = vpop.f32.mrf.mxu0 }
 0x3d3   : > { %5375 = vst.msk [vmem:[%s7735_s7 + $0x778] sm:$0xff] %vm5136_vm1, %v5118_v2  ;;  %v5119_v16 = vadd.f32 %v4840_v57, %v3473_v54  ;;  %v3474_v37 = vadd.f32 %v3196_v32, %v1828_v12  ;;  %v1838_v57 = vadd.f32 %v9340_v52, %v7713_v35  ;;  %v9341_v32 = vld [vmem:[#allocation207_spill] sm:$0xff] }
 0x3d4   : > { %v3198_v20 = vpop.f32.mrf.mxu1  ;;  %v4844_v5 = vpop.f32.mrf.mxu0 }
 0x3d5   : > { %5376 = vst [vmem:[%s7735_s7 + $0x780] sm:$0xff] %v5119_v16  ;;  %v5120_v56 = vadd.f32 %v4842_v23, %v3474_v37  ;;  %v3475_v14 = vadd.f32 %v3198_v20, %v1829_v42  ;;  %v1839_v23 = vadd.f32 %v9341_v32, %v7711_v29  ;;  %v9342_v20 = vld [vmem:[#allocation209_spill] sm:$0xff] }
 0x3d6   : > { %v3200_v31 = vpop.f32.mrf.mxu1  ;;  %v4846_v41 = vpop.f32.mrf.mxu0 }
 0x3d7   : > { %5377 = vst.msk [vmem:[%s7735_s7 + $0x788] sm:$0xff] %vm5136_vm1, %v5120_v56  ;;  %v5121_v9 = vadd.f32 %v4844_v5, %v3475_v14  ;;  %v3476_v47 = vadd.f32 %v3200_v31, %v1830_v34  ;;  %v1840_v5 = vadd.f32 %v9342_v20, %v7713_v35  ;;  %v9343_v31 = vld [vmem:[#allocation211_spill] sm:$0xff] }
 0x3d8   : > { %v3204_v11 = vpop.f32.mrf.mxu1  ;;  %v4850_v51 = vpop.f32.mrf.mxu0 }
 0x3d9   : > { %5378 = vst [vmem:[%s7735_s7 + $0x790] sm:$0xff] %v5121_v9  ;;  %v5122_v61 = vadd.f32 %v4846_v41, %v3476_v47  ;;  %v3477_v1 = vadd.f32 %v3204_v11, %v1831_v43  ;;  %v1841_v41 = vadd.f32 %v9343_v31, %v7711_v29  ;;  %v9344_v11 = vld [vmem:[#allocation213_spill] sm:$0xff] }
 0x3da   : > { %v3206_v24 = vpop.f32.mrf.mxu1  ;;  %v4852_v46 = vpop.f32.mrf.mxu0 }
 0x3db   : > { %5379 = vst.msk [vmem:[%s7735_s7 + $0x798] sm:$0xff] %vm5136_vm1, %v5122_v61  ;;  %v5123_v13 = vadd.f32 %v4850_v51, %v3477_v1  ;;  %v3478_v10 = vadd.f32 %v3206_v24, %v1832_v7  ;;  %v1842_v51 = vadd.f32 %v9344_v11, %v7713_v35 }
 0x3dc   : > { %v3208_v8 = vpop.f32.mrf.mxu1  ;;  %v4854_v36 = vpop.f32.mrf.mxu0 }
 0x3dd   : > { %5380 = vst [vmem:[%s7735_s7 + $0x7a0] sm:$0xff] %v5123_v13  ;;  %v5124_v4 = vadd.f32 %v4852_v46, %v3478_v10  ;;  %v3479_v55 = vadd.f32 %v3208_v8, %v1833_v58 }
 0x3de   : > { %v3210_v22 = vpop.f32.mrf.mxu1  ;;  %v4856_v62 = vpop.f32.mrf.mxu0 }
 0x3df   : > { %5381 = vst.msk [vmem:[%s7735_s7 + $0x7a8] sm:$0xff] %vm5136_vm1, %v5124_v4  ;;  %v5125_v17 = vadd.f32 %v4854_v36, %v3479_v55  ;;  %v3480_v18 = vadd.f32 %v3210_v22, %v1834_v26 }
 0x3e0   : > { %v3214_v15 = vpop.f32.mrf.mxu1  ;;  %v4860_v28 = vpop.f32.mrf.mxu0 }
 0x3e1   : > { %5382 = vst [vmem:[%s7735_s7 + $0x7b0] sm:$0xff] %v5125_v17  ;;  %v5126_v25 = vadd.f32 %v4856_v62, %v3480_v18  ;;  %v3481_v30 = vadd.f32 %v3214_v15, %v1835_v0 }
 0x3e2   : > { %v3216_v33 = vpop.f32.mrf.mxu1  ;;  %v4862_v50 = vpop.f32.mrf.mxu0 }
 0x3e3   : > { %5383 = vst.msk [vmem:[%s7735_s7 + $0x7b8] sm:$0xff] %vm5136_vm1, %v5126_v25  ;;  %v5127_v63 = vadd.f32 %v4860_v28, %v3481_v30  ;;  %v3482_v21 = vadd.f32 %v3216_v33, %v1836_v48 }
 0x3e4   : > { %v3218_v45 = vpop.f32.mrf.mxu1  ;;  %v4864_v3 = vpop.f32.mrf.mxu0 }
 0x3e5   : > { %5384 = vst [vmem:[%s7735_s7 + $0x7c0] sm:$0xff] %v5127_v63  ;;  %v5128_v60 = vadd.f32 %v4862_v50, %v3482_v21  ;;  %v3483_v12 = vadd.f32 %v3218_v45, %v1837_v38 }
 0x3e6   : > { %v3220_v2 = vpop.f32.mrf.mxu1  ;;  %v4866_v54 = vpop.f32.mrf.mxu0 }
 0x3e7   : > { %5385 = vst.msk [vmem:[%s7735_s7 + $0x7c8] sm:$0xff] %vm5136_vm1, %v5128_v60  ;;  %v5129_v27 = vadd.f32 %v4864_v3, %v3483_v12  ;;  %v3484_v42 = vadd.f32 %v3220_v2, %v1838_v57 }
 0x3e8   : > { %v3224_v16 = vpop.f32.mrf.mxu1  ;;  %v4870_v37 = vpop.f32.mrf.mxu0 }
 0x3e9   : > { %5386 = vst [vmem:[%s7735_s7 + $0x7d0] sm:$0xff] %v5129_v27  ;;  %v5130_v44 = vadd.f32 %v4866_v54, %v3484_v42  ;;  %v3485_v34 = vadd.f32 %v3224_v16, %v1839_v23 }
 0x3ea   : > { %v3226_v56 = vpop.f32.mrf.mxu1  ;;  %v4872_v14 = vpop.f32.mrf.mxu0 }
 0x3eb   : > { %5387 = vst.msk [vmem:[%s7735_s7 + $0x7d8] sm:$0xff] %vm5136_vm1, %v5130_v44  ;;  %v5131_v53 = vadd.f32 %v4870_v37, %v3485_v34  ;;  %v3486_v43 = vadd.f32 %v3226_v56, %v1840_v5 }
 0x3ec   : > { %v3228_v9 = vpop.f32.mrf.mxu1  ;;  %v4874_v47 = vpop.f32.mrf.mxu0 }
 0x3ed   : > { %5388 = vst [vmem:[%s7735_s7 + $0x7e0] sm:$0xff] %v5131_v53  ;;  %v5132_v6 = vadd.f32 %v4872_v14, %v3486_v43  ;;  %v3487_v7 = vadd.f32 %v3228_v9, %v1841_v41 }
 0x3ee   : > { %v3230_v61 = vpop.f32.mrf.mxu1  ;;  %v4876_v24 = vpop.f32.mrf.mxu0 }
 0x3ef   : > { %5389 = vst.msk [vmem:[%s7735_s7 + $0x7e8] sm:$0xff] %vm5136_vm1, %v5132_v6  ;;  %v5133_v29 = vadd.f32 %v4874_v47, %v3487_v7  ;;  %v3488_v1 = vadd.f32 %v3230_v61, %v1842_v51 }
 0x3f1   : > { %5390 = vst [vmem:[%s7735_s7 + $0x7f0] sm:$0xff] %v5133_v29  ;;  %v5134_v35 = vadd.f32 %v4876_v24, %v3488_v1 }
 0x3f3   : > { %5391 = vst.msk [vmem:[%s7735_s7 + $0x7f8] sm:$0xff] %vm5136_vm1, %v5134_v35 }
 0x3f4   : > { %6567 = shalt.err (!%p6564_p6)
}
 0x3f5   : > { %s6568_s5 = scalar_lea.hbm %s8858_s21, 32768  ;;  %s6572_s8 = scalar_lea.hbm %s8921_s3, 262144 }
 0x3f6   : > { %p6569_p7 = scmp.ne.s32.totalorder %s8858_s21, %s6568_s5  ;;  %p6573_p11 = scmp.lt.s32.totalorder %s8858_s21, %s8921_s3 }
 0x3f7   : > { %p6574_p12 = scmp.lt.s32.totalorder %s6572_s8, %s6568_s5 }
 0x3f8   : > { %p6570_p9 = pnand %p6569_p7, %p6723_p3 }
 0x3f9   : > { %p6575_p13 = por %p6574_p12, %p6573_p11 }
 0x3fa   : > { %p6571_p10 = pneg %p6570_p9 }
 0x3fc   : > { %p6576_p0 = pnand %p6575_p13, %p6571_p10 }
 0x3fe   : > { %6579 = shalt.err (!%p6576_p0)
}
 0x3ff   : > { %s6650_s15 = smov 256   ;;  %s6651_s10 = smov 16  }
 0x400   : > { %6234 = dma.vmem_to_hbm [thread:$0]  (%p6723_p3), %s8860_s16, 32768, %s8858_s21, %s8867_s24, %s6650_s15, %s6650_s15, %s6651_s10  }
 0x401 PF: > { %p6240_p1 = scmp.ge.s32.totalorder %s6646_s19, 2  ;;  %s5424_s20 = sand.u32 1, %s6618_s12  }
 0x402   : > { %s5425_s27 = scalar_lea.sflag [#allocation3], %s5424_s20 }
 0x403   : > { %p6237_p2 = pnand %p6240_p1, %p6732_p8 }
 0x405   : > { %p6238_p4 = pneg %p6237_p2 }
 0x407   : > { %6613 = dma.done.wait (%p6238_p4), %s5425_s27, 32768  }
 0x408   : > { %6615 = vsyncadd (%p6238_p4), %s5425_s27, 4294934528  ;;  %s16_s19 = sadd.s32 1, %s6646_s19   ;;  %s9345_s12 = smov %s6622_s13 }
 0x409   : > { %p13_p5 = scmp.ge.s32.totalorder %s16_s19, 10   ;;  %s9346_s13 = smov %s6626_s14 }
 0x40a   : > { %s9347_s14 = smov %s6741_s30  ;;  %s9348_s15 = smov %s6638_s17 }
 0x40b   : > { %s9349_s16 = smov %s6642_s18  ;;  %s9350_s17 = smov %s9353_s22 }
 0x40c   : > { %s9351_s18 = smov %s9357_s23  ;;  %15 = sbr.rel (!%p13_p5) target bundleno = 5 (0x5), region = 72 }
 0x411   :  { %5430 = vsyncpa [#allocation3], 1 }
 0x412   :  { %5432 = vsyncpa [#allocation3 + $0x1], 1 }

</bundles_post_ra>
